<compile_context>
chip_gen: v5e
topology: v5e:2x2
jax: 0.10.0
libtpu: 0.0.40
codegen_flags: <defaults>
</compile_context>

<pallas_src>
import functools

import jax
import jax.numpy as jnp
import numpy as np
from jax.experimental import pallas as pl
from jax.experimental.pallas import tpu as pltpu


# ----------------------------- kernel ---------------------------------------


def _layer_norm(x, gamma, beta, eps=1e-5):
    mean = jnp.mean(x, axis=-1, keepdims=True)
    var = jnp.mean((x - mean) ** 2, axis=-1, keepdims=True)
    return (x - mean) * jax.lax.rsqrt(var + eps) * gamma + beta


def temporal_transformer_kernel(
    x_ref,                               # (Bt, T, N, F)  original-layout batch block
    wp_ref, bp_ref,                      # proj:      (F, D),   (1, D)
    wq_ref, bq_ref,                      # attn q:    (D, D),   (1, D)
    wk_ref, bk_ref,                      # attn k:    (D, D),   (1, D)
    wv_ref, bv_ref,                      # attn v:    (D, D),   (1, D)
    wo_ref, bo_ref,                      # attn out:  (D, D),   (1, D)
    g1_ref, be1_ref,                     # norm1:     (1, D),   (1, D)
    w1_ref, b1_ref,                      # linear1:   (D, Dff)  bf16, (1, Dff) f32
    w2_ref, b2_ref,                      # linear2:   (Dff, D)  bf16, (1, D)  f32
    g2_ref, be2_ref,                     # norm2:     (1, D),   (1, D)
    seg_ref, segt_ref,                   # head segments: (D, nhead), (nhead, D)
    out_ref,                             # (Bt, N, D)
    *, nhead,
):
    f32 = jnp.float32
    Bt, T, N, Fdim = x_ref.shape
    D = wp_ref.shape[1]
    hd = D // nhead
    scale = 1.0 / float(np.sqrt(hd))
    m_all = Bt * T * N                   # rows for proj / K / V matmuls
    m_last = Bt * N                      # rows for the last-timestep epilogue

    # ---- input projection over all timesteps (K/V need every t): one flat MXU matmul ----
    x2d = x_ref[...].astype(f32).reshape(m_all, Fdim)
    h2d = jnp.dot(x2d, wp_ref[...], preferred_element_type=f32) + bp_ref[...]

    # Last-timestep hidden state — the only timestep the module's output consumes.
    if Bt == 1:
        h_last = h2d[(T - 1) * N:, :]                      # contiguous tail slab, no reshape
    else:
        h_last = h2d.reshape(Bt, T, N, D)[:, T - 1].reshape(m_last, D)

    # ---- multi-head self-attention: K/V over all T, Q only for t = T-1 ----
    k2d = jnp.dot(h2d, wk_ref[...], preferred_element_type=f32) + bk_ref[...]
    v2d = jnp.dot(h2d, wv_ref[...], preferred_element_type=f32) + bv_ref[...]
    q = (jnp.dot(h_last, wq_ref[...], preferred_element_type=f32)
         + bq_ref[...]) * scale                            # (m_last, D)

    seg = seg_ref[...]                                     # (D, nhead) constant
    seg_t = segt_ref[...]                                  # (nhead, D) constant

    k4 = k2d.reshape(Bt, T, N, D)
    v4 = v2d.reshape(Bt, T, N, D)
    q4 = q.reshape(Bt, 1, N, D)

    # scores s[b, t, n, h] = sum_{d in head h} q[b, n, d] * k[b, t, n, d]
    prod = k4 * q4
    s = jnp.dot(prod.reshape(m_all, D), seg,
                preferred_element_type=f32).reshape(Bt, T, N, nhead)

    # softmax over the key/time axis (axis 1); EUP reciprocal for the denominator.
    # NOTE: lane dim here is nhead=4 (lane-sparse) — cheap at these sizes.
    s = s - jnp.max(s, axis=1, keepdims=True)
    p = jnp.exp(s)
    p = p * pl.reciprocal(jnp.sum(p, axis=1, keepdims=True), approx=True)

    # broadcast head weights back onto their lane segments (== concat of heads),
    # then weighted sum of values over T.
    pb = jnp.dot(p.reshape(m_all, nhead), seg_t,
                 preferred_element_type=f32).reshape(Bt, T, N, D)
    attn = jnp.sum(pb * v4, axis=1).reshape(m_last, D)     # (m_last, D)
    attn = jnp.dot(attn, wo_ref[...], preferred_element_type=f32) + bo_ref[...]

    # ---- post-norm residual 1 (last timestep only) ----
    h1 = _layer_norm(h_last + attn, g1_ref[...], be1_ref[...])

    # ---- feed-forward (ReLU): bf16 weights + activations, f32 accumulation ----
    ff = jnp.dot(h1.astype(w1_ref.dtype), w1_ref[...],
                 preferred_element_type=f32) + b1_ref[...]
    ff = jnp.maximum(ff, 0.0)
    ff = jnp.dot(ff.astype(w2_ref.dtype), w2_ref[...],
                 preferred_element_type=f32) + b2_ref[...]

    # ---- post-norm residual 2 ----
    out = _layer_norm(h1 + ff, g2_ref[...], be2_ref[...])
    out_ref[...] = out.reshape(Bt, N, D).astype(out_ref.dtype)


# ----------------------------- wrapper ---------------------------------------


def _default_batch_block(B):
    """Single-TC chips: fuse the whole batch (grid=(1,)). Dual-TC v7x: one batch
    element per TensorCore (grid=(B,), 'parallel')."""
    try:
        kind = jax.devices()[0].device_kind.lower()
    except Exception:
        kind = ""
    if "v7" in kind:
        return 1
    return B


def temporal_transformer(x_seq, params, *, nhead, batch_block=None):
    """x_seq: (B, T, N, F) float32 -> (B, N, D)."""
    B, T, N, F = x_seq.shape
    D = params["wp"].shape[0]
    hd = D // nhead
    if batch_block is None:
        batch_block = _default_batch_block(B)
    Bt = batch_block
    assert B % Bt == 0

    # Split PyTorch's fused in_proj into Q/K/V and pre-transpose every weight to
    # (K, N) so the kernel only does plain (M,K)@(K,N) matmuls.
    win, bin_ = params["win"], params["bin"]
    wq, wk, wv = win[:D], win[D:2 * D], win[2 * D:]
    bq, bk, bv = bin_[:, :D], bin_[:, D:2 * D], bin_[:, 2 * D:]

    # Head-segment matrices hoisted out of the kernel: seg[d, h] = 1 iff feature
    # d belongs to head h (and its transpose).
    seg = (np.arange(D)[:, None] // hd == np.arange(nhead)[None, :]).astype(np.float32)
    seg_t = np.ascontiguousarray(seg.T)

    bf16 = jnp.bfloat16
    weights = [
        params["wp"].T, params["bp"],
        wq.T, bq, wk.T, bk, wv.T, bv,
        params["wo"].T, params["bo"],
        params["g1"], params["be1"],
        params["w1"].T.astype(bf16), params["b1"],     # bf16 weights, f32 bias
        params["w2"].T.astype(bf16), params["b2"],
        params["g2"], params["be2"],
        jnp.asarray(seg), jnp.asarray(seg_t),
    ]

    def _w_spec(w):
        r = w.ndim
        return pl.BlockSpec(tuple(w.shape), lambda i, _r=r: (0,) * _r)

    grid = (B // Bt,)
    kernel = functools.partial(temporal_transformer_kernel, nhead=nhead)

    # Output stays (B, N, D): with the collapsed grid the out block covers the
    # full array, so writeback is one contiguous DMA; a (B, N*D) lane-dense
    # block would need an in-kernel cross-lane relayout of the same few KiB.
    out = pl.pallas_call(
        kernel,
        out_shape=jax.ShapeDtypeStruct((B, N, D), jnp.float32),
        grid=grid,
        in_specs=[pl.BlockSpec((Bt, T, N, F), lambda i: (i, 0, 0, 0))]
                 + [_w_spec(w) for w in weights],
        out_specs=pl.BlockSpec((Bt, N, D), lambda i: (i, 0, 0)),
        compiler_params=pltpu.CompilerParams(
            dimension_semantics=("parallel",)),
    )(x_seq, *weights)

    return out


# ----------------------------- reference (plain JAX, exact f32) ---------------


def temporal_transformer_ref(x_seq, params, *, nhead):
    B, T, N, F = x_seq.shape
    D = params["wp"].shape[0]
    hd = D // nhead
    x = jnp.transpose(x_seq, (0, 2, 1, 3)).reshape(B * N, T, F)
    h = x @ params["wp"].T + params["bp"][0]
    qkv = h @ params["win"].T + params["bin"][0]
    q, k, v = qkv[..., :D], qkv[..., D:2 * D], qkv[..., 2 * D:]
    q = q * (1.0 / np.sqrt(hd))
    outs = []
    for hh in range(nhead):
        sl = slice(hh * hd, (hh + 1) * hd)
        s = jnp.einsum("btd,bsd->bts", q[..., sl], k[..., sl])
        p = jax.nn.softmax(s, axis=-1)
        outs.append(jnp.einsum("bts,bsd->btd", p, v[..., sl]))
    attn = jnp.concatenate(outs, axis=-1) @ params["wo"].T + params["bo"][0]

    def ln(z, g, b):
        m = jnp.mean(z, -1, keepdims=True)
        vv = jnp.mean((z - m) ** 2, -1, keepdims=True)
        return (z - m) * jax.lax.rsqrt(vv + 1e-5) * g + b

    h = ln(h + attn, params["g1"][0], params["be1"][0])
    ff = jnp.maximum(h @ params["w1"].T + params["b1"][0], 0.0)
    ff = ff @ params["w2"].T + params["b2"][0]
    h = ln(h + ff, params["g2"][0], params["be2"][0])
    return h[:, -1, :].reshape(B, N, D)


# ----------------------------- params ----------------------------------------


def make_params(key, in_channels, hidden_dim, dim_feedforward=2048):
    ks = jax.random.split(key, 10)
    D, F, Dff = hidden_dim, in_channels, dim_feedforward

    def u(k, shape, fan_in):
        bound = 1.0 / np.sqrt(fan_in)
        return jax.random.uniform(k, shape, jnp.float32, -bound, bound)

    return {
        "wp":  u(ks[0], (D, F), F),
        "bp":  u(ks[1], (1, D), F),
        "win": u(ks[2], (3 * D, D), D),
        "bin": u(ks[3], (1, 3 * D), D),
        "wo":  u(ks[4], (D, D), D),
        "bo":  u(ks[5], (1, D), D),
        "g1":  jnp.ones((1, D), jnp.float32),
        "be1": jnp.zeros((1, D), jnp.float32),
        "w1":  u(ks[6], (Dff, D), D),
        "b1":  u(ks[7], (1, Dff), D),
        "w2":  u(ks[8], (D, Dff), Dff),
        "b2":  u(ks[9], (1, D), Dff),
        "g2":  jnp.ones((1, D), jnp.float32),
        "be2": jnp.zeros((1, D), jnp.float32),
    }


# ----------------------------- main -------------------------------------------


if __name__ == "__main__":
    B, T, N, F = 2, 8, 16, 16          # batch, time, nodes, features
    hidden_dim, nhead = 32, 4          # d_model, heads (dim_feedforward = 2048 default)

    key = jax.random.PRNGKey(0)
    k_x, k_p = jax.random.split(key)
    x_seq = jax.random.normal(k_x, (B, T, N, F), jnp.float32)
    params = make_params(k_p, F, hidden_dim)

    out = jax.block_until_ready(temporal_transformer(x_seq, params, nhead=nhead))
    assert out.shape == (B, N, hidden_dim)

    ref = jax.block_until_ready(temporal_transformer_ref(x_seq, params, nhead=nhead))
    # Same algorithm; tolerance covers the bf16 feed-forward weights/activations
    # (f32 accumulation) and the approximate EUP reciprocal in the softmax.
    np.testing.assert_allclose(np.asarray(out), np.asarray(ref), rtol=2e-2, atol=2e-2)

    print("KERNEL_OK")
</pallas_src>

<mosaic_0001>
module attributes {stable_mosaic.version = 11 : i64} {
  func.func @temporal_transformer_kernel(%arg0: i32, %arg1: memref<2x8x16x16xf32, #tpu.memory_space<vmem>>, %arg2: memref<16x32xf32, #tpu.memory_space<vmem>>, %arg3: memref<1x32xf32, #tpu.memory_space<vmem>>, %arg4: memref<32x32xf32, #tpu.memory_space<vmem>>, %arg5: memref<1x32xf32, #tpu.memory_space<vmem>>, %arg6: memref<32x32xf32, #tpu.memory_space<vmem>>, %arg7: memref<1x32xf32, #tpu.memory_space<vmem>>, %arg8: memref<32x32xf32, #tpu.memory_space<vmem>>, %arg9: memref<1x32xf32, #tpu.memory_space<vmem>>, %arg10: memref<32x32xf32, #tpu.memory_space<vmem>>, %arg11: memref<1x32xf32, #tpu.memory_space<vmem>>, %arg12: memref<1x32xf32, #tpu.memory_space<vmem>>, %arg13: memref<1x32xf32, #tpu.memory_space<vmem>>, %arg14: memref<32x2048xbf16, #tpu.memory_space<vmem>>, %arg15: memref<1x2048xf32, #tpu.memory_space<vmem>>, %arg16: memref<2048x32xbf16, #tpu.memory_space<vmem>>, %arg17: memref<1x32xf32, #tpu.memory_space<vmem>>, %arg18: memref<1x32xf32, #tpu.memory_space<vmem>>, %arg19: memref<1x32xf32, #tpu.memory_space<vmem>>, %arg20: memref<32x4xf32, #tpu.memory_space<vmem>>, %arg21: memref<4x32xf32, #tpu.memory_space<vmem>>, %arg22: memref<2x16x32xf32, #tpu.memory_space<vmem>>) attributes {dimension_semantics = [#tpu.dimension_semantics<parallel>], iteration_bounds = array<i64: 1>, scalar_prefetch = 0 : i64, scratch_operands = 0 : i64, tpu.core_type = #tpu.core_type<tc>, window_params = [{transform_indices = @transform_0, window_bounds = array<i64: 2, 8, 16, 16>}, {pipeline_mode = #tpu.pipeline_mode<synchronous>, transform_indices = @transform_1, window_bounds = array<i64: 16, 32>}, {pipeline_mode = #tpu.pipeline_mode<synchronous>, transform_indices = @transform_2, window_bounds = array<i64: 1, 32>}, {pipeline_mode = #tpu.pipeline_mode<synchronous>, transform_indices = @transform_3, window_bounds = array<i64: 32, 32>}, {pipeline_mode = #tpu.pipeline_mode<synchronous>, transform_indices = @transform_4, window_bounds = array<i64: 1, 32>}, {pipeline_mode = #tpu.pipeline_mode<synchronous>, transform_indices = @transform_5, window_bounds = array<i64: 32, 32>}, {pipeline_mode = #tpu.pipeline_mode<synchronous>, transform_indices = @transform_6, window_bounds = array<i64: 1, 32>}, {pipeline_mode = #tpu.pipeline_mode<synchronous>, transform_indices = @transform_7, window_bounds = array<i64: 32, 32>}, {pipeline_mode = #tpu.pipeline_mode<synchronous>, transform_indices = @transform_8, window_bounds = array<i64: 1, 32>}, {pipeline_mode = #tpu.pipeline_mode<synchronous>, transform_indices = @transform_9, window_bounds = array<i64: 32, 32>}, {pipeline_mode = #tpu.pipeline_mode<synchronous>, transform_indices = @transform_10, window_bounds = array<i64: 1, 32>}, {pipeline_mode = #tpu.pipeline_mode<synchronous>, transform_indices = @transform_11, window_bounds = array<i64: 1, 32>}, {pipeline_mode = #tpu.pipeline_mode<synchronous>, transform_indices = @transform_12, window_bounds = array<i64: 1, 32>}, {pipeline_mode = #tpu.pipeline_mode<synchronous>, transform_indices = @transform_13, window_bounds = array<i64: 32, 2048>}, {pipeline_mode = #tpu.pipeline_mode<synchronous>, transform_indices = @transform_14, window_bounds = array<i64: 1, 2048>}, {pipeline_mode = #tpu.pipeline_mode<synchronous>, transform_indices = @transform_15, window_bounds = array<i64: 2048, 32>}, {pipeline_mode = #tpu.pipeline_mode<synchronous>, transform_indices = @transform_16, window_bounds = array<i64: 1, 32>}, {pipeline_mode = #tpu.pipeline_mode<synchronous>, transform_indices = @transform_17, window_bounds = array<i64: 1, 32>}, {pipeline_mode = #tpu.pipeline_mode<synchronous>, transform_indices = @transform_18, window_bounds = array<i64: 1, 32>}, {pipeline_mode = #tpu.pipeline_mode<synchronous>, transform_indices = @transform_19, window_bounds = array<i64: 32, 4>}, {pipeline_mode = #tpu.pipeline_mode<synchronous>, transform_indices = @transform_20, window_bounds = array<i64: 4, 32>}, {transform_indices = @transform_21, window_bounds = array<i64: 2, 16, 32>}]} {
    %c0 = arith.constant 0 : index
    %c0_0 = arith.constant 0 : index
    %c0_1 = arith.constant 0 : index
    %c0_2 = arith.constant 0 : index
    %0 = vector.load %arg1[%c0, %c0_0, %c0_1, %c0_2] : memref<2x8x16x16xf32, #tpu.memory_space<vmem>>, vector<2x8x16x16xf32>
    %1 = vector.shape_cast %0 : vector<2x8x16x16xf32> to vector<256x16xf32>
    %c0_3 = arith.constant 0 : index
    %c0_4 = arith.constant 0 : index
    %2 = vector.load %arg2[%c0_3, %c0_4] : memref<16x32xf32, #tpu.memory_space<vmem>>, vector<16x32xf32>
    %cst = arith.constant dense<0.000000e+00> : vector<256x32xf32>
    %3 = tpu.matmul %1, %2, %cst {dimension_numbers = #tpu.dot_dimension_numbers<[1], [0], [0], [1], [0, 0, 1, 1], [], []>} : vector<256x16xf32>, vector<16x32xf32>, vector<256x32xf32> -> vector<256x32xf32>
    %c0_5 = arith.constant 0 : index
    %c0_6 = arith.constant 0 : index
    %4 = vector.load %arg3[%c0_5, %c0_6] : memref<1x32xf32, #tpu.memory_space<vmem>>, vector<1x32xf32>
    %5 = vector.broadcast %4 : vector<1x32xf32> to vector<256x32xf32>
    %6 = arith.addf %3, %5 : vector<256x32xf32>
    %7 = vector.shape_cast %6 : vector<256x32xf32> to vector<2x8x16x32xf32>
    %8 = vector.extract_strided_slice %7 {offsets = [0, 7, 0, 0], sizes = [2, 1, 16, 32], strides = [1, 1, 1, 1]} : vector<2x8x16x32xf32> to vector<2x1x16x32xf32>
    %9 = vector.shape_cast %8 : vector<2x1x16x32xf32> to vector<2x16x32xf32>
    %10 = vector.shape_cast %9 : vector<2x16x32xf32> to vector<32x32xf32>
    %c0_7 = arith.constant 0 : index
    %c0_8 = arith.constant 0 : index
    %11 = vector.load %arg6[%c0_7, %c0_8] : memref<32x32xf32, #tpu.memory_space<vmem>>, vector<32x32xf32>
    %cst_9 = arith.constant dense<0.000000e+00> : vector<256x32xf32>
    %12 = tpu.matmul %6, %11, %cst_9 {dimension_numbers = #tpu.dot_dimension_numbers<[1], [0], [0], [1], [0, 0, 1, 1], [], []>} : vector<256x32xf32>, vector<32x32xf32>, vector<256x32xf32> -> vector<256x32xf32>
    %c0_10 = arith.constant 0 : index
    %c0_11 = arith.constant 0 : index
    %13 = vector.load %arg7[%c0_10, %c0_11] : memref<1x32xf32, #tpu.memory_space<vmem>>, vector<1x32xf32>
    %14 = vector.broadcast %13 : vector<1x32xf32> to vector<256x32xf32>
    %15 = arith.addf %12, %14 : vector<256x32xf32>
    %c0_12 = arith.constant 0 : index
    %c0_13 = arith.constant 0 : index
    %16 = vector.load %arg8[%c0_12, %c0_13] : memref<32x32xf32, #tpu.memory_space<vmem>>, vector<32x32xf32>
    %cst_14 = arith.constant dense<0.000000e+00> : vector<256x32xf32>
    %17 = tpu.matmul %6, %16, %cst_14 {dimension_numbers = #tpu.dot_dimension_numbers<[1], [0], [0], [1], [0, 0, 1, 1], [], []>} : vector<256x32xf32>, vector<32x32xf32>, vector<256x32xf32> -> vector<256x32xf32>
    %c0_15 = arith.constant 0 : index
    %c0_16 = arith.constant 0 : index
    %18 = vector.load %arg9[%c0_15, %c0_16] : memref<1x32xf32, #tpu.memory_space<vmem>>, vector<1x32xf32>
    %19 = vector.broadcast %18 : vector<1x32xf32> to vector<256x32xf32>
    %20 = arith.addf %17, %19 : vector<256x32xf32>
    %c0_17 = arith.constant 0 : index
    %c0_18 = arith.constant 0 : index
    %21 = vector.load %arg4[%c0_17, %c0_18] : memref<32x32xf32, #tpu.memory_space<vmem>>, vector<32x32xf32>
    %cst_19 = arith.constant dense<0.000000e+00> : vector<32x32xf32>
    %22 = tpu.matmul %10, %21, %cst_19 {dimension_numbers = #tpu.dot_dimension_numbers<[1], [0], [0], [1], [0, 0, 1, 1], [], []>} : vector<32x32xf32>, vector<32x32xf32>, vector<32x32xf32> -> vector<32x32xf32>
    %c0_20 = arith.constant 0 : index
    %c0_21 = arith.constant 0 : index
    %23 = vector.load %arg5[%c0_20, %c0_21] : memref<1x32xf32, #tpu.memory_space<vmem>>, vector<1x32xf32>
    %24 = vector.broadcast %23 : vector<1x32xf32> to vector<32x32xf32>
    %25 = arith.addf %22, %24 : vector<32x32xf32>
    %cst_22 = arith.constant 0.353553385 : f32
    %26 = vector.broadcast %cst_22 : f32 to vector<32x32xf32>
    %27 = arith.mulf %25, %26 : vector<32x32xf32>
    %c0_23 = arith.constant 0 : index
    %c0_24 = arith.constant 0 : index
    %28 = vector.load %arg20[%c0_23, %c0_24] : memref<32x4xf32, #tpu.memory_space<vmem>>, vector<32x4xf32>
    %c0_25 = arith.constant 0 : index
    %c0_26 = arith.constant 0 : index
    %29 = vector.load %arg21[%c0_25, %c0_26] : memref<4x32xf32, #tpu.memory_space<vmem>>, vector<4x32xf32>
    %30 = vector.shape_cast %15 : vector<256x32xf32> to vector<2x8x16x32xf32>
    %31 = vector.shape_cast %20 : vector<256x32xf32> to vector<2x8x16x32xf32>
    %32 = vector.shape_cast %27 : vector<32x32xf32> to vector<2x1x16x32xf32>
    %33 = vector.broadcast %32 : vector<2x1x16x32xf32> to vector<2x8x16x32xf32>
    %34 = arith.mulf %30, %33 : vector<2x8x16x32xf32>
    %35 = vector.shape_cast %34 : vector<2x8x16x32xf32> to vector<256x32xf32>
    %cst_27 = arith.constant dense<0.000000e+00> : vector<256x4xf32>
    %36 = tpu.matmul %35, %28, %cst_27 {dimension_numbers = #tpu.dot_dimension_numbers<[1], [0], [0], [1], [0, 0, 1, 1], [], []>} : vector<256x32xf32>, vector<32x4xf32>, vector<256x4xf32> -> vector<256x4xf32>
    %37 = vector.shape_cast %36 : vector<256x4xf32> to vector<2x8x16x4xf32>
    %cst_28 = arith.constant dense<0xFF800000> : vector<2x16x4xf32>
    %38 = vector.multi_reduction <maximumf>, %37, %cst_28 [1] : vector<2x8x16x4xf32> to vector<2x16x4xf32>
    %39 = vector.shape_cast %38 : vector<2x16x4xf32> to vector<2x1x16x4xf32>
    %40 = vector.broadcast %39 : vector<2x1x16x4xf32> to vector<2x8x16x4xf32>
    %41 = arith.subf %37, %40 : vector<2x8x16x4xf32>
    %42 = math.exp %41 : vector<2x8x16x4xf32>
    %cst_29 = arith.constant dense<0.000000e+00> : vector<2x16x4xf32>
    %43 = vector.multi_reduction <add>, %42, %cst_29 [1] : vector<2x8x16x4xf32> to vector<2x16x4xf32>
    %44 = vector.shape_cast %43 : vector<2x16x4xf32> to vector<2x1x16x4xf32>
    %45 = tpu.reciprocal %44 {approx = true} : vector<2x1x16x4xf32> -> vector<2x1x16x4xf32>
    %46 = vector.broadcast %45 : vector<2x1x16x4xf32> to vector<2x8x16x4xf32>
    %47 = arith.mulf %42, %46 : vector<2x8x16x4xf32>
    %48 = vector.shape_cast %47 : vector<2x8x16x4xf32> to vector<256x4xf32>
    %cst_30 = arith.constant dense<0.000000e+00> : vector<256x32xf32>
    %49 = tpu.matmul %48, %29, %cst_30 {dimension_numbers = #tpu.dot_dimension_numbers<[1], [0], [0], [1], [0, 0, 1, 1], [], []>} : vector<256x4xf32>, vector<4x32xf32>, vector<256x32xf32> -> vector<256x32xf32>
    %50 = vector.shape_cast %49 : vector<256x32xf32> to vector<2x8x16x32xf32>
    %51 = arith.mulf %50, %31 : vector<2x8x16x32xf32>
    %cst_31 = arith.constant dense<0.000000e+00> : vector<2x16x32xf32>
    %52 = vector.multi_reduction <add>, %51, %cst_31 [1] : vector<2x8x16x32xf32> to vector<2x16x32xf32>
    %53 = vector.shape_cast %52 : vector<2x16x32xf32> to vector<32x32xf32>
    %c0_32 = arith.constant 0 : index
    %c0_33 = arith.constant 0 : index
    %54 = vector.load %arg10[%c0_32, %c0_33] : memref<32x32xf32, #tpu.memory_space<vmem>>, vector<32x32xf32>
    %cst_34 = arith.constant dense<0.000000e+00> : vector<32x32xf32>
    %55 = tpu.matmul %53, %54, %cst_34 {dimension_numbers = #tpu.dot_dimension_numbers<[1], [0], [0], [1], [0, 0, 1, 1], [], []>} : vector<32x32xf32>, vector<32x32xf32>, vector<32x32xf32> -> vector<32x32xf32>
    %c0_35 = arith.constant 0 : index
    %c0_36 = arith.constant 0 : index
    %56 = vector.load %arg11[%c0_35, %c0_36] : memref<1x32xf32, #tpu.memory_space<vmem>>, vector<1x32xf32>
    %57 = vector.broadcast %56 : vector<1x32xf32> to vector<32x32xf32>
    %58 = arith.addf %55, %57 : vector<32x32xf32>
    %59 = arith.addf %10, %58 : vector<32x32xf32>
    %c0_37 = arith.constant 0 : index
    %c0_38 = arith.constant 0 : index
    %60 = vector.load %arg12[%c0_37, %c0_38] : memref<1x32xf32, #tpu.memory_space<vmem>>, vector<1x32xf32>
    %c0_39 = arith.constant 0 : index
    %c0_40 = arith.constant 0 : index
    %61 = vector.load %arg13[%c0_39, %c0_40] : memref<1x32xf32, #tpu.memory_space<vmem>>, vector<1x32xf32>
    %cst_41 = arith.constant dense<0.000000e+00> : vector<32xf32>
    %62 = vector.multi_reduction <add>, %59, %cst_41 [1] : vector<32x32xf32> to vector<32xf32>
    %63 = vector.shape_cast %62 : vector<32xf32> to vector<32x1xf32>
    %cst_42 = arith.constant 3.200000e+01 : f32
    %64 = vector.broadcast %cst_42 : f32 to vector<32x1xf32>
    %65 = arith.divf %63, %64 : vector<32x1xf32>
    %66 = vector.broadcast %65 : vector<32x1xf32> to vector<32x32xf32>
    %67 = arith.subf %59, %66 : vector<32x32xf32>
    %68 = arith.mulf %67, %67 : vector<32x32xf32>
    %cst_43 = arith.constant dense<0.000000e+00> : vector<32xf32>
    %69 = vector.multi_reduction <add>, %68, %cst_43 [1] : vector<32x32xf32> to vector<32xf32>
    %70 = vector.shape_cast %69 : vector<32xf32> to vector<32x1xf32>
    %cst_44 = arith.constant 3.200000e+01 : f32
    %71 = vector.broadcast %cst_44 : f32 to vector<32x1xf32>
    %72 = arith.divf %70, %71 : vector<32x1xf32>
    %73 = vector.broadcast %65 : vector<32x1xf32> to vector<32x32xf32>
    %74 = arith.subf %59, %73 : vector<32x32xf32>
    %cst_45 = arith.constant 9.99999974E-6 : f32
    %75 = vector.broadcast %cst_45 : f32 to vector<32x1xf32>
    %76 = arith.addf %72, %75 : vector<32x1xf32>
    %77 = math.rsqrt %76 : vector<32x1xf32>
    %78 = vector.broadcast %77 : vector<32x1xf32> to vector<32x32xf32>
    %79 = arith.mulf %74, %78 : vector<32x32xf32>
    %80 = vector.broadcast %60 : vector<1x32xf32> to vector<32x32xf32>
    %81 = arith.mulf %79, %80 : vector<32x32xf32>
    %82 = vector.broadcast %61 : vector<1x32xf32> to vector<32x32xf32>
    %83 = arith.addf %81, %82 : vector<32x32xf32>
    %84 = arith.truncf %83 : vector<32x32xf32> to vector<32x32xbf16>
    %c0_46 = arith.constant 0 : index
    %c0_47 = arith.constant 0 : index
    %85 = vector.load %arg14[%c0_46, %c0_47] : memref<32x2048xbf16, #tpu.memory_space<vmem>>, vector<32x2048xbf16>
    %cst_48 = arith.constant dense<0.000000e+00> : vector<32x2048xf32>
    %86 = tpu.matmul %84, %85, %cst_48 {dimension_numbers = #tpu.dot_dimension_numbers<[1], [0], [0], [1], [0, 0, 1, 1], [], []>} : vector<32x32xbf16>, vector<32x2048xbf16>, vector<32x2048xf32> -> vector<32x2048xf32>
    %c0_49 = arith.constant 0 : index
    %c0_50 = arith.constant 0 : index
    %87 = vector.load %arg15[%c0_49, %c0_50] : memref<1x2048xf32, #tpu.memory_space<vmem>>, vector<1x2048xf32>
    %88 = vector.broadcast %87 : vector<1x2048xf32> to vector<32x2048xf32>
    %89 = arith.addf %86, %88 : vector<32x2048xf32>
    %cst_51 = arith.constant 0.000000e+00 : f32
    %90 = vector.broadcast %cst_51 : f32 to vector<32x2048xf32>
    %91 = arith.maximumf %89, %90 : vector<32x2048xf32>
    %92 = arith.truncf %91 : vector<32x2048xf32> to vector<32x2048xbf16>
    %c0_52 = arith.constant 0 : index
    %c0_53 = arith.constant 0 : index
    %93 = vector.load %arg16[%c0_52, %c0_53] : memref<2048x32xbf16, #tpu.memory_space<vmem>>, vector<2048x32xbf16>
    %cst_54 = arith.constant dense<0.000000e+00> : vector<32x32xf32>
    %94 = tpu.matmul %92, %93, %cst_54 {dimension_numbers = #tpu.dot_dimension_numbers<[1], [0], [0], [1], [0, 0, 1, 1], [], []>} : vector<32x2048xbf16>, vector<2048x32xbf16>, vector<32x32xf32> -> vector<32x32xf32>
    %c0_55 = arith.constant 0 : index
    %c0_56 = arith.constant 0 : index
    %95 = vector.load %arg17[%c0_55, %c0_56] : memref<1x32xf32, #tpu.memory_space<vmem>>, vector<1x32xf32>
    %96 = vector.broadcast %95 : vector<1x32xf32> to vector<32x32xf32>
    %97 = arith.addf %94, %96 : vector<32x32xf32>
    %98 = arith.addf %83, %97 : vector<32x32xf32>
    %c0_57 = arith.constant 0 : index
    %c0_58 = arith.constant 0 : index
    %99 = vector.load %arg18[%c0_57, %c0_58] : memref<1x32xf32, #tpu.memory_space<vmem>>, vector<1x32xf32>
    %c0_59 = arith.constant 0 : index
    %c0_60 = arith.constant 0 : index
    %100 = vector.load %arg19[%c0_59, %c0_60] : memref<1x32xf32, #tpu.memory_space<vmem>>, vector<1x32xf32>
    %cst_61 = arith.constant dense<0.000000e+00> : vector<32xf32>
    %101 = vector.multi_reduction <add>, %98, %cst_61 [1] : vector<32x32xf32> to vector<32xf32>
    %102 = vector.shape_cast %101 : vector<32xf32> to vector<32x1xf32>
    %cst_62 = arith.constant 3.200000e+01 : f32
    %103 = vector.broadcast %cst_62 : f32 to vector<32x1xf32>
    %104 = arith.divf %102, %103 : vector<32x1xf32>
    %105 = vector.broadcast %104 : vector<32x1xf32> to vector<32x32xf32>
    %106 = arith.subf %98, %105 : vector<32x32xf32>
    %107 = arith.mulf %106, %106 : vector<32x32xf32>
    %cst_63 = arith.constant dense<0.000000e+00> : vector<32xf32>
    %108 = vector.multi_reduction <add>, %107, %cst_63 [1] : vector<32x32xf32> to vector<32xf32>
    %109 = vector.shape_cast %108 : vector<32xf32> to vector<32x1xf32>
    %cst_64 = arith.constant 3.200000e+01 : f32
    %110 = vector.broadcast %cst_64 : f32 to vector<32x1xf32>
    %111 = arith.divf %109, %110 : vector<32x1xf32>
    %112 = vector.broadcast %104 : vector<32x1xf32> to vector<32x32xf32>
    %113 = arith.subf %98, %112 : vector<32x32xf32>
    %cst_65 = arith.constant 9.99999974E-6 : f32
    %114 = vector.broadcast %cst_65 : f32 to vector<32x1xf32>
    %115 = arith.addf %111, %114 : vector<32x1xf32>
    %116 = math.rsqrt %115 : vector<32x1xf32>
    %117 = vector.broadcast %116 : vector<32x1xf32> to vector<32x32xf32>
    %118 = arith.mulf %113, %117 : vector<32x32xf32>
    %119 = vector.broadcast %99 : vector<1x32xf32> to vector<32x32xf32>
    %120 = arith.mulf %118, %119 : vector<32x32xf32>
    %121 = vector.broadcast %100 : vector<1x32xf32> to vector<32x32xf32>
    %122 = arith.addf %120, %121 : vector<32x32xf32>
    %123 = vector.shape_cast %122 : vector<32x32xf32> to vector<2x16x32xf32>
    %c0_66 = arith.constant 0 : index
    %c0_67 = arith.constant 0 : index
    %c0_68 = arith.constant 0 : index
    %124 = vector.load %arg22[%c0_66, %c0_67, %c0_68] : memref<2x16x32xf32, #tpu.memory_space<vmem>>, vector<2x16x32xf32>
    tpu.vector_store %arg22[%c0_66, %c0_67, %c0_68], %123 {strides = array<i32>} : memref<2x16x32xf32, #tpu.memory_space<vmem>>, vector<2x16x32xf32>,
    return
  }
  func.func @transform_0(%arg0: i32) -> (i32, i32, i32, i32) {
    %c0_i32 = arith.constant 0 : i32
    %c0_i32_0 = arith.constant 0 : i32
    %c0_i32_1 = arith.constant 0 : i32
    %c0_i32_2 = arith.constant 0 : i32
    return %arg0, %c0_i32, %c0_i32_0, %c0_i32_1 : i32, i32, i32, i32
  }
  func.func @transform_1(%arg0: i32) -> (i32, i32) {
    %c0_i32 = arith.constant 0 : i32
    %c0_i32_0 = arith.constant 0 : i32
    %c0_i32_1 = arith.constant 0 : i32
    return %c0_i32, %c0_i32_0 : i32, i32
  }
  func.func @transform_2(%arg0: i32) -> (i32, i32) {
    %c0_i32 = arith.constant 0 : i32
    %c0_i32_0 = arith.constant 0 : i32
    %c0_i32_1 = arith.constant 0 : i32
    return %c0_i32, %c0_i32_0 : i32, i32
  }
  func.func @transform_3(%arg0: i32) -> (i32, i32) {
    %c0_i32 = arith.constant 0 : i32
    %c0_i32_0 = arith.constant 0 : i32
    %c0_i32_1 = arith.constant 0 : i32
    return %c0_i32, %c0_i32_0 : i32, i32
  }
  func.func @transform_4(%arg0: i32) -> (i32, i32) {
    %c0_i32 = arith.constant 0 : i32
    %c0_i32_0 = arith.constant 0 : i32
    %c0_i32_1 = arith.constant 0 : i32
    return %c0_i32, %c0_i32_0 : i32, i32
  }
  func.func @transform_5(%arg0: i32) -> (i32, i32) {
    %c0_i32 = arith.constant 0 : i32
    %c0_i32_0 = arith.constant 0 : i32
    %c0_i32_1 = arith.constant 0 : i32
    return %c0_i32, %c0_i32_0 : i32, i32
  }
  func.func @transform_6(%arg0: i32) -> (i32, i32) {
    %c0_i32 = arith.constant 0 : i32
    %c0_i32_0 = arith.constant 0 : i32
    %c0_i32_1 = arith.constant 0 : i32
    return %c0_i32, %c0_i32_0 : i32, i32
  }
  func.func @transform_7(%arg0: i32) -> (i32, i32) {
    %c0_i32 = arith.constant 0 : i32
    %c0_i32_0 = arith.constant 0 : i32
    %c0_i32_1 = arith.constant 0 : i32
    return %c0_i32, %c0_i32_0 : i32, i32
  }
  func.func @transform_8(%arg0: i32) -> (i32, i32) {
    %c0_i32 = arith.constant 0 : i32
    %c0_i32_0 = arith.constant 0 : i32
    %c0_i32_1 = arith.constant 0 : i32
    return %c0_i32, %c0_i32_0 : i32, i32
  }
  func.func @transform_9(%arg0: i32) -> (i32, i32) {
    %c0_i32 = arith.constant 0 : i32
    %c0_i32_0 = arith.constant 0 : i32
    %c0_i32_1 = arith.constant 0 : i32
    return %c0_i32, %c0_i32_0 : i32, i32
  }
  func.func @transform_10(%arg0: i32) -> (i32, i32) {
    %c0_i32 = arith.constant 0 : i32
    %c0_i32_0 = arith.constant 0 : i32
    %c0_i32_1 = arith.constant 0 : i32
    return %c0_i32, %c0_i32_0 : i32, i32
  }
  func.func @transform_11(%arg0: i32) -> (i32, i32) {
    %c0_i32 = arith.constant 0 : i32
    %c0_i32_0 = arith.constant 0 : i32
    %c0_i32_1 = arith.constant 0 : i32
    return %c0_i32, %c0_i32_0 : i32, i32
  }
  func.func @transform_12(%arg0: i32) -> (i32, i32) {
    %c0_i32 = arith.constant 0 : i32
    %c0_i32_0 = arith.constant 0 : i32
    %c0_i32_1 = arith.constant 0 : i32
    return %c0_i32, %c0_i32_0 : i32, i32
  }
  func.func @transform_13(%arg0: i32) -> (i32, i32) {
    %c0_i32 = arith.constant 0 : i32
    %c0_i32_0 = arith.constant 0 : i32
    %c0_i32_1 = arith.constant 0 : i32
    return %c0_i32, %c0_i32_0 : i32, i32
  }
  func.func @transform_14(%arg0: i32) -> (i32, i32) {
    %c0_i32 = arith.constant 0 : i32
    %c0_i32_0 = arith.constant 0 : i32
    %c0_i32_1 = arith.constant 0 : i32
    return %c0_i32, %c0_i32_0 : i32, i32
  }
  func.func @transform_15(%arg0: i32) -> (i32, i32) {
    %c0_i32 = arith.constant 0 : i32
    %c0_i32_0 = arith.constant 0 : i32
    %c0_i32_1 = arith.constant 0 : i32
    return %c0_i32, %c0_i32_0 : i32, i32
  }
  func.func @transform_16(%arg0: i32) -> (i32, i32) {
    %c0_i32 = arith.constant 0 : i32
    %c0_i32_0 = arith.constant 0 : i32
    %c0_i32_1 = arith.constant 0 : i32
    return %c0_i32, %c0_i32_0 : i32, i32
  }
  func.func @transform_17(%arg0: i32) -> (i32, i32) {
    %c0_i32 = arith.constant 0 : i32
    %c0_i32_0 = arith.constant 0 : i32
    %c0_i32_1 = arith.constant 0 : i32
    return %c0_i32, %c0_i32_0 : i32, i32
  }
  func.func @transform_18(%arg0: i32) -> (i32, i32) {
    %c0_i32 = arith.constant 0 : i32
    %c0_i32_0 = arith.constant 0 : i32
    %c0_i32_1 = arith.constant 0 : i32
    return %c0_i32, %c0_i32_0 : i32, i32
  }
  func.func @transform_19(%arg0: i32) -> (i32, i32) {
    %c0_i32 = arith.constant 0 : i32
    %c0_i32_0 = arith.constant 0 : i32
    %c0_i32_1 = arith.constant 0 : i32
    return %c0_i32, %c0_i32_0 : i32, i32
  }
  func.func @transform_20(%arg0: i32) -> (i32, i32) {
    %c0_i32 = arith.constant 0 : i32
    %c0_i32_0 = arith.constant 0 : i32
    %c0_i32_1 = arith.constant 0 : i32
    return %c0_i32, %c0_i32_0 : i32, i32
  }
  func.func @transform_21(%arg0: i32) -> (i32, i32, i32) {
    %c0_i32 = arith.constant 0 : i32
    %c0_i32_0 = arith.constant 0 : i32
    %c0_i32_1 = arith.constant 0 : i32
    return %arg0, %c0_i32, %c0_i32_0 : i32, i32, i32
  }
}

</mosaic_0001>

<bundles_post_ra>
// kernel: tpu_custom_call.1
= control target key start
LH: loop header
LB: loop body
LE: loop exit
PB: predicated region body
PF: predicated region fallthrough
CT: control target
= control target key end

     0   :  { %s6869_s0 = inlined_call_operand.vmem [shape: f32[2,8,16,16], index: 0, kind: input, shape index: {}]   ;;  %s6870_s1 = inlined_call_operand.vmem [shape: f32[16,32], index: 1, kind: input, shape index: {}]   ;;  %s6871_s2 = inlined_call_operand.vmem [shape: f32[1,32], index: 2, kind: input, shape index: {}]   ;;  %s6872_s3 = inlined_call_operand.vmem [shape: f32[32,32], index: 3, kind: input, shape index: {}]   ;;  %s6873_s4 = inlined_call_operand.vmem [shape: f32[1,32], index: 4, kind: input, shape index: {}]   ;;  %s6874_s5 = inlined_call_operand.vmem [shape: f32[32,32], index: 5, kind: input, shape index: {}]   ;;  %s6875_s6 = inlined_call_operand.vmem [shape: f32[1,32], index: 6, kind: input, shape index: {}]   ;;  %s6876_s7 = inlined_call_operand.vmem [shape: f32[32,32], index: 7, kind: input, shape index: {}]   ;;  %s6877_s8 = inlined_call_operand.vmem [shape: f32[1,32], index: 8, kind: input, shape index: {}]   ;;  %s6878_s9 = inlined_call_operand.vmem [shape: f32[32,32], index: 9, kind: input, shape index: {}]   ;;  %s6879_s10 = inlined_call_operand.vmem [shape: f32[1,32], index: 10, kind: input, shape index: {}]   ;;  %s6880_s11 = inlined_call_operand.vmem [shape: f32[1,32], index: 11, kind: input, shape index: {}]   ;;  %s6881_s12 = inlined_call_operand.vmem [shape: f32[1,32], index: 12, kind: input, shape index: {}]   ;;  %s6882_s13 = inlined_call_operand.vmem [shape: bf16[32,2048], index: 13, kind: input, shape index: {}]   ;;  %s6883_s14 = inlined_call_operand.vmem [shape: f32[1,2048], index: 14, kind: input, shape index: {}]   ;;  %s6884_s15 = inlined_call_operand.vmem [shape: bf16[2048,32], index: 15, kind: input, shape index: {}]   ;;  %s6885_s16 = inlined_call_operand.vmem [shape: f32[1,32], index: 16, kind: input, shape index: {}]   ;;  %s6886_s17 = inlined_call_operand.vmem [shape: f32[1,32], index: 17, kind: input, shape index: {}]   ;;  %s6887_s18 = inlined_call_operand.vmem [shape: f32[1,32], index: 18, kind: input, shape index: {}]   ;;  %s6888_s19 = inlined_call_operand.vmem [shape: f32[32,4], index: 19, kind: input, shape index: {}]   ;;  %s6889_s20 = inlined_call_operand.vmem [shape: f32[4,32], index: 20, kind: input, shape index: {}]   ;;  %s6890_s21 = inlined_call_operand.hbm [shape: f32[2,16,32], index: 21, kind: output, shape index: {}]  }
   0x1   :  { %6895 = sst [smem:[#allocation5_spill]] %s6869_s0 }
   0x2   :  { %6896 = sst [smem:[#allocation6_spill]] %s6870_s1 }
   0x3   :  { %6897 = sst [smem:[#allocation7_spill]] %s6871_s2 }
   0x4   :  { %6898 = sst [smem:[#allocation8_spill]] %s6872_s3 }
   0x5   :  { %6899 = sst [smem:[#allocation9_spill]] %s6873_s4 }
   0x6   :  { %6900 = sst [smem:[#allocation10_spill]] %s6874_s5 }
   0x7   :  { %s6901_s26 = sld [smem:[#allocation6_spill]]  ;;  %vm108_vm0 = vcmask 130048  }
   0x8   :  { %s6902_s0 = sld [smem:[#allocation5_spill]] }
   0xd   :  { %v103_v0 = vld [vmem:[%s6901_s26 + $0x8] sm:$0xff]  ;;  %v102_v1 = vld [vmem:[%s6901_s26] sm:$0xff] }
   0xe   :  { %219 = vmatpush.msra.mxu0 %v103_v0  ;;  %v70_v2 = vld [vmem:[%s6902_s0] sm:$0xff] }
  0x10   :  { %220 = vmatpush.msra.mxu0 %v102_v1 }
  0x11   :  { %3764 = vmatmul.msk.f32.vlgmr.msra.gmra.mxu0 %vm108_vm0, %v70_v2 }
  0x12   :  { %26 = vsyncpa [#allocation3], 0  ;;  %v71_v3 = vld [vmem:[%s6902_s0 + $0x8] sm:$0xff]  ;;  %v72_v4 = vld [vmem:[%s6902_s0 + $0x10] sm:$0xff]  ;;  %s6903_s27 = sld [smem:[#allocation10_spill]]  ;;  %vm326_vm1 = vcmask 261120  }
  0x13   :  { %v73_v5 = vld [vmem:[%s6902_s0 + $0x18] sm:$0xff]  ;;  %v74_v6 = vld [vmem:[%s6902_s0 + $0x20] sm:$0xff]  ;;  %v75_v7 = vld [vmem:[%s6902_s0 + $0x28] sm:$0xff]  ;;  %s6904_s29 = sld [smem:[#allocation7_spill]]  ;;  %vm1293_vm2 = vcmask 1043456   ;;  %vm944_vm3 = vcmask 31744  }
  0x14   :  { %v76_v8 = vld [vmem:[%s6902_s0 + $0x30] sm:$0xff]  ;;  %v77_v9 = vld [vmem:[%s6902_s0 + $0x38] sm:$0xff]  ;;  %v78_v10 = vld [vmem:[%s6902_s0 + $0x40] sm:$0xff]  ;;  %s6905_s25 = sld [smem:[#allocation8_spill]] }
  0x15   :  { %v79_v11 = vld [vmem:[%s6902_s0 + $0x48] sm:$0xff]  ;;  %v80_v12 = vld [vmem:[%s6902_s0 + $0x50] sm:$0xff]  ;;  %v81_v13 = vld [vmem:[%s6902_s0 + $0x58] sm:$0xff] }
  0x16   :  { %v82_v17 = vld [vmem:[%s6902_s0 + $0x60] sm:$0xff]  ;;  %v83_v19 = vld [vmem:[%s6902_s0 + $0x68] sm:$0xff]  ;;  %v84_v20 = vld [vmem:[%s6902_s0 + $0x70] sm:$0xff] }
  0x17   :  { %v85_v21 = vld [vmem:[%s6902_s0 + $0x78] sm:$0xff]  ;;  %v86_v24 = vld [vmem:[%s6902_s0 + $0x80] sm:$0xff]  ;;  %v87_v27 = vld [vmem:[%s6902_s0 + $0x88] sm:$0xff] }
  0x18   :  { %v321_v14 = vld [vmem:[%s6903_s27 + $0x18] sm:$0xff]  ;;  %v320_v15 = vld [vmem:[%s6903_s27 + $0x10] sm:$0xff]  ;;  %v319_v16 = vld [vmem:[%s6903_s27 + $0x8] sm:$0xff] }
  0x19   :  { %3765 = vmatmul.msk.f32.gmra.mxu0 %vm108_vm0, %v71_v3  ;;  %435 = vmatpush.msra.mxu1 %v321_v14  ;;  %v318_v18 = vld [vmem:[%s6903_s27] sm:$0xff]  ;;  %v88_v30 = vld [vmem:[%s6902_s0 + $0x90] sm:$0xff]  ;;  %v89_v33 = vld [vmem:[%s6902_s0 + $0x98] sm:$0xff] }
  0x1a   :  { %4765 = vmatpush.msra.mxu2 %v321_v14  ;;  %v5106_v22 = vld [vmem:[%s6904_s29] ss:$0 sm:$0xff]  ;;  %v91_v39 = vld [vmem:[%s6902_s0 + $0xa8] sm:$0xff]  ;;  %v92_v42 = vld [vmem:[%s6902_s0 + $0xb0] sm:$0xff]  ;;  %s6906_s29 = sld [smem:[#allocation9_spill]] }
  0x1b   :  { %436 = vmatpush.msra.mxu1 %v320_v15  ;;  %v90_v36 = vld [vmem:[%s6902_s0 + $0xa0] sm:$0xff]  ;;  %v93_v45 = vld [vmem:[%s6902_s0 + $0xb8] sm:$0xff]  ;;  %v95_v51 = vld [vmem:[%s6902_s0 + $0xc8] sm:$0xff] }
  0x1c   :  { %4766 = vmatpush.msra.mxu2 %v320_v15  ;;  %v94_v48 = vld [vmem:[%s6902_s0 + $0xc0] sm:$0xff]  ;;  %v660_v53 = vld [vmem:[%s6905_s25 + $0x18] sm:$0xff]  ;;  %v659_v54 = vld [vmem:[%s6905_s25 + $0x10] sm:$0xff] }
  0x1d   :  { %437 = vmatpush.msra.mxu1 %v319_v16  ;;  %677 = vmatpush.msra.mxu3 %v660_v53  ;;  %v658_v55 = vld [vmem:[%s6905_s25 + $0x8] sm:$0xff]  ;;  %v96_v57 = vld [vmem:[%s6902_s0 + $0xd0] sm:$0xff]  ;;  %v657_v59 = vld [vmem:[%s6905_s25] sm:$0xff] }
  0x1e   :  { %4767 = vmatpush.msra.mxu2 %v319_v16  ;;  %v97_v61 = vld [vmem:[%s6902_s0 + $0xd8] sm:$0xff]  ;;  %v98_v0 = vld [vmem:[%s6902_s0 + $0xe0] sm:$0xff]  ;;  %v99_v3 = vld [vmem:[%s6902_s0 + $0xe8] sm:$0xff] }
  0x1f   :  { %438 = vmatpush.msra.mxu1 %v318_v18  ;;  %678 = vmatpush.msra.mxu3 %v659_v54  ;;  %v698_v53 = vld [vmem:[%s6888_s19] sm:$0xff]  ;;  %v539_v54 = vld [vmem:[%s6876_s7 + $0x18] sm:$0xff] }
  0x20   :  { %4768 = vmatpush.msra.mxu2 %v318_v18 }
  0x21   :  { %3766 = vmatmul.msk.f32.gmra.mxu0 %vm108_vm0, %v72_v4  ;;  %679 = vmatpush.msra.mxu3 %v658_v55  ;;  %v538_v55 = vld [vmem:[%s6876_s7 + $0x10] sm:$0xff] }
  0x22   :  { %556 = vmatpush.msrb.mxu2 %v539_v54 }
  0x23   :  { %680 = vmatpush.msra.mxu3 %v657_v59 }
  0x24   :  { %557 = vmatpush.msrb.mxu2 %v538_v55 }
  0x29   :  { %3767 = vmatmul.msk.f32.gmra.mxu0 %vm108_vm0, %v73_v5 }
  0x31   :  { %3768 = vmatmul.msk.f32.gmra.mxu0 %vm108_vm0, %v74_v6  ;;  %v100_v6 = vld [vmem:[%s6902_s0 + $0xf0] sm:$0xff] }
  0x39   :  { %3769 = vmatmul.msk.f32.gmra.mxu0 %vm108_vm0, %v75_v7 }
  0x41   :  { %3770 = vmatmul.msk.f32.gmra.mxu0 %vm108_vm0, %v76_v8 }
  0x49   :  { %3771 = vmatmul.msk.f32.gmra.mxu0 %vm108_vm0, %v77_v9  ;;  %v101_v9 = vld [vmem:[%s6902_s0 + $0xf8] sm:$0xff]  ;;  %s4909_s0 = smov 128  }
  0x51   :  { %3772 = vmatmul.msk.f32.gmra.mxu0 %vm108_vm0, %v78_v10 }
  0x59   :  { %3773 = vmatmul.msk.f32.gmra.mxu0 %vm108_vm0, %v79_v11 }
  0x61   :  { %3774 = vmatmul.msk.f32.gmra.mxu0 %vm108_vm0, %v80_v12 }
  0x69   :  { %3775 = vmatmul.msk.f32.gmra.mxu0 %vm108_vm0, %v81_v13 }
  0x71   :  { %3776 = vmatmul.msk.f32.gmra.mxu0 %vm108_vm0, %v82_v17 }
  0x79   :  { %3777 = vmatmul.msk.f32.gmra.mxu0 %vm108_vm0, %v83_v19 }
  0x81   :  { %3778 = vmatmul.msk.f32.gmra.mxu0 %vm108_vm0, %v84_v20 }
  0x89   :  { %3779 = vmatmul.msk.f32.gmra.mxu0 %vm108_vm0, %v85_v21 }
  0x8e   :  { %v222_v23 = vpop.f32.mrf.mxu0 }
  0x8f   :  { %v5112_v25 = vadd.f32 %v5106_v22, %v222_v23 }
  0x91   :  { %3780 = vmatmul.msk.f32.gmra.mxu0 %vm108_vm0, %v86_v24  ;;  %3796 = vmatmul.msk.f32.vlgmr.msra.gmra.mxu1 %vm326_vm1, %v5112_v25 }
  0x96   :  { %v225_v26 = vpop.f32.mrf.mxu0 }
  0x97   :  { %v5121_v28 = vadd.f32 %v5106_v22, %v225_v26 }
  0x99   :  { %3781 = vmatmul.msk.f32.gmra.mxu0 %vm108_vm0, %v87_v27  ;;  %3797 = vmatmul.msk.f32.gmra.mxu1 %vm326_vm1, %v5121_v28 }
  0x9e   :  { %v228_v29 = vpop.f32.mrf.mxu0 }
  0x9f   :  { %v5130_v31 = vadd.f32 %v5106_v22, %v228_v29 }
  0xa1   :  { %3782 = vmatmul.msk.f32.gmra.mxu0 %vm108_vm0, %v88_v30  ;;  %3798 = vmatmul.msk.f32.gmra.mxu1 %vm326_vm1, %v5130_v31 }
  0xa6   :  { %v231_v32 = vpop.f32.mrf.mxu0 }
  0xa7   :  { %v5139_v34 = vadd.f32 %v5106_v22, %v231_v32 }
  0xa9   :  { %3783 = vmatmul.msk.f32.gmra.mxu0 %vm108_vm0, %v89_v33  ;;  %3799 = vmatmul.msk.f32.gmra.mxu1 %vm326_vm1, %v5139_v34 }
  0xae   :  { %v234_v35 = vpop.f32.mrf.mxu0 }
  0xaf   :  { %v5148_v37 = vadd.f32 %v5106_v22, %v234_v35 }
  0xb1   :  { %3784 = vmatmul.msk.f32.gmra.mxu0 %vm108_vm0, %v90_v36  ;;  %3800 = vmatmul.msk.f32.gmra.mxu1 %vm326_vm1, %v5148_v37  ;;  %v701_v36 = vld [vmem:[%s6888_s19 + $0x18] sm:$0xff] }
  0xb2   :  { %843 = vmatpush.msrb.mxu3 %v701_v36 }
  0xb6   :  { %v237_v38 = vpop.f32.mrf.mxu0 }
  0xb7   :  { %v5157_v40 = vadd.f32 %v5106_v22, %v237_v38 }
  0xb9   :  { %3785 = vmatmul.msk.f32.gmra.mxu0 %vm108_vm0, %v91_v39  ;;  %3801 = vmatmul.msk.f32.gmra.mxu1 %vm326_vm1, %v5157_v40 }
  0xbe   :  { %v240_v41 = vpop.f32.mrf.mxu0 }
  0xbf   :  { %v5166_v43 = vadd.f32 %v5106_v22, %v240_v41  ;;  %v700_v41 = vld [vmem:[%s6888_s19 + $0x10] sm:$0xff] }
  0xc0   :  { %844 = vmatpush.msrb.mxu3 %v700_v41 }
  0xc1   :  { %3786 = vmatmul.msk.f32.gmra.mxu0 %vm108_vm0, %v92_v42  ;;  %3802 = vmatmul.msk.f32.gmra.mxu1 %vm326_vm1, %v5166_v43 }
  0xc6   :  { %v243_v44 = vpop.f32.mrf.mxu0 }
  0xc7   :  { %v5175_v46 = vadd.f32 %v5106_v22, %v243_v44 }
  0xc9   :  { %3787 = vmatmul.msk.f32.gmra.mxu0 %vm108_vm0, %v93_v45  ;;  %3803 = vmatmul.msk.f32.gmra.mxu1 %vm326_vm1, %v5175_v46 }
  0xce   :  { %v246_v47 = vpop.f32.mrf.mxu0 }
  0xcf   :  { %v5184_v49 = vadd.f32 %v5106_v22, %v246_v47  ;;  %v699_v47 = vld [vmem:[%s6888_s19 + $0x8] sm:$0xff] }
  0xd0   :  { %845 = vmatpush.msrb.mxu3 %v699_v47 }
  0xd1   :  { %3788 = vmatmul.msk.f32.gmra.mxu0 %vm108_vm0, %v94_v48  ;;  %3804 = vmatmul.msk.f32.gmra.mxu1 %vm326_vm1, %v5184_v49 }
  0xd2   :  { %846 = vmatpush.msrb.mxu3 %v698_v53 }
  0xd6   :  { %v249_v50 = vpop.f32.mrf.mxu0 }
  0xd7   :  { %v5193_v52 = vadd.f32 %v5106_v22, %v249_v50 }
  0xd9   :  { %3789 = vmatmul.msk.f32.gmra.mxu0 %vm108_vm0, %v95_v51  ;;  %3805 = vmatmul.msk.f32.gmra.mxu1 %vm326_vm1, %v5193_v52 }
  0xde   :  { %v252_v56 = vpop.f32.mrf.mxu0 }
  0xdf   :  { %v5211_v58 = vadd.f32 %v5106_v22, %v252_v56 }
  0xe1   :  { %3790 = vmatmul.msk.f32.gmra.mxu0 %vm108_vm0, %v96_v57  ;;  %3806 = vmatmul.msk.f32.gmra.mxu1 %vm326_vm1, %v5211_v58  ;;  %v537_v57 = vld [vmem:[%s6876_s7 + $0x8] sm:$0xff] }
  0xe2   :  { %558 = vmatpush.msrb.mxu2 %v537_v57 }
  0xe6   :  { %v255_v60 = vpop.f32.mrf.mxu0 }
  0xe7   :  { %v5223_v62 = vadd.f32 %v5106_v22, %v255_v60 }
  0xe9   :  { %3791 = vmatmul.msk.f32.gmra.mxu0 %vm108_vm0, %v97_v61  ;;  %3807 = vmatmul.msk.f32.gmra.mxu1 %vm326_vm1, %v5223_v62  ;;  %v536_v61 = vld [vmem:[%s6876_s7] sm:$0xff]  ;;  %s3752_s7 = sshll.u32 %s6890_s21, 4  ;;  %s3753_s7 = int_to_ptr.hbm [resolvable:$true] %s3752_s7 }
  0xea   :  { %559 = vmatpush.msrb.mxu2 %v536_v61 }
  0xee   :  { %v258_v63 = vpop.f32.mrf.mxu0 }
  0xef   :  { %v5232_v1 = vadd.f32 %v5106_v22, %v258_v63 }
  0xf1   :  { %3792 = vmatmul.msk.f32.gmra.mxu0 %vm108_vm0, %v98_v0  ;;  %3808 = vmatmul.msk.f32.gmra.mxu1 %vm326_vm1, %v5232_v1 }
  0xf6   :  { %v261_v2 = vpop.f32.mrf.mxu0 }
  0xf7   :  { %v5241_v4 = vadd.f32 %v5106_v22, %v261_v2 }
  0xf9   :  { %3793 = vmatmul.msk.f32.gmra.mxu0 %vm108_vm0, %v99_v3  ;;  %3809 = vmatmul.msk.f32.gmra.mxu1 %vm326_vm1, %v5241_v4 }
  0xfe   :  { %v264_v5 = vpop.f32.mrf.mxu0 }
  0xff   :  { %v5250_v7 = vadd.f32 %v5106_v22, %v264_v5 }
 0x101   :  { %3794 = vmatmul.msk.f32.gmra.mxu0 %vm108_vm0, %v100_v6  ;;  %3810 = vmatmul.msk.f32.gmra.mxu1 %vm326_vm1, %v5250_v7  ;;  %v5372_v6 = vld [vmem:[%s6906_s29] ss:$0 sm:$0xff]  ;;  %s4910_s29 = smov 8  }
 0x102   :  { %3860 = vmatmul.msk.f32.vlgmr.msra.gmra.mxu3 %vm326_vm1, %v5250_v7 }
 0x106   :  { %v267_v8 = vpop.f32.mrf.mxu0 }
 0x107   :  { %v5261_v10 = vadd.f32 %v5106_v22, %v267_v8 }
 0x109   :  { %3795 = vmatmul.msk.f32.gmra.mxu0 %vm108_vm0, %v101_v9  ;;  %3811 = vmatmul.msk.f32.gmra.mxu1 %vm326_vm1, %v5261_v10 }
 0x10a   :  { %3861 = vmatmul.msk.f32.gmra.mxu3 %vm326_vm1, %v5261_v10 }
 0x10e   :  { %v270_v11 = vpop.f32.mrf.mxu0  ;;  %v440_v29 = vpop.f32.mrf.mxu1 }
 0x10f   :  { %v5269_v12 = vadd.f32 %v5106_v22, %v270_v11 }
 0x111   :  { %3812 = vmatmul.msk.f32.gmra.mxu1 %vm326_vm1, %v5269_v12 }
 0x116   :  { %v273_v13 = vpop.f32.mrf.mxu0  ;;  %v443_v35 = vpop.f32.mrf.mxu1 }
 0x117   :  { %v5274_v14 = vadd.f32 %v5106_v22, %v273_v13 }
 0x119   :  { %3813 = vmatmul.msk.f32.gmra.mxu1 %vm326_vm1, %v5274_v14 }
 0x11e   :  { %v276_v15 = vpop.f32.mrf.mxu0  ;;  %v446_v42 = vpop.f32.mrf.mxu1 }
 0x11f   :  { %v5279_v16 = vadd.f32 %v5106_v22, %v276_v15  ;;  %v5381_v15 = vld [vmem:[%s6875_s6] ss:$0 sm:$0xff] }
 0x121   :  { %3814 = vmatmul.msk.f32.gmra.mxu1 %vm326_vm1, %v5279_v16 }
 0x126   :  { %v279_v17 = vpop.f32.mrf.mxu0  ;;  %v449_v48 = vpop.f32.mrf.mxu1 }
 0x127   :  { %v5284_v18 = vadd.f32 %v5106_v22, %v279_v17  ;;  %v702_v17 = vld [vmem:[%s6889_s20] sm:$0xf] }
 0x128   :  { %3896 = vmatpush.msk.msrb.mxu0 %vm1293_vm2, %v702_v17 }
 0x129   :  { %3815 = vmatmul.msk.f32.gmra.mxu1 %vm326_vm1, %v5284_v18 }
 0x12e   :  { %v282_v19 = vpop.f32.mrf.mxu0  ;;  %v452_v59 = vpop.f32.mrf.mxu1 }
 0x12f   :  { %v5289_v20 = vadd.f32 %v5106_v22, %v282_v19 }
 0x131   :  { %3816 = vmatmul.msk.f32.gmra.mxu1 %vm326_vm1, %v5289_v20 }
 0x136   :  { %v285_v21 = vpop.f32.mrf.mxu0  ;;  %v455_v2 = vpop.f32.mrf.mxu1 }
 0x137   :  { %v5294_v23 = vadd.f32 %v5106_v22, %v285_v21  ;;  %v441_v21 = vadd.f32 %v5381_v15, %v440_v29  ;;  %v447_v29 = vadd.f32 %v5381_v15, %v446_v42  ;;  %v453_v42 = vadd.f32 %v5381_v15, %v452_v59 }
 0x139   :  { %3817 = vmatmul.msk.f32.gmra.mxu1 %vm326_vm1, %v5294_v23 }
 0x13e   :  { %v288_v24 = vpop.f32.mrf.mxu0 }
 0x13f   :  { %v5299_v26 = vadd.f32 %v5106_v22, %v288_v24 }
 0x141   :  { %3818 = vmatmul.msk.f32.gmra.mxu1 %vm326_vm1, %v5299_v26 }
 0x146   :  { %v291_v27 = vpop.f32.mrf.mxu0 }
 0x147   :  { %v5304_v30 = vadd.f32 %v5106_v22, %v291_v27 }
 0x149   :  { %3819 = vmatmul.msk.f32.gmra.mxu1 %vm326_vm1, %v5304_v30 }
 0x14e   :  { %v294_v32 = vpop.f32.mrf.mxu0 }
 0x14f   :  { %v5309_v33 = vadd.f32 %v5106_v22, %v294_v32 }
 0x151   :  { %3820 = vmatmul.msk.f32.gmra.mxu1 %vm326_vm1, %v5309_v33 }
 0x156   :  { %v297_v38 = vpop.f32.mrf.mxu0 }
 0x157   :  { %v5317_v39 = vadd.f32 %v5106_v22, %v297_v38  ;;  %v444_v38 = vadd.f32 %v5381_v15, %v443_v35 }
 0x159   :  { %3821 = vmatmul.msk.f32.gmra.mxu1 %vm326_vm1, %v5317_v39 }
 0x15e   :  { %v300_v44 = vpop.f32.mrf.mxu0 }
 0x15f   :  { %v5325_v45 = vadd.f32 %v5106_v22, %v300_v44 }
 0x161   :  { %3822 = vmatmul.msk.f32.gmra.mxu1 %vm326_vm1, %v5325_v45 }
 0x166   :  { %v303_v50 = vpop.f32.mrf.mxu0 }
 0x167   :  { %v5333_v51 = vadd.f32 %v5106_v22, %v303_v50 }
 0x169   :  { %3823 = vmatmul.msk.f32.gmra.mxu1 %vm326_vm1, %v5333_v51 }
 0x16e   :  { %v306_v56 = vpop.f32.mrf.mxu0 }
 0x16f   :  { %v5350_v60 = vadd.f32 %v5106_v22, %v306_v56 }
 0x171   :  { %3824 = vmatmul.msk.f32.gmra.mxu1 %vm326_vm1, %v5350_v60 }
 0x176   :  { %v309_v63 = vpop.f32.mrf.mxu0 }
 0x177   :  { %v5358_v0 = vadd.f32 %v5106_v22, %v309_v63 }
 0x179   :  { %3825 = vmatmul.msk.f32.gmra.mxu1 %vm326_vm1, %v5358_v0 }
 0x17e   :  { %v312_v3 = vpop.f32.mrf.mxu0 }
 0x17f   :  { %v5363_v5 = vadd.f32 %v5106_v22, %v312_v3 }
 0x181   :  { %3826 = vmatmul.msk.f32.vlgmr.msra.gmra.mxu2 %vm326_vm1, %v5363_v5  ;;  %3862 = vmatmul.msk.f32.gmra.mxu3 %vm326_vm1, %v5363_v5 }
 0x185   :  { %v682_v8 = vpop.f32.mrf.mxu3 }
 0x186   :  { %v315_v9 = vpop.f32.mrf.mxu0  ;;  %v683_v11 = vadd.f32 %v5372_v6, %v682_v8 }
 0x187   :  { %v5376_v13 = vadd.f32 %v5106_v22, %v315_v9  ;;  %v458_v22 = vpop.f32.mrf.mxu1 }
 0x188   :  { %v5390_v19 = vmul.f32 0.35355338, %v683_v11 }
 0x189   :  { %3827 = vmatmul.msk.f32.gmra.mxu2 %vm326_vm1, %v5376_v13  ;;  %3863 = vmatmul.msk.f32.gmra.mxu3 %vm326_vm1, %v5376_v13 }
 0x18a   :  { %v703_v32 = vmul.f32 %v5390_v19, %v441_v21  ;;  %v705_v47 = vmul.f32 %v5390_v19, %v447_v29  ;;  %v707_v53 = vmul.f32 %v5390_v19, %v453_v42 }
 0x18d   :  { %v685_v24 = vpop.f32.mrf.mxu3 }
 0x18e   :  { %v686_v27 = vadd.f32 %v5372_v6, %v685_v24 }
 0x18f   :  { %v461_v41 = vpop.f32.mrf.mxu1 }
 0x190   :  { %v5398_v36 = vmul.f32 0.35355338, %v686_v27 }
 0x191   :  { %3828 = vmatmul.msk.f32.vlgmr.msrb.gmra.mxu2 %vm326_vm1, %v5112_v25  ;;  %3864 = vmatmul.msk.f32.vlgmr.msrb.gmra.mxu3 %vm326_vm1, %v703_v32  ;;  %v450_v25 = vadd.f32 %v5381_v15, %v449_v48  ;;  %v456_v48 = vadd.f32 %v5381_v15, %v455_v2 }
 0x192   :  { %v704_v44 = vmul.f32 %v5398_v36, %v444_v38 }
 0x193   :  { %v706_v35 = vmul.f32 %v5398_v36, %v450_v25  ;;  %v708_v54 = vmul.f32 %v5398_v36, %v456_v48 }
 0x197   :  { %v464_v50 = vpop.f32.mrf.mxu1 }
 0x199   :  { %3829 = vmatmul.msk.f32.gmra.mxu2 %vm326_vm1, %v5121_v28  ;;  %3865 = vmatmul.msk.f32.gmra.mxu3 %vm326_vm1, %v704_v44 }
 0x19f   :  { %v467_v28 = vpop.f32.mrf.mxu1 }
 0x1a0   :  { %v468_v63 = vadd.f32 %v5381_v15, %v467_v28 }
 0x1a1   :  { %3830 = vmatmul.msk.f32.gmra.mxu2 %vm326_vm1, %v5130_v31  ;;  %3866 = vmatmul.msk.f32.gmra.mxu3 %vm326_vm1, %v705_v47 }
 0x1a2   :  { %v712_v2 = vmul.f32 %v5398_v36, %v468_v63 }
 0x1a7   :  { %v470_v31 = vpop.f32.mrf.mxu1 }
 0x1a8   :  { %v471_v3 = vadd.f32 %v5381_v15, %v470_v31 }
 0x1a9   :  { %3831 = vmatmul.msk.f32.gmra.mxu2 %vm326_vm1, %v5139_v34  ;;  %3867 = vmatmul.msk.f32.gmra.mxu3 %vm326_vm1, %v706_v35  ;;  %v459_v34 = vadd.f32 %v5381_v15, %v458_v22 }
 0x1aa   :  { %v713_v8 = vmul.f32 %v5390_v19, %v471_v3 }
 0x1ab   :  { %v709_v56 = vmul.f32 %v5390_v19, %v459_v34 }
 0x1af   :  { %v473_v55 = vpop.f32.mrf.mxu1 }
 0x1b1   :  { %3832 = vmatmul.msk.f32.gmra.mxu2 %vm326_vm1, %v5148_v37  ;;  %3868 = vmatmul.msk.f32.gmra.mxu3 %vm326_vm1, %v707_v53  ;;  %v462_v37 = vadd.f32 %v5381_v15, %v461_v41 }
 0x1b3   :  { %v710_v57 = vmul.f32 %v5398_v36, %v462_v37 }
 0x1b7   :  { %v476_v59 = vpop.f32.mrf.mxu1 }
 0x1b9   :  { %3833 = vmatmul.msk.f32.gmra.mxu2 %vm326_vm1, %v5157_v40  ;;  %3869 = vmatmul.msk.f32.gmra.mxu3 %vm326_vm1, %v708_v54  ;;  %v465_v40 = vadd.f32 %v5381_v15, %v464_v50 }
 0x1bb   :  { %v711_v61 = vmul.f32 %v5390_v19, %v465_v40 }
 0x1c1   :  { %3834 = vmatmul.msk.f32.gmra.mxu2 %vm326_vm1, %v5166_v43  ;;  %3870 = vmatmul.msk.f32.gmra.mxu3 %vm326_vm1, %v709_v56  ;;  %v479_v43 = vpop.f32.mrf.mxu1 }
 0x1c9   :  { %3835 = vmatmul.msk.f32.gmra.mxu2 %vm326_vm1, %v5175_v46  ;;  %3871 = vmatmul.msk.f32.gmra.mxu3 %vm326_vm1, %v710_v57  ;;  %v482_v46 = vpop.f32.mrf.mxu1 }
 0x1ca   :  { %v483_v24 = vadd.f32 %v5381_v15, %v482_v46 }
 0x1cc   :  { %v717_v27 = vmul.f32 %v5390_v19, %v483_v24 }
 0x1d1   :  { %3836 = vmatmul.msk.f32.gmra.mxu2 %vm326_vm1, %v5184_v49  ;;  %3872 = vmatmul.msk.f32.gmra.mxu3 %vm326_vm1, %v711_v61  ;;  %v474_v49 = vadd.f32 %v5381_v15, %v473_v55  ;;  %v485_v9 = vpop.f32.mrf.mxu1 }
 0x1d2   :  { %v486_v38 = vadd.f32 %v5381_v15, %v485_v9 }
 0x1d3   :  { %v714_v11 = vmul.f32 %v5398_v36, %v474_v49 }
 0x1d9   :  { %3837 = vmatmul.msk.f32.gmra.mxu2 %vm326_vm1, %v5193_v52  ;;  %3873 = vmatmul.msk.f32.gmra.mxu3 %vm326_vm1, %v712_v2  ;;  %v477_v52 = vadd.f32 %v5381_v15, %v476_v59  ;;  %v488_v22 = vpop.f32.mrf.mxu1 }
 0x1da   :  { %v489_v29 = vadd.f32 %v5381_v15, %v488_v22 }
 0x1db   :  { %v715_v17 = vmul.f32 %v5390_v19, %v477_v52 }
 0x1e1   :  { %3838 = vmatmul.msk.f32.gmra.mxu2 %vm326_vm1, %v5211_v58  ;;  %3874 = vmatmul.msk.f32.gmra.mxu3 %vm326_vm1, %v713_v8  ;;  %v480_v58 = vadd.f32 %v5381_v15, %v479_v43 }
 0x1e3   :  { %v716_v21 = vmul.f32 %v5398_v36, %v480_v58 }
 0x1e9   :  { %3839 = vmatmul.msk.f32.gmra.mxu2 %vm326_vm1, %v5223_v62  ;;  %3875 = vmatmul.msk.f32.gmra.mxu3 %vm326_vm1, %v714_v11  ;;  %v491_v62 = vpop.f32.mrf.mxu1 }
 0x1ea   :  { %v492_v28 = vadd.f32 %v5381_v15, %v491_v62 }
 0x1f1   :  { %3840 = vmatmul.msk.f32.gmra.mxu2 %vm326_vm1, %v5232_v1  ;;  %3876 = vmatmul.msk.f32.gmra.mxu3 %vm326_vm1, %v715_v17  ;;  %v494_v1 = vpop.f32.mrf.mxu1 }
 0x1f9   :  { %3841 = vmatmul.msk.f32.gmra.mxu2 %vm326_vm1, %v5241_v4  ;;  %3877 = vmatmul.msk.f32.gmra.mxu3 %vm326_vm1, %v716_v21  ;;  %v718_v4 = vmul.f32 %v5398_v36, %v486_v38  ;;  %v497_v47 = vpop.f32.mrf.mxu1 }
 0x1fa   :  { %v498_v34 = vadd.f32 %v5381_v15, %v497_v47 }
 0x201   :  { %3842 = vmatmul.msk.f32.gmra.mxu2 %vm326_vm1, %v5250_v7  ;;  %3878 = vmatmul.msk.f32.gmra.mxu3 %vm326_vm1, %v717_v27  ;;  %v500_v53 = vpop.f32.mrf.mxu1 }
 0x202   :  { %v501_v37 = vadd.f32 %v5381_v15, %v500_v53 }
 0x204   :  { %v688_v32 = vpop.f32.mrf.mxu3 }
 0x205   :  { %v689_v41 = vadd.f32 %v5372_v6, %v688_v32 }
 0x207   :  { %v5476_v44 = vmul.f32 0.35355338, %v689_v41 }
 0x209   :  { %3843 = vmatmul.msk.f32.gmra.mxu2 %vm326_vm1, %v5261_v10  ;;  %3879 = vmatmul.msk.f32.gmra.mxu3 %vm326_vm1, %v718_v4  ;;  %v719_v25 = vmul.f32 %v5476_v44, %v489_v29  ;;  %v503_v48 = vpop.f32.mrf.mxu1  ;;  %v723_v57 = vmul.f32 %v5476_v44, %v501_v37 }
 0x20c   :  { %v691_v19 = vpop.f32.mrf.mxu3 }
 0x20d   :  { %v692_v50 = vadd.f32 %v5372_v6, %v691_v19 }
 0x20f   :  { %v5484_v36 = vmul.f32 0.35355338, %v692_v50 }
 0x211   :  { %3844 = vmatmul.msk.f32.gmra.mxu2 %vm326_vm1, %v5269_v12  ;;  %3880 = vmatmul.msk.f32.gmra.mxu3 %vm326_vm1, %v719_v25  ;;  %v720_v42 = vmul.f32 %v5484_v36, %v492_v28  ;;  %v495_v12 = vadd.f32 %v5381_v15, %v494_v1  ;;  %v506_v55 = vpop.f32.mrf.mxu1 }
 0x213   :  { %v721_v31 = vmul.f32 %v5476_v44, %v495_v12 }
 0x214   :  { %v5486_v35 = vpop.f32.mrf.mxu3 }
 0x215   :  { %v945_v12 = vsel %vm944_vm3, %v5486_v35, -inf }
 0x219   :  { %3845 = vmatmul.msk.f32.gmra.mxu2 %vm326_vm1, %v5274_v14  ;;  %3881 = vmatmul.msk.f32.gmra.mxu3 %vm326_vm1, %v720_v42  ;;  %v722_v14 = vmul.f32 %v5484_v36, %v498_v34  ;;  %v509_v40 = vpop.f32.mrf.mxu1 }
 0x21c   :  { %v5493_v6 = vpop.f32.mrf.mxu3 }
 0x221   :  { %3846 = vmatmul.msk.f32.gmra.mxu2 %vm326_vm1, %v5279_v16  ;;  %3882 = vmatmul.msk.f32.gmra.mxu3 %vm326_vm1, %v721_v31  ;;  %v5510_v16 = vpop.f32.mrf.mxu2  ;;  %v512_v46 = vpop.f32.mrf.mxu1 }
 0x224   :  { %v5500_v54 = vpop.f32.mrf.mxu3 }
 0x225   :  { %v946_v42 = vsel %vm944_vm3, %v5500_v54, -inf }
 0x226   :  { %v947_v31 = vmax.f32 %v945_v12, %v946_v42 }
 0x229   :  { %3847 = vmatmul.msk.f32.gmra.mxu2 %vm326_vm1, %v5284_v18  ;;  %3883 = vmatmul.msk.f32.gmra.mxu3 %vm326_vm1, %v722_v14  ;;  %v504_v18 = vadd.f32 %v5381_v15, %v503_v48  ;;  %v5520_v43 = vpop.f32.mrf.mxu2  ;;  %v515_v9 = vpop.f32.mrf.mxu1 }
 0x22b   :  { %v724_v61 = vmul.f32 %v5484_v36, %v504_v18 }
 0x22c   :  { %v5507_v56 = vpop.f32.mrf.mxu3 }
 0x231   :  { %3848 = vmatmul.msk.f32.gmra.mxu2 %vm326_vm1, %v5289_v20  ;;  %3884 = vmatmul.msk.f32.gmra.mxu3 %vm326_vm1, %v723_v57  ;;  %v507_v20 = vadd.f32 %v5381_v15, %v506_v55  ;;  %v5532_v3 = vpop.f32.mrf.mxu2  ;;  %v518_v22 = vpop.f32.mrf.mxu1  ;;  %v531_v55 = vadd.f32 %v5381_v15, %v5510_v16  ;;  %v961_v57 = vsel %vm944_vm3, %v5507_v56, -inf }
 0x233   :  { %v725_v2 = vmul.f32 %v5476_v44, %v507_v20  ;;  %v960_v20 = vsel %vm944_vm3, %v5493_v6, -inf }
 0x234   :  { %v5516_v59 = vpop.f32.mrf.mxu3 }
 0x239   :  { %3849 = vmatmul.msk.f32.gmra.mxu2 %vm326_vm1, %v5294_v23  ;;  %3885 = vmatmul.msk.f32.gmra.mxu3 %vm326_vm1, %v724_v61  ;;  %v510_v23 = vadd.f32 %v5381_v15, %v509_v40  ;;  %v5544_v52 = vpop.f32.mrf.mxu2  ;;  %v521_v27 = vpop.f32.mrf.mxu1  ;;  %v733_v61 = vmul.f32 %v5476_v44, %v531_v55 }
 0x23b   :  { %v726_v49 = vmul.f32 %v5484_v36, %v510_v23 }
 0x23c   :  { %v5525_v63 = vpop.f32.mrf.mxu3 }
 0x23d   :  { %v963_v16 = vsel %vm944_vm3, %v5525_v63, -inf }
 0x241   :  { %3850 = vmatmul.msk.f32.gmra.mxu2 %vm326_vm1, %v5299_v26  ;;  %3886 = vmatmul.msk.f32.gmra.mxu3 %vm326_vm1, %v725_v2  ;;  %v513_v26 = vadd.f32 %v5381_v15, %v512_v46  ;;  %v5553_v21 = vpop.f32.mrf.mxu2  ;;  %v524_v4 = vpop.f32.mrf.mxu1  ;;  %v962_v46 = vmax.f32 %v960_v20, %v961_v57 }
 0x243   :  { %v727_v17 = vmul.f32 %v5476_v44, %v513_v26 }
 0x244   :  { %v5534_v8 = vpop.f32.mrf.mxu3 }
 0x245   :  { %v950_v48 = vsel %vm944_vm3, %v5534_v8, -inf }
 0x249   :  { %3851 = vmatmul.msk.f32.gmra.mxu2 %vm326_vm1, %v5304_v30  ;;  %3887 = vmatmul.msk.f32.gmra.mxu3 %vm326_vm1, %v726_v49  ;;  %v516_v30 = vadd.f32 %v5381_v15, %v515_v9  ;;  %v5563_v32 = vpop.f32.mrf.mxu2  ;;  %v527_v50 = vpop.f32.mrf.mxu1  ;;  %v964_v9 = vmax.f32 %v962_v46, %v963_v16 }
 0x24b   :  { %v728_v62 = vmul.f32 %v5484_v36, %v516_v30  ;;  %v534_v30 = vadd.f32 %v5381_v15, %v5520_v43 }
 0x24c   :  { %v5541_v11 = vpop.f32.mrf.mxu3 }
 0x24d   :  { %v965_v49 = vsel %vm944_vm3, %v5541_v11, -inf }
 0x251   :  { %3852 = vmatmul.msk.f32.gmra.mxu2 %vm326_vm1, %v5309_v33  ;;  %3888 = vmatmul.msk.f32.gmra.mxu3 %vm326_vm1, %v727_v17  ;;  %v519_v33 = vadd.f32 %v5381_v15, %v518_v22  ;;  %v5575_v19 = vpop.f32.mrf.mxu2 }
 0x253   :  { %v729_v1 = vmul.f32 %v5476_v44, %v519_v33 }
 0x254   :  { %v5550_v58 = vpop.f32.mrf.mxu3 }
 0x255   :  { %v952_v37 = vsel %vm944_vm3, %v5550_v58, -inf }
 0x259   :  { %3853 = vmatmul.msk.f32.gmra.mxu2 %vm326_vm1, %v5317_v39  ;;  %3889 = vmatmul.msk.f32.gmra.mxu3 %vm326_vm1, %v728_v62  ;;  %v522_v39 = vadd.f32 %v5381_v15, %v521_v27  ;;  %v5587_v28 = vpop.f32.mrf.mxu2  ;;  %v966_v62 = vmax.f32 %v964_v9, %v965_v49 }
 0x25b   :  { %v730_v41 = vmul.f32 %v5484_v36, %v522_v39 }
 0x25c   :  { %v5559_v24 = vpop.f32.mrf.mxu3 }
 0x25d   :  { %v967_v26 = vsel %vm944_vm3, %v5559_v24, -inf }
 0x25e   :  { %v968_v39 = vmax.f32 %v966_v62, %v967_v26 }
 0x261   :  { %3854 = vmatmul.msk.f32.gmra.mxu2 %vm326_vm1, %v5325_v45  ;;  %3890 = vmatmul.msk.f32.gmra.mxu3 %vm326_vm1, %v729_v1  ;;  %v525_v45 = vadd.f32 %v5381_v15, %v524_v4 }
 0x263   :  { %v731_v47 = vmul.f32 %v5476_v44, %v525_v45 }
 0x264   :  { %v5568_v38 = vpop.f32.mrf.mxu3 }
 0x265   :  { %v954_v40 = vsel %vm944_vm3, %v5568_v38, -inf }
 0x269   :  { %3855 = vmatmul.msk.f32.gmra.mxu2 %vm326_vm1, %v5333_v51  ;;  %3891 = vmatmul.msk.f32.gmra.mxu3 %vm326_vm1, %v730_v41  ;;  %v528_v51 = vadd.f32 %v5381_v15, %v527_v50  ;;  %v734_v41 = vmul.f32 %v5484_v36, %v534_v30 }
 0x26b   :  { %v732_v53 = vmul.f32 %v5484_v36, %v528_v51 }
 0x26c   :  { %v5577_v29 = vpop.f32.mrf.mxu3 }
 0x26d   :  { %v969_v27 = vsel %vm944_vm3, %v5577_v29, -inf }
 0x26e   :  { %v970_v15 = vmax.f32 %v968_v39, %v969_v27 }
 0x271   :  { %3856 = vmatmul.msk.f32.gmra.mxu2 %vm326_vm1, %v5350_v60  ;;  %3892 = vmatmul.msk.f32.gmra.mxu3 %vm326_vm1, %v731_v47  ;;  %v948_v60 = vsel %vm944_vm3, %v5516_v59, -inf }
 0x272   :  { %v949_v34 = vmax.f32 %v947_v31, %v948_v60 }
 0x274   :  { %v5584_v25 = vpop.f32.mrf.mxu3  ;;  %v951_v18 = vmax.f32 %v949_v34, %v950_v48 }
 0x275   :  { %v956_v23 = vsel %vm944_vm3, %v5584_v25, -inf }
 0x276   :  { %v953_v2 = vmax.f32 %v951_v18, %v952_v37 }
 0x278   :  { %v955_v44 = vmax.f32 %v953_v2, %v954_v40 }
 0x279   :  { %3857 = vmatmul.msk.f32.gmra.mxu2 %vm326_vm1, %v5358_v0  ;;  %3893 = vmatmul.msk.f32.gmra.mxu3 %vm326_vm1, %v732_v53  ;;  %v5609_v0 = vpop.f32.mrf.mxu2 }
 0x27a   :  { %v957_v17 = vmax.f32 %v955_v44, %v956_v23 }
 0x27c   :  { %v5601_v14 = vpop.f32.mrf.mxu3 }
 0x27d   :  { %v971_v43 = vsel %vm944_vm3, %v5601_v14, -inf }
 0x27e   :  { %v972_v60 = vmax.f32 %v970_v15, %v971_v43 }
 0x281   :  { %3858 = vmatmul.msk.f32.gmra.mxu2 %vm326_vm1, %v5363_v5  ;;  %3894 = vmatmul.msk.f32.gmra.mxu3 %vm326_vm1, %v733_v61  ;;  %v5637_v51 = vpop.f32.mrf.mxu2 }
 0x284   :  { %v890_v22 = vpop.f32.mrf.mxu3 }
 0x285   :  { %v958_v33 = vsel %vm944_vm3, %v890_v22, -inf }
 0x286   :  { %v959_v1 = vmax.f32 %v957_v17, %v958_v33 }
 0x288   :  { %v1005_v4 = vsub.f32 %v5486_v35, %v959_v1  ;;  %v1007_v45 = vsub.f32 %v5500_v54, %v959_v1  ;;  %v1009_v47 = vsub.f32 %v5516_v59, %v959_v1  ;;  %v1011_v50 = vsub.f32 %v5534_v8, %v959_v1 }
 0x289   :  { %v1013_v42 = vsub.f32 %v5550_v58, %v959_v1  ;;  %v1015_v53 = vsub.f32 %v5568_v38, %v959_v1  ;;  %3859 = vmatmul.msk.f32.gmra.mxu2 %vm326_vm1, %v5376_v13  ;;  %v1017_v36 = vsub.f32 %v5584_v25, %v959_v1  ;;  %3895 = vmatmul.msk.f32.gmra.mxu3 %vm326_vm1, %v734_v41 }
 0x28a   :  { %v1037_v35 = vmul.f32 1.442695, %v1005_v4  ;;  %v1041_v54 = vmul.f32 1.442695, %v1007_v45  ;;  %v1045_v59 = vmul.f32 1.442695, %v1009_v47  ;;  %v1019_v8 = vsub.f32 %v890_v22, %v959_v1 }
 0x28b   :  { %v1049_v12 = vmul.f32 1.442695, %v1011_v50  ;;  %v1053_v31 = vmul.f32 1.442695, %v1013_v42  ;;  %v1057_v58 = vmul.f32 1.442695, %v1015_v53 }
 0x28c   :  { %4791 = vpow2.f32 %v1037_v35  ;;  %v893_v48 = vpop.f32.mrf.mxu3  ;;  %v1061_v34 = vmul.f32 1.442695, %v1017_v36  ;;  %v1065_v25 = vmul.f32 1.442695, %v1019_v8 }
 0x28d   :  { %4793 = vpow2.f32 %v1041_v54  ;;  %v973_v38 = vsel %vm944_vm3, %v893_v48, -inf }
 0x28e   :  { %4795 = vpow2.f32 %v1045_v59  ;;  %v974_v55 = vmax.f32 %v972_v60, %v973_v38 }
 0x28f   :  { %4797 = vpow2.f32 %v1049_v12 }
 0x290   :  { %4799 = vpow2.f32 %v1053_v31  ;;  %v1006_v37 = vsub.f32 %v5493_v6, %v974_v55  ;;  %v1008_v57 = vsub.f32 %v5507_v56, %v974_v55  ;;  %v1010_v18 = vsub.f32 %v5525_v63, %v974_v55 }
 0x291   :  { %4801 = vpow2.f32 %v1057_v58  ;;  %v1012_v40 = vsub.f32 %v5541_v11, %v974_v55  ;;  %v1014_v61 = vsub.f32 %v5559_v24, %v974_v55  ;;  %v1016_v16 = vsub.f32 %v5577_v29, %v974_v55 }
 0x292   :  { %v5653_v20 = vpop.eup %4791  ;;  %4803 = vpow2.f32 %v1061_v34  ;;  %v1039_v2 = vmul.f32 1.442695, %v1006_v37  ;;  %v1043_v56 = vmul.f32 1.442695, %v1008_v57  ;;  %v1047_v23 = vmul.f32 1.442695, %v1010_v18 }
 0x293   :  { %v5656_v46 = vpop.eup %4793  ;;  %4805 = vpow2.f32 %v1065_v25  ;;  %v1101_v6 = vsel %vm944_vm3, %v5653_v20, 0.0  ;;  %v1051_v24 = vmul.f32 1.442695, %v1012_v40  ;;  %v1018_v9 = vsub.f32 %v5601_v14, %v974_v55 }
 0x294   :  { %v5660_v63 = vpop.eup %4795  ;;  %v1102_v11 = vsel %vm944_vm3, %v5656_v46, 0.0  ;;  %4807 = vpow2.f32 %v1039_v2  ;;  %v5664_v49 = vpop.f32.mrf.mxu3  ;;  %v1055_v26 = vmul.f32 1.442695, %v1014_v61  ;;  %v1020_v33 = vsub.f32 %v893_v48, %v974_v55 }
 0x295   :  { %v4798_v44 = vpop.eup %4797  ;;  %v1103_v29 = vadd.f32 %v1102_v11, %v1101_v6  ;;  %4809 = vpow2.f32 %v1043_v56  ;;  %v1104_v22 = vsel %vm944_vm3, %v5660_v63, 0.0  ;;  %v1059_v27 = vmul.f32 1.442695, %v1016_v16 }
 0x296   :  { %v4800_v17 = vpop.eup %4799  ;;  %4811 = vpow2.f32 %v1047_v23  ;;  %v1106_v39 = vsel %vm944_vm3, %v4798_v44, 0.0  ;;  %v1063_v45 = vmul.f32 1.442695, %v1018_v9  ;;  %v1067_v43 = vmul.f32 1.442695, %v1020_v33 }
 0x297   :  { %v4802_v30 = vpop.eup %4801  ;;  %v1105_v62 = vadd.f32 %v1104_v22, %v1103_v29  ;;  %4813 = vpow2.f32 %v1051_v24  ;;  %v1108_v47 = vsel %vm944_vm3, %v4800_v17, 0.0 }
 0x298   :  { %v4804_v1 = vpop.eup %4803  ;;  %4815 = vpow2.f32 %v1055_v26  ;;  %v1110_v36 = vsel %vm944_vm3, %v4802_v30, 0.0 }
 0x299   :  { %v4806_v41 = vpop.eup %4805  ;;  %v1107_v4 = vadd.f32 %v1106_v39, %v1105_v62  ;;  %4817 = vpow2.f32 %v1059_v27  ;;  %v1112_v60 = vsel %vm944_vm3, %v4804_v1, 0.0 }
 0x29a   :  { %v4808_v14 = vpop.eup %4807  ;;  %4819 = vpow2.f32 %v1063_v45  ;;  %v1114_v34 = vsel %vm944_vm3, %v4806_v41, 0.0 }
 0x29b   :  { %v4810_v50 = vpop.eup %4809  ;;  %v1109_v15 = vadd.f32 %v1108_v47, %v1107_v4  ;;  %v1116_v42 = vsel %vm944_vm3, %v4808_v14, 0.0  ;;  %4821 = vpow2.f32 %v1067_v43 }
 0x29c   :  { %v4812_v53 = vpop.eup %4811  ;;  %v1117_v35 = vsel %vm944_vm3, %v4810_v50, 0.0  ;;  %v5674_v54 = vpop.f32.mrf.mxu3 }
 0x29d   :  { %v4814_v59 = vpop.eup %4813  ;;  %v1111_v8 = vadd.f32 %v1110_v36, %v1109_v15  ;;  %v1118_v12 = vadd.f32 %v1117_v35, %v1116_v42  ;;  %v1119_v31 = vsel %vm944_vm3, %v4812_v53, 0.0 }
 0x29e   :  { %v4816_v48 = vpop.eup %4815  ;;  %v1121_v55 = vsel %vm944_vm3, %v4814_v59, 0.0 }
 0x29f   :  { %v1113_v58 = vadd.f32 %v1112_v60, %v1111_v8  ;;  %v1120_v38 = vadd.f32 %v1119_v31, %v1118_v12  ;;  %v4818_v25 = vpop.eup %4817  ;;  %v1123_v18 = vsel %vm944_vm3, %v4816_v48, 0.0  ;;  %v975_v60 = vsel %vm944_vm3, %v5664_v49, -inf }
 0x2a0   :  { %v4820_v40 = vpop.eup %4819  ;;  %v1125_v16 = vsel %vm944_vm3, %v4818_v25, 0.0 }
 0x2a1   :  { %v1115_v37 = vadd.f32 %v1114_v34, %v1113_v58  ;;  %v1122_v57 = vadd.f32 %v1121_v55, %v1120_v38  ;;  %v4822_v6 = vpop.eup %4821  ;;  %v1127_v23 = vsel %vm944_vm3, %v4820_v40, 0.0 }
 0x2a2   :  { %v1129_v24 = vsel %vm944_vm3, %v4822_v6, 0.0 }
 0x2a3   :  { %4823 = vrcp.f32 %v1115_v37  ;;  %v1124_v61 = vadd.f32 %v1123_v18, %v1122_v57 }
 0x2a4   :  { %v5682_v2 = vpop.f32.mrf.mxu3 }
 0x2a5   :  { %v1126_v56 = vadd.f32 %v1125_v16, %v1124_v61  ;;  %v990_v61 = vsel %vm944_vm3, %v5674_v54, -inf }
 0x2a7   :  { %v1128_v11 = vadd.f32 %v1127_v23, %v1126_v56 }
 0x2a9   :  { %v4824_v29 = vpop.eup %4823  ;;  %v1130_v9 = vadd.f32 %v1129_v24, %v1128_v11 }
 0x2aa   :  { %v1165_v26 = vmul.f32 %v4824_v29, %v5653_v20  ;;  %v1171_v22 = vmul.f32 %v4824_v29, %v4798_v44  ;;  %v1173_v62 = vmul.f32 %v4824_v29, %v4800_v17  ;;  %v1175_v33 = vmul.f32 %v4824_v29, %v4802_v30 }
 0x2ab   :  { %4825 = vrcp.f32 %v1130_v9  ;;  %v5687_v27 = vmul.f32 %v4824_v29, %v4804_v1  ;;  %v5692_v4 = vmul.f32 %v4824_v29, %v4806_v41  ;;  %v1167_v17 = vmul.f32 %v4824_v29, %v5656_v46 }
 0x2ac   :  { %3897 = vmatmul.msk.f32.vlgmr.msrb.gmra.mxu0 %vm944_vm3, %v1165_v26  ;;  %v5690_v39 = vpop.f32.mrf.mxu3 }
 0x2ad   :  { %v991_v57 = vsel %vm944_vm3, %v5690_v39, -inf }
 0x2ae   :  { %v992_v56 = vmax.f32 %v990_v61, %v991_v57 }
 0x2b1   :  { %v4826_v45 = vpop.eup %4825 }
 0x2b2   :  { %v1166_v47 = vmul.f32 %v4826_v45, %v4808_v14  ;;  %v1172_v15 = vmul.f32 %v4826_v45, %v4814_v59  ;;  %v1174_v43 = vmul.f32 %v4826_v45, %v4816_v48  ;;  %v1176_v42 = vmul.f32 %v4826_v45, %v4818_v25 }
 0x2b3   :  { %v5694_v36 = vmul.f32 %v4826_v45, %v4820_v40  ;;  %v5696_v20 = vmul.f32 %v4826_v45, %v4822_v6  ;;  %v1168_v1 = vmul.f32 %v4826_v45, %v4810_v50  ;;  %v1169_v14 = vmul.f32 %v4824_v29, %v5660_v63 }
 0x2b4   :  { %3898 = vmatmul.msk.f32.gmra.mxu0 %vm944_vm3, %v1166_v47  ;;  %v908_v44 = vpop.f32.mrf.mxu3  ;;  %v1170_v59 = vmul.f32 %v4826_v45, %v4812_v53  ;;  %v976_v53 = vsel %vm944_vm3, %v5682_v2, -inf }
 0x2b5   :  { %v978_v31 = vsel %vm944_vm3, %v908_v44, -inf  ;;  %v977_v48 = vmax.f32 %v975_v60, %v976_v53 }
 0x2b7   :  { %v979_v38 = vmax.f32 %v977_v48, %v978_v31 }
 0x2bc   :  { %3899 = vmatmul.msk.f32.gmra.mxu0 %vm944_vm3, %v1167_v17  ;;  %v5701_v30 = vpop.f32.mrf.mxu3 }
 0x2bd   :  { %v993_v16 = vsel %vm944_vm3, %v5701_v30, -inf }
 0x2be   :  { %v994_v29 = vmax.f32 %v992_v56, %v993_v16 }
 0x2c4   :  { %3900 = vmatmul.msk.f32.gmra.mxu0 %vm944_vm3, %v1168_v1  ;;  %v914_v41 = vpop.f32.mrf.mxu3 }
 0x2c5   :  { %v980_v58 = vsel %vm944_vm3, %v914_v41, -inf }
 0x2c6   :  { %v981_v25 = vmax.f32 %v979_v38, %v980_v58 }
 0x2cc   :  { %3901 = vmatmul.msk.f32.gmra.mxu0 %vm944_vm3, %v1169_v14  ;;  %v5706_v35 = vpop.f32.mrf.mxu3 }
 0x2cd   :  { %v995_v23 = vsel %vm944_vm3, %v5706_v35, -inf }
 0x2d4   :  { %3902 = vmatmul.msk.f32.gmra.mxu0 %vm944_vm3, %v1170_v59  ;;  %v920_v8 = vpop.f32.mrf.mxu3 }
 0x2d5   :  { %v982_v55 = vsel %vm944_vm3, %v920_v8, -inf }
 0x2d6   :  { %v983_v18 = vmax.f32 %v981_v25, %v982_v55 }
 0x2dc   :  { %3903 = vmatmul.msk.f32.gmra.mxu0 %vm944_vm3, %v1171_v22  ;;  %v5710_v46 = vpop.f32.mrf.mxu3 }
 0x2dd   :  { %v997_v26 = vsel %vm944_vm3, %v5710_v46, -inf }
 0x2e4   :  { %3904 = vmatmul.msk.f32.gmra.mxu0 %vm944_vm3, %v1172_v15  ;;  %v926_v50 = vpop.f32.mrf.mxu3 }
 0x2e5   :  { %v984_v37 = vsel %vm944_vm3, %v926_v50, -inf }
 0x2e6   :  { %v985_v6 = vmax.f32 %v983_v18, %v984_v37 }
 0x2ec   :  { %3905 = vmatmul.msk.f32.gmra.mxu0 %vm944_vm3, %v1173_v62  ;;  %v5714_v12 = vpop.f32.mrf.mxu3  ;;  %v996_v62 = vmax.f32 %v994_v29, %v995_v23 }
 0x2ee   :  { %v998_v17 = vmax.f32 %v996_v62, %v997_v26 }
 0x2f4   :  { %3906 = vmatmul.msk.f32.gmra.mxu0 %vm944_vm3, %v1174_v43  ;;  %v932_v63 = vpop.f32.mrf.mxu3 }
 0x2f5   :  { %v986_v40 = vsel %vm944_vm3, %v932_v63, -inf }
 0x2f6   :  { %v987_v11 = vmax.f32 %v985_v6, %v986_v40 }
 0x2fc   :  { %3907 = vmatmul.msk.f32.gmra.mxu0 %vm944_vm3, %v1175_v33  ;;  %v5724_v34 = vpop.f32.mrf.mxu3  ;;  %v999_v33 = vsel %vm944_vm3, %v5714_v12, -inf }
 0x2fd   :  { %v1000_v31 = vmax.f32 %v998_v17, %v999_v33 }
 0x304   :  { %3908 = vmatmul.msk.f32.gmra.mxu0 %vm944_vm3, %v1176_v42  ;;  %v938_v24 = vpop.f32.mrf.mxu3  ;;  %v1001_v42 = vsel %vm944_vm3, %v5724_v34, -inf }
 0x305   :  { %v988_v9 = vsel %vm944_vm3, %v938_v24, -inf }
 0x306   :  { %v989_v22 = vmax.f32 %v987_v11, %v988_v9 }
 0x308   :  { %v1021_v45 = vsub.f32 %v5664_v49, %v989_v22  ;;  %v1023_v47 = vsub.f32 %v5682_v2, %v989_v22  ;;  %v1025_v15 = vsub.f32 %v908_v44, %v989_v22  ;;  %v1027_v43 = vsub.f32 %v914_v41, %v989_v22  ;;  %v1505_v41 = vld [vmem:[%s6878_s9 + $0x18] sm:$0xff] }
 0x309   :  { %v1029_v1 = vsub.f32 %v920_v8, %v989_v22  ;;  %v1031_v14 = vsub.f32 %v926_v50, %v989_v22  ;;  %v1033_v48 = vsub.f32 %v932_v63, %v989_v22  ;;  %v1035_v38 = vsub.f32 %v938_v24, %v989_v22  ;;  %1534 = vmatpush.msrb.mxu1 %v1505_v41 }
 0x30a   :  { %v1069_v59 = vmul.f32 1.442695, %v1021_v45  ;;  %v1073_v53 = vmul.f32 1.442695, %v1023_v47  ;;  %v1077_v60 = vmul.f32 1.442695, %v1025_v15  ;;  %v1002_v49 = vmax.f32 %v1000_v31, %v1001_v42 }
 0x30b   :  { %v1081_v58 = vmul.f32 1.442695, %v1027_v43  ;;  %v1085_v2 = vmul.f32 1.442695, %v1029_v1  ;;  %v1089_v8 = vmul.f32 1.442695, %v1031_v14 }
 0x30c   :  { %4827 = vpow2.f32 %v1069_v59  ;;  %3909 = vmatmul.msk.f32.gmra.mxu0 %vm944_vm3, %v5687_v27  ;;  %v941_v44 = vpop.f32.mrf.mxu3  ;;  %v1093_v63 = vmul.f32 1.442695, %v1033_v48  ;;  %v1097_v25 = vmul.f32 1.442695, %v1035_v38 }
 0x30d   :  { %4829 = vpow2.f32 %v1073_v53  ;;  %v1003_v50 = vsel %vm944_vm3, %v941_v44, -inf }
 0x30e   :  { %4831 = vpow2.f32 %v1077_v60  ;;  %v1004_v55 = vmax.f32 %v1002_v49, %v1003_v50 }
 0x30f   :  { %4833 = vpow2.f32 %v1081_v58 }
 0x310   :  { %4835 = vpow2.f32 %v1085_v2  ;;  %v1022_v27 = vsub.f32 %v5674_v54, %v1004_v55  ;;  %v1024_v37 = vsub.f32 %v5690_v39, %v1004_v55  ;;  %v1026_v57 = vsub.f32 %v5701_v30, %v1004_v55 }
 0x311   :  { %4837 = vpow2.f32 %v1089_v8  ;;  %v1028_v40 = vsub.f32 %v5706_v35, %v1004_v55  ;;  %v1030_v6 = vsub.f32 %v5710_v46, %v1004_v55  ;;  %v1032_v39 = vsub.f32 %v5714_v12, %v1004_v55 }
 0x312   :  { %v5756_v18 = vpop.eup %4827  ;;  %4839 = vpow2.f32 %v1093_v63  ;;  %v1071_v30 = vmul.f32 1.442695, %v1022_v27  ;;  %v1075_v23 = vmul.f32 1.442695, %v1024_v37  ;;  %v1079_v24 = vmul.f32 1.442695, %v1026_v57 }
 0x313   :  { %v5759_v61 = vpop.eup %4829  ;;  %v1131_v16 = vsel %vm944_vm3, %v5756_v18, 0.0  ;;  %4841 = vpow2.f32 %v1097_v25  ;;  %v1083_v29 = vmul.f32 1.442695, %v1028_v40  ;;  %v1034_v22 = vsub.f32 %v5724_v34, %v1004_v55 }
 0x314   :  { %v5764_v56 = vpop.eup %4831  ;;  %v1132_v54 = vsel %vm944_vm3, %v5759_v61, 0.0  ;;  %3910 = vmatmul.msk.f32.gmra.mxu0 %vm944_vm3, %v5694_v36  ;;  %4843 = vpow2.f32 %v1071_v30  ;;  %v1087_v12 = vmul.f32 1.442695, %v1030_v6  ;;  %v1036_v47 = vsub.f32 %v941_v44, %v1004_v55 }
 0x315   :  { %v5771_v35 = vpop.eup %4833  ;;  %v1133_v11 = vadd.f32 %v1132_v54, %v1131_v16  ;;  %v1134_v46 = vsel %vm944_vm3, %v5764_v56, 0.0  ;;  %4845 = vpow2.f32 %v1075_v23  ;;  %v1091_v15 = vmul.f32 1.442695, %v1032_v39 }
 0x316   :  { %v4836_v9 = vpop.eup %4835  ;;  %v1136_v36 = vsel %vm944_vm3, %v5771_v35, 0.0  ;;  %4847 = vpow2.f32 %v1079_v24  ;;  %v1095_v1 = vmul.f32 1.442695, %v1034_v22  ;;  %v1099_v60 = vmul.f32 1.442695, %v1036_v47 }
 0x317   :  { %v1135_v26 = vadd.f32 %v1134_v46, %v1133_v11  ;;  %v4838_v62 = vpop.eup %4837  ;;  %4849 = vpow2.f32 %v1083_v29  ;;  %v1138_v43 = vsel %vm944_vm3, %v4836_v9, 0.0  ;;  %v5817_v47 = vld [vmem:[%s6877_s8] ss:$0 sm:$0xff] }
 0x318   :  { %v4840_v33 = vpop.eup %4839  ;;  %4851 = vpow2.f32 %v1087_v12  ;;  %v1140_v34 = vsel %vm944_vm3, %v4838_v62, 0.0 }
 0x319   :  { %v1137_v45 = vadd.f32 %v1136_v36, %v1135_v26  ;;  %v4842_v17 = vpop.eup %4841  ;;  %4853 = vpow2.f32 %v1091_v15  ;;  %v1142_v58 = vsel %vm944_vm3, %v4840_v33, 0.0 }
 0x31a   :  { %v4844_v14 = vpop.eup %4843  ;;  %4855 = vpow2.f32 %v1095_v1  ;;  %v5832_v1 = vpop.f32.mrf.mxu2 }
 0x31b   :  { %v1139_v42 = vadd.f32 %v1138_v43, %v1137_v45  ;;  %v5782_v59 = vpop.eup %4845  ;;  %v1146_v31 = vsel %vm944_vm3, %v4844_v14, 0.0  ;;  %4857 = vpow2.f32 %v1099_v60 }
 0x31c   :  { %3911 = vmatmul.msk.f32.gmra.mxu0 %vm944_vm3, %v5692_v4  ;;  %v5785_v48 = vpop.eup %4847  ;;  %v1147_v38 = vsel %vm944_vm3, %v5782_v59, 0.0  ;;  %v1144_v4 = vsel %vm944_vm3, %v4842_v17, 0.0 }
 0x31d   :  { %v1141_v53 = vadd.f32 %v1140_v34, %v1139_v42  ;;  %v5790_v49 = vpop.eup %4849  ;;  %v1148_v44 = vadd.f32 %v1147_v38, %v1146_v31  ;;  %v1149_v41 = vsel %vm944_vm3, %v5785_v48, 0.0  ;;  %v565_v38 = vadd.f32 %v5817_v47, %v5544_v52 }
 0x31e   :  { %v4852_v8 = vpop.eup %4851  ;;  %v1151_v55 = vsel %vm944_vm3, %v5790_v49, 0.0  ;;  %v574_v52 = vadd.f32 %v5817_v47, %v5575_v19 }
 0x31f   :  { %v1143_v2 = vadd.f32 %v1142_v58, %v1141_v53  ;;  %v1150_v63 = vadd.f32 %v1149_v41, %v1148_v44  ;;  %v4854_v25 = vpop.eup %4853  ;;  %v1153_v37 = vsel %vm944_vm3, %v4852_v8, 0.0 }
 0x320   :  { %v4856_v57 = vpop.eup %4855  ;;  %v1155_v16 = vsel %vm944_vm3, %v4854_v25, 0.0 }
 0x321   :  { %v1145_v50 = vadd.f32 %v1144_v4, %v1143_v2  ;;  %v1152_v27 = vadd.f32 %v1151_v55, %v1150_v63  ;;  %v4858_v6 = vpop.eup %4857  ;;  %v1157_v39 = vsel %vm944_vm3, %v4856_v57, 0.0 }
 0x322   :  { %v1159_v24 = vsel %vm944_vm3, %v4858_v6, 0.0  ;;  %v5845_v41 = vpop.f32.mrf.mxu2 }
 0x323   :  { %4859 = vrcp.f32 %v1145_v50  ;;  %v1154_v40 = vadd.f32 %v1153_v37, %v1152_v27 }
 0x324   :  { %3912 = vmatmul.msk.f32.gmra.mxu0 %vm944_vm3, %v5696_v20 }
 0x325   :  { %v1156_v54 = vadd.f32 %v1155_v16, %v1154_v40  ;;  %v577_v40 = vadd.f32 %v5817_v47, %v5587_v28  ;;  %v583_v28 = vadd.f32 %v5817_v47, %v5637_v51  ;;  %v1503_v51 = vld [vmem:[%s6878_s9 + $0x8] sm:$0xff] }
 0x327   :  { %v1158_v23 = vadd.f32 %v1157_v39, %v1156_v54 }
 0x329   :  { %v4860_v30 = vpop.eup %4859  ;;  %v1314_v11 = vpop.f32.mrf.mxu0  ;;  %v1160_v46 = vadd.f32 %v1159_v24, %v1158_v23 }
 0x32a   :  { %v1181_v29 = vmul.f32 %v4860_v30, %v5756_v18  ;;  %v1187_v26 = vmul.f32 %v4860_v30, %v5771_v35  ;;  %v5805_v22 = vmul.f32 %v4860_v30, %v4836_v9  ;;  %v5807_v20 = vmul.f32 %v4860_v30, %v4838_v62  ;;  %v591_v37 = vpop.f32.mrf.mxu2 }
 0x32b   :  { %v5810_v12 = vmul.f32 %v4860_v30, %v4840_v33  ;;  %v5812_v36 = vmul.f32 %v4860_v30, %v4842_v17  ;;  %4861 = vrcp.f32 %v1160_v46  ;;  %v562_v33 = vadd.f32 %v5817_v47, %v5532_v3  ;;  %v1504_v3 = vld [vmem:[%s6878_s9 + $0x10] sm:$0xff] }
 0x32c   :  { %3913 = vmatmul.msk.f32.gmra.mxu0 %vm944_vm3, %v1181_v29  ;;  %v568_v17 = vadd.f32 %v5817_v47, %v5553_v21  ;;  %v1183_v31 = vmul.f32 %v4860_v30, %v5759_v61  ;;  %1535 = vmatpush.msrb.mxu1 %v1504_v3  ;;  %v571_v21 = vadd.f32 %v5817_v47, %v5563_v32 }
 0x32d   :  { %v1410_v42 = vmul.f32 %v1314_v11, %v562_v33  ;;  %v1185_v27 = vmul.f32 %v4860_v30, %v5764_v56  ;;  %v580_v56 = vadd.f32 %v5817_v47, %v5609_v0 }
 0x32e   :  { %1536 = vmatpush.msrb.mxu1 %v1503_v51 }
 0x32f   :  { %v1442_v53 = vsel %vm326_vm1, %v1410_v42, 0.0 }
 0x331   :  { %v1317_v45 = vpop.f32.mrf.mxu0  ;;  %v4862_v18 = vpop.eup %4861 }
 0x332   :  { %v1182_v15 = vmul.f32 %v4862_v18, %v4844_v14  ;;  %v5819_v35 = vmul.f32 %v4862_v18, %v4852_v8  ;;  %v5821_v9 = vmul.f32 %v4862_v18, %v4854_v25  ;;  %v5823_v62 = vmul.f32 %v4862_v18, %v4856_v57  ;;  %v594_v39 = vpop.f32.mrf.mxu2 }
 0x333   :  { %v5828_v43 = vmul.f32 %v4862_v18, %v4858_v6  ;;  %v1411_v2 = vmul.f32 %v1317_v45, %v565_v38  ;;  %v1184_v50 = vmul.f32 %v4862_v18, %v5782_v59  ;;  %v1186_v54 = vmul.f32 %v4862_v18, %v5785_v48 }
 0x334   :  { %3914 = vmatmul.msk.f32.gmra.mxu0 %vm944_vm3, %v1182_v15  ;;  %v1188_v15 = vmul.f32 %v4862_v18, %v5790_v49  ;;  %v1502_v49 = vld [vmem:[%s6878_s9] sm:$0xff] }
 0x335   :  { %v1457_v61 = vsel %vm326_vm1, %v1411_v2, 0.0  ;;  %1537 = vmatpush.msrb.mxu1 %v1502_v49 }
 0x339   :  { %v1320_v14 = vpop.f32.mrf.mxu0 }
 0x33a   :  { %v1412_v34 = vmul.f32 %v1320_v14, %v568_v17  ;;  %v597_v29 = vpop.f32.mrf.mxu2 }
 0x33c   :  { %v1443_v60 = vsel %vm326_vm1, %v1412_v34, 0.0  ;;  %3915 = vmatmul.msk.f32.gmra.mxu0 %vm944_vm3, %v1183_v31 }
 0x33d   :  { %v1444_v58 = vadd.f32 %v1443_v60, %v1442_v53  ;;  %v586_v53 = vadd.f32 %v5817_v47, %v5832_v1  ;;  %v595_v1 = vadd.f32 %v5817_v47, %v594_v39 }
 0x341   :  { %v1323_v44 = vpop.f32.mrf.mxu0 }
 0x342   :  { %v1413_v4 = vmul.f32 %v1323_v44, %v571_v21  ;;  %v600_v17 = vpop.f32.mrf.mxu2 }
 0x344   :  { %v1458_v8 = vsel %vm326_vm1, %v1413_v4, 0.0  ;;  %3916 = vmatmul.msk.f32.gmra.mxu0 %vm944_vm3, %v1184_v50 }
 0x345   :  { %v1459_v63 = vadd.f32 %v1458_v8, %v1457_v61 }
 0x349   :  { %v1326_v55 = vpop.f32.mrf.mxu0 }
 0x34a   :  { %v1414_v25 = vmul.f32 %v1326_v55, %v574_v52  ;;  %v601_v52 = vadd.f32 %v5817_v47, %v600_v17 }
 0x34c   :  { %v1445_v32 = vsel %vm326_vm1, %v1414_v25, 0.0  ;;  %3917 = vmatmul.msk.f32.gmra.mxu0 %vm944_vm3, %v1185_v27 }
 0x34d   :  { %v1446_v57 = vadd.f32 %v1445_v32, %v1444_v58  ;;  %v598_v58 = vadd.f32 %v5817_v47, %v597_v29 }
 0x351   :  { %v1329_v59 = vpop.f32.mrf.mxu0 }
 0x352   :  { %v1415_v16 = vmul.f32 %v1329_v59, %v577_v40 }
 0x354   :  { %v1460_v6 = vsel %vm326_vm1, %v1415_v16, 0.0  ;;  %3918 = vmatmul.msk.f32.gmra.mxu0 %vm944_vm3, %v1186_v54 }
 0x355   :  { %v1461_v19 = vadd.f32 %v1460_v6, %v1459_v63 }
 0x359   :  { %v1332_v30 = vpop.f32.mrf.mxu0 }
 0x35a   :  { %v1416_v23 = vmul.f32 %v1332_v30, %v580_v56 }
 0x35c   :  { %v1447_v11 = vsel %vm326_vm1, %v1416_v23, 0.0  ;;  %3919 = vmatmul.msk.f32.gmra.mxu0 %vm944_vm3, %v1187_v26  ;;  %v603_v26 = vpop.f32.mrf.mxu2 }
 0x35d   :  { %v1448_v24 = vadd.f32 %v1447_v11, %v1446_v57  ;;  %v604_v4 = vadd.f32 %v5817_v47, %v603_v26 }
 0x361   :  { %v1335_v46 = vpop.f32.mrf.mxu0 }
 0x362   :  { %v1417_v48 = vmul.f32 %v1335_v46, %v583_v28 }
 0x364   :  { %v1462_v45 = vsel %vm326_vm1, %v1417_v48, 0.0  ;;  %3920 = vmatmul.msk.f32.gmra.mxu0 %vm944_vm3, %v1188_v15  ;;  %v606_v18 = vpop.f32.mrf.mxu2 }
 0x365   :  { %v1463_v33 = vadd.f32 %v1462_v45, %v1461_v19  ;;  %v607_v16 = vadd.f32 %v5817_v47, %v606_v18 }
 0x369   :  { %v1338_v0 = vpop.f32.mrf.mxu0 }
 0x36a   :  { %v1418_v60 = vmul.f32 %v1338_v0, %v586_v53 }
 0x36c   :  { %3921 = vmatmul.msk.f32.gmra.mxu0 %vm944_vm3, %v5805_v22  ;;  %v1449_v21 = vsel %vm326_vm1, %v1418_v60, 0.0 }
 0x371   :  { %v1341_v42 = vpop.f32.mrf.mxu0 }
 0x374   :  { %3922 = vmatmul.msk.f32.gmra.mxu0 %vm944_vm3, %v5819_v35  ;;  %v609_v35 = vpop.f32.mrf.mxu2 }
 0x379   :  { %v1344_v14 = vpop.f32.mrf.mxu0 }
 0x37c   :  { %3923 = vmatmul.msk.f32.gmra.mxu0 %vm944_vm3, %v5807_v20  ;;  %v592_v20 = vadd.f32 %v5817_v47, %v591_v37  ;;  %v612_v38 = vpop.f32.mrf.mxu2 }
 0x37e   :  { %v1420_v3 = vmul.f32 %v1344_v14, %v592_v20 }
 0x380   :  { %v1451_v44 = vsel %vm326_vm1, %v1420_v3, 0.0 }
 0x381   :  { %v1347_v22 = vpop.f32.mrf.mxu0 }
 0x382   :  { %v1421_v55 = vmul.f32 %v1347_v22, %v595_v1  ;;  %v613_v22 = vadd.f32 %v5817_v47, %v612_v38 }
 0x384   :  { %3924 = vmatmul.msk.f32.gmra.mxu0 %vm944_vm3, %v5821_v9  ;;  %v589_v9 = vadd.f32 %v5817_v47, %v5845_v41  ;;  %v615_v37 = vpop.f32.mrf.mxu2  ;;  %v1466_v40 = vsel %vm326_vm1, %v1421_v55, 0.0 }
 0x385   :  { %v616_v48 = vadd.f32 %v5817_v47, %v615_v37 }
 0x386   :  { %v1419_v61 = vmul.f32 %v1341_v42, %v589_v9 }
 0x388   :  { %v1464_v32 = vsel %vm326_vm1, %v1419_v61, 0.0 }
 0x389   :  { %v1350_v34 = vpop.f32.mrf.mxu0  ;;  %v1465_v59 = vadd.f32 %v1464_v32, %v1463_v33 }
 0x38a   :  { %v1422_v2 = vmul.f32 %v1350_v34, %v598_v58 }
 0x38b   :  { %v1467_v54 = vadd.f32 %v1466_v40, %v1465_v59 }
 0x38c   :  { %3925 = vmatmul.msk.f32.gmra.mxu0 %vm944_vm3, %v5810_v12  ;;  %v1450_v12 = vadd.f32 %v1449_v21, %v1448_v24  ;;  %v1453_v8 = vsel %vm326_vm1, %v1422_v2, 0.0  ;;  %v618_v11 = vpop.f32.mrf.mxu2 }
 0x38d   :  { %v619_v49 = vadd.f32 %v5817_v47, %v618_v11 }
 0x38e   :  { %v1452_v50 = vadd.f32 %v1451_v44, %v1450_v12 }
 0x390   :  { %v1454_v41 = vadd.f32 %v1453_v8, %v1452_v50 }
 0x391   :  { %v1353_v31 = vpop.f32.mrf.mxu0 }
 0x392   :  { %v1423_v27 = vmul.f32 %v1353_v31, %v601_v52 }
 0x394   :  { %3926 = vmatmul.msk.f32.gmra.mxu0 %vm944_vm3, %v5823_v62  ;;  %v1468_v6 = vsel %vm326_vm1, %v1423_v27, 0.0  ;;  %v621_v29 = vpop.f32.mrf.mxu2 }
 0x395   :  { %v1469_v56 = vadd.f32 %v1468_v6, %v1467_v54  ;;  %v622_v51 = vadd.f32 %v5817_v47, %v621_v29 }
 0x399   :  { %v1356_v63 = vpop.f32.mrf.mxu0 }
 0x39a   :  { %v1424_v25 = vmul.f32 %v1356_v63, %v604_v4 }
 0x39c   :  { %v1455_v62 = vsel %vm326_vm1, %v1424_v25, 0.0  ;;  %3927 = vmatmul.msk.f32.gmra.mxu0 %vm944_vm3, %v5812_v36  ;;  %v610_v36 = vadd.f32 %v5817_v47, %v609_v35  ;;  %v624_v45 = vpop.f32.mrf.mxu2 }
 0x39d   :  { %v1456_v57 = vadd.f32 %v1455_v62, %v1454_v41  ;;  %v625_v31 = vadd.f32 %v5817_v47, %v624_v45 }
 0x39f   :  { %3929 = vmatmul.msk.f32.vlgmr.msrb.gmra.mxu1 %vm326_vm1, %v1456_v57 }
 0x3a1   :  { %v1359_v19 = vpop.f32.mrf.mxu0 }
 0x3a2   :  { %v1425_v39 = vmul.f32 %v1359_v19, %v607_v16 }
 0x3a4   :  { %v1470_v30 = vsel %vm326_vm1, %v1425_v39, 0.0  ;;  %3928 = vmatmul.msk.f32.gmra.mxu0 %vm944_vm3, %v5828_v43  ;;  %v627_v26 = vpop.f32.mrf.mxu2 }
 0x3a5   :  { %v1471_v23 = vadd.f32 %v1470_v30, %v1469_v56  ;;  %v628_v62 = vadd.f32 %v5817_v47, %v627_v26 }
 0x3a7   :  { %3930 = vmatmul.msk.f32.gmra.mxu1 %vm326_vm1, %v1471_v23 }
 0x3a9   :  { %v1362_v24 = vpop.f32.mrf.mxu0 }
 0x3aa   :  { %v1426_v28 = vmul.f32 %v1362_v24, %v610_v36 }
 0x3ac   :  { %v1472_v0 = vsel %vm326_vm1, %v1426_v28, 0.0  ;;  %v630_v53 = vpop.f32.mrf.mxu2 }
 0x3ad   :  { %v631_v56 = vadd.f32 %v5817_v47, %v630_v53 }
 0x3b1   :  { %v1365_v46 = vpop.f32.mrf.mxu0 }
 0x3b2   :  { %v1427_v60 = vmul.f32 %v1365_v46, %v613_v22  ;;  %v5936_v46 = vld [vmem:[%s6879_s10] ss:$0 sm:$0xff] }
 0x3b4   :  { %v1487_v21 = vsel %vm326_vm1, %v1427_v60, 0.0  ;;  %v633_v1 = vpop.f32.mrf.mxu2 }
 0x3b5   :  { %v634_v37 = vadd.f32 %v5817_v47, %v633_v1 }
 0x3b9   :  { %v1368_v15 = vpop.f32.mrf.mxu0 }
 0x3ba   :  { %v1428_v33 = vmul.f32 %v1368_v15, %v616_v48 }
 0x3bc   :  { %v1473_v17 = vsel %vm326_vm1, %v1428_v33, 0.0  ;;  %v636_v4 = vpop.f32.mrf.mxu2 }
 0x3bd   :  { %v1474_v42 = vadd.f32 %v1473_v17, %v1472_v0  ;;  %v637_v36 = vadd.f32 %v5817_v47, %v636_v4 }
 0x3c1   :  { %v1371_v43 = vpop.f32.mrf.mxu0 }
 0x3c2   :  { %v1429_v35 = vmul.f32 %v1371_v43, %v619_v49 }
 0x3c4   :  { %v1488_v58 = vsel %vm326_vm1, %v1429_v35, 0.0  ;;  %v639_v50 = vpop.f32.mrf.mxu2 }
 0x3c5   :  { %v1489_v9 = vadd.f32 %v1488_v58, %v1487_v21  ;;  %v640_v40 = vadd.f32 %v5817_v47, %v639_v50 }
 0x3c9   :  { %v1374_v14 = vpop.f32.mrf.mxu0 }
 0x3ca   :  { %v1430_v18 = vmul.f32 %v1374_v14, %v622_v51 }
 0x3cc   :  { %v1475_v34 = vsel %vm326_vm1, %v1430_v18, 0.0  ;;  %v642_v52 = vpop.f32.mrf.mxu2 }
 0x3cd   :  { %v1476_v20 = vadd.f32 %v1475_v34, %v1474_v42  ;;  %v643_v48 = vadd.f32 %v5817_v47, %v642_v52 }
 0x3d1   :  { %v1377_v3 = vpop.f32.mrf.mxu0 }
 0x3d2   :  { %v1431_v2 = vmul.f32 %v1377_v3, %v625_v31 }
 0x3d4   :  { %v1490_v44 = vsel %vm326_vm1, %v1431_v2, 0.0  ;;  %v645_v25 = vpop.f32.mrf.mxu2 }
 0x3d5   :  { %v1491_v12 = vadd.f32 %v1490_v44, %v1489_v9  ;;  %v646_v6 = vadd.f32 %v5817_v47, %v645_v25 }
 0x3d9   :  { %v1380_v38 = vpop.f32.mrf.mxu0 }
 0x3da   :  { %v1432_v57 = vmul.f32 %v1380_v38, %v628_v62  ;;  %v4622_v62 = vld [vmem:[%s6882_s13 + $0x8c] sm:$0xf] }
 0x3dc   :  { %v648_v32 = vpop.f32.mrf.mxu2  ;;  %v1477_v54 = vsel %vm326_vm1, %v1432_v57, 0.0 }
 0x3dd   :  { %v1478_v11 = vadd.f32 %v1477_v54, %v1476_v20  ;;  %v649_v42 = vadd.f32 %v5817_v47, %v648_v32  ;;  %v4629_v32 = vld [vmem:[%s6882_s13 + $0xbc] sm:$0xf0] }
 0x3e1   :  { %v1383_v61 = vpop.f32.mrf.mxu0 }
 0x3e2   :  { %v1433_v24 = vmul.f32 %v1383_v61, %v631_v56 }
 0x3e4   :  { %v651_v39 = vpop.f32.mrf.mxu2  ;;  %v1492_v43 = vsel %vm326_vm1, %v1433_v24, 0.0 }
 0x3e5   :  { %v652_v45 = vadd.f32 %v5817_v47, %v651_v39  ;;  %v1493_v20 = vadd.f32 %v1492_v43, %v1491_v12  ;;  %v3935_v43 = vld [vmem:[%s6882_s13] sm:$0xf] }
 0x3e9   :  { %v1386_v8 = vpop.f32.mrf.mxu0 }
 0x3ea   :  { %v1434_v59 = vmul.f32 %v1386_v8, %v634_v37  ;;  %v4009_v37 = vld [vmem:[%s6882_s13 + $0xc8] sm:$0xf0] }
 0x3eb   :  { %v4012_v57 = vor.u32 %v4622_v62, %v4009_v37 }
 0x3ec   :  { %v1479_v30 = vsel %vm326_vm1, %v1434_v59, 0.0  ;;  %v654_v53 = vpop.f32.mrf.mxu2 }
 0x3ed   :  { %v1480_v29 = vadd.f32 %v1479_v30, %v1478_v11  ;;  %v655_v2 = vadd.f32 %v5817_v47, %v654_v53  ;;  %v4907_v47 = vmov 32.0   ;;  %1965 = vmatpush.bf16.msra.mxu3 %v4012_v57 }
 0x3ee   :  { %4863 = vrcp.f32 %v4907_v47 }
 0x3f1   :  { %v1389_v63 = vpop.f32.mrf.mxu0 }
 0x3f2   :  { %v1435_v15 = vmul.f32 %v1389_v63, %v637_v36 }
 0x3f4   :  { %v1494_v22 = vsel %vm326_vm1, %v1435_v15, 0.0  ;;  %v4864_v52 = vpop.eup %4863 }
 0x3f5   :  { %v1495_v3 = vadd.f32 %v1494_v22, %v1493_v20  ;;  %vm1574_vm4 = vweird.f32 %v4864_v52 }
 0x3f9   :  { %v1392_v55 = vpop.f32.mrf.mxu0 }
 0x3fa   :  { %v1436_v19 = vmul.f32 %v1392_v55, %v640_v40  ;;  %v1570_v55 = vmul.f32 32.0, %v4864_v52 }
 0x3fc   :  { %v1481_v28 = vsel %vm326_vm1, %v1436_v19, 0.0  ;;  %v1571_v25 = vsub.f32 1.0, %v1570_v55 }
 0x3fd   :  { %v1482_v0 = vadd.f32 %v1481_v28, %v1480_v29 }
 0x401   :  { %v1395_v41 = vpop.f32.mrf.mxu0 }
 0x402   :  { %v1437_v26 = vmul.f32 %v1395_v41, %v643_v48  ;;  %v3999_v41 = vld [vmem:[%s6882_s13 + $0x80] sm:$0xf] }
 0x404   :  { %v1496_v58 = vsel %vm326_vm1, %v1437_v26, 0.0  ;;  %v4613_v26 = vld [vmem:[%s6882_s13 + $0x3c] sm:$0xf0] }
 0x405   :  { %v1497_v44 = vadd.f32 %v1496_v58, %v1495_v3 }
 0x409   :  { %v1398_v27 = vpop.f32.mrf.mxu0 }
 0x40a   :  { %v1438_v23 = vmul.f32 %v1398_v27, %v646_v6  ;;  %v4000_v27 = vor.u32 %v4629_v32, %v3999_v41 }
 0x40c   :  { %v1483_v33 = vsel %vm326_vm1, %v1438_v23, 0.0  ;;  %1908 = vmatpush.bf16.msra.mxu2 %v4000_v27 }
 0x40d   :  { %v1484_v49 = vadd.f32 %v1483_v33, %v1482_v0 }
 0x411   :  { %v1401_v16 = vpop.f32.mrf.mxu0 }
 0x412   :  { %v1439_v35 = vmul.f32 %v1401_v16, %v649_v42 }
 0x414   :  { %v1498_v9 = vsel %vm326_vm1, %v1439_v35, 0.0  ;;  %v4606_v35 = vld [vmem:[%s6882_s13 + $0xc] sm:$0xf] }
 0x415   :  { %v1499_v12 = vadd.f32 %v1498_v9, %v1497_v44 }
 0x419   :  { %v1404_v17 = vpop.f32.mrf.mxu0 }
 0x41a   :  { %v1440_v51 = vmul.f32 %v1404_v17, %v652_v45 }
 0x41c   :  { %v1539_v14 = vpop.f32.mrf.mxu1  ;;  %v1485_v34 = vsel %vm326_vm1, %v1440_v51, 0.0  ;;  %v4001_v51 = vld [vmem:[%s6882_s13 + $0xc0] sm:$0xf0] }
 0x41d   :  { %v1540_v18 = vadd.f32 %v5936_v46, %v1539_v14  ;;  %v1486_v60 = vadd.f32 %v1485_v34, %v1484_v49  ;;  %v4605_v14 = vld [vmem:[%s6882_s13 + $0x4] sm:$0xf]  ;;  %v3945_v34 = vld [vmem:[%s6882_s13 + $0x48] sm:$0xf0] }
 0x41e   :  { %v3937_v49 = vld [vmem:[%s6882_s13 + $0x40] sm:$0xf0] }
 0x41f   :  { %v1551_v31 = vadd.f32 %v1540_v18, %v5250_v7  ;;  %3931 = vmatmul.msk.f32.gmra.mxu1 %vm326_vm1, %v1486_v60  ;;  %v3948_v60 = vor.u32 %v4606_v35, %v3945_v34  ;;  %v3940_v58 = vor.u32 %v4605_v14, %v3937_v49  ;;  %v4632_v49 = vld [vmem:[%s6882_s13 + $0xd4] sm:$0xf0] }
 0x421   :  { %v1557_v21 = vsel %vm326_vm1, %v1551_v31, 0.0  ;;  %v1407_v1 = vpop.f32.mrf.mxu0  ;;  %1966 = vmatpush.bf16.msra.mxu3 %v3948_v60 }
 0x422   :  { %1558 = vadd.xlane.f32.xlu0 %v1557_v21  ;;  %v1441_v38 = vmul.f32 %v1407_v1, %v655_v2 }
 0x424   :  { %v1542_v4 = vpop.f32.mrf.mxu1  ;;  %v1500_v7 = vsel %vm326_vm1, %v1441_v38, 0.0 }
 0x425   :  { %v1543_v61 = vadd.f32 %v5936_v46, %v1542_v4  ;;  %v1501_v8 = vadd.f32 %v1500_v7, %v1499_v12 }
 0x427   :  { %v1552_v50 = vadd.f32 %v1543_v61, %v5261_v10  ;;  %3932 = vmatmul.msk.f32.gmra.mxu1 %vm326_vm1, %v1501_v8  ;;  %v1572_v10 = vmul.f32 %v4864_v52, %v1571_v25 }
 0x429   :  { %v1560_v63 = vsel %vm326_vm1, %v1552_v50, 0.0  ;;  %v1573_v40 = vadd.f32 %v4864_v52, %v1572_v10  ;;  %v6030_v10 = vld [vmem:[%s6880_s11] ss:$0 sm:$0xff] }
 0x42a   :  { %1561 = vadd.xlane.f32.xlu0 %v1560_v63 }
 0x42b   :  { %v5969_v59 = vsel %vm1574_vm4, %v4864_v52, %v1573_v40  ;;  %v6036_v40 = vld [vmem:[%s6881_s12] ss:$0 sm:$0xff] }
 0x495   :  { %v1559_v16 = vpop.xlane.xlu0 %1558 }
 0x496   :  { %v1576_v6 = vmul.f32 %v5969_v59, %v1559_v16 }
 0x498   :  { %v5972_v54 = vsub.f32 %v1551_v31, %v1576_v6 }
 0x49a   :  { %v1584_v19 = vmul.f32 %v5972_v54, %v5972_v54 }
 0x49c   :  { %v1588_v39 = vsel %vm326_vm1, %v1584_v19, 0.0  ;;  %v1545_v30 = vpop.f32.mrf.mxu1 }
 0x49d   :  { %1589 = vadd.xlane.f32.xlu2 %v1588_v39  ;;  %v1562_v56 = vpop.xlane.xlu0 %1561  ;;  %v1546_v11 = vadd.f32 %v5936_v46, %v1545_v30 }
 0x49e   :  { %v1577_v23 = vmul.f32 %v5969_v59, %v1562_v56 }
 0x49f   :  { %v1553_v24 = vadd.f32 %v1546_v11, %v5363_v5 }
 0x4a0   :  { %v5979_v36 = vsub.f32 %v1552_v50, %v1577_v23 }
 0x4a1   :  { %v1563_v29 = vsel %vm326_vm1, %v1553_v24, 0.0 }
 0x4a2   :  { %v1585_v28 = vmul.f32 %v5979_v36, %v5979_v36  ;;  %1564 = vadd.xlane.f32.xlu1 %v1563_v29 }
 0x4a4   :  { %v1591_v48 = vsel %vm326_vm1, %v1585_v28, 0.0  ;;  %v1548_v45 = vpop.f32.mrf.mxu1  ;;  %v4692_v28 = vld [vmem:[%s6884_s15 + $0x1b8] sm:$0xff] }
 0x4a5   :  { %1592 = vadd.xlane.f32.xlu2 %v1591_v48  ;;  %v1549_v15 = vadd.f32 %v5936_v46, %v1548_v45  ;;  %v3936_v46 = vor.u32 %v4613_v26, %v3935_v43  ;;  %3444 = vmatpush.bf16.msra.mxu0 %v4692_v28  ;;  %v3943_v48 = vld [vmem:[%s6882_s13 + $0x8] sm:$0xf]  ;;  %v4015_v26 = vld [vmem:[%s6882_s13 + $0x90] sm:$0xf] }
 0x4a6   :  { %v4614_v45 = vld [vmem:[%s6882_s13 + $0x44] sm:$0xf0] }
 0x4a7   :  { %v1554_v33 = vadd.f32 %v1549_v15, %v5376_v13  ;;  %v4621_v13 = vld [vmem:[%s6882_s13 + $0x84] sm:$0xf]  ;;  %1909 = vmatpush.bf16.msra.mxu2 %v3936_v46  ;;  %v4023_v46 = vld [vmem:[%s6882_s13 + $0x98] sm:$0xf] }
 0x4a8   :  { %v4004_v22 = vor.u32 %v4621_v13, %v4001_v51  ;;  %v4631_v13 = vld [vmem:[%s6882_s13 + $0xcc] sm:$0xf0] }
 0x4a9   :  { %v1566_v0 = vsel %vm326_vm1, %v1554_v33, 0.0  ;;  %v4016_v14 = vor.u32 %v4631_v13, %v4015_v26  ;;  %v4635_v13 = vld [vmem:[%s6882_s13 + $0xec] sm:$0xf0] }
 0x4aa   :  { %1567 = vadd.xlane.f32.xlu1 %v1566_v0  ;;  %1927 = vmatpush.bf16.msra.mxu1 %v4004_v22 }
 0x4ae   :  { %1928 = vmatpush.bf16.msra.mxu1 %v3940_v58  ;;  %v4615_v58 = vld [vmem:[%s6882_s13 + $0x4c] sm:$0xf0] }
 0x4b2   :  { %1984 = vmatpush.bf16.msrb.mxu1 %v4016_v14 }
 0x510   :  { %v1590_v17 = vpop.xlane.xlu2 %1589 }
 0x511   :  { %v1600_v5 = vmul.f32 %v1590_v17, %v5969_v59 }
 0x513   :  { %v1604_v42 = vadd.f32 1e-05, %v1600_v5 }
 0x515   :  { %4865 = vrsqrt.f32 %v1604_v42  ;;  %v1565_v18 = vpop.xlane.xlu1 %1564  ;;  %vm1614_vm6 = vweird.f32 %v1604_v42 }
 0x516   :  { %v1578_v53 = vmul.f32 %v5969_v59, %v1565_v18  ;;  %v4024_v18 = vor.u32 %v4632_v49, %v4023_v46  ;;  %v3975_v46 = vld [vmem:[%s6882_s13 + $0x28] sm:$0xf]  ;;  %v3983_v49 = vld [vmem:[%s6882_s13 + $0x30] sm:$0xf] }
 0x518   :  { %v1593_v20 = vpop.xlane.xlu2 %1592  ;;  %v6016_v3 = vsub.f32 %v1553_v24, %v1578_v53  ;;  %v4630_v24 = vld [vmem:[%s6882_s13 + $0xc4] sm:$0xf0]  ;;  %2022 = vmatpush.bf16.msrb.mxu3 %v4024_v18  ;;  %v4619_v18 = vld [vmem:[%s6882_s13 + $0x6c] sm:$0xf0] }
 0x519   :  { %v1601_v31 = vmul.f32 %v1593_v20, %v5969_v59 }
 0x51a   :  { %v1586_v44 = vmul.f32 %v6016_v3, %v6016_v3 }
 0x51b   :  { %v4866_v21 = vpop.eup %4865  ;;  %v1605_v2 = vadd.f32 1e-05, %v1601_v31  ;;  %v3951_v31 = vld [vmem:[%s6882_s13 + $0x10] sm:$0xf] }
 0x51c   :  { %v1609_v9 = vmul.f32 %v4866_v21, %v1604_v42  ;;  %v1594_v38 = vsel %vm326_vm1, %v1586_v44, 0.0  ;;  %vm1615_vm5 = vweird.f32 %v4866_v21  ;;  %v4623_v44 = vld [vmem:[%s6882_s13 + $0x94] sm:$0xf] }
 0x51d   :  { %4867 = vrsqrt.f32 %v1605_v2  ;;  %1595 = vadd.xlane.f32.xlu0 %v1594_v38  ;;  %v1568_v4 = vpop.xlane.xlu1 %1567  ;;  %vm1616_vm7 = vmor %vm1614_vm6, %vm1615_vm5  ;;  %vm1624_vm9 = vweird.f32 %v1605_v2 }
 0x51e   :  { %v1610_v1 = vmul.f32 %v4866_v21, %v1609_v9  ;;  %v1579_v61 = vmul.f32 %v5969_v59, %v1568_v4  ;;  %v4616_v9 = vld [vmem:[%s6882_s13 + $0x54] sm:$0xf0] }
 0x520   :  { %v1611_v12 = vmul.f32 0.5, %v1610_v1  ;;  %v6022_v8 = vsub.f32 %v1554_v33, %v1579_v61  ;;  %v3944_v33 = vor.u32 %v4614_v45, %v3943_v48  ;;  %v4017_v1 = vld [vmem:[%s6882_s13 + $0xd0] sm:$0xf0]  ;;  %v4633_v48 = vld [vmem:[%s6882_s13 + $0xdc] sm:$0xf0] }
 0x521   :  { %v4020_v61 = vor.u32 %v4623_v44, %v4017_v1  ;;  %v4628_v44 = vld [vmem:[%s6882_s13 + $0xbc] sm:$0xf] }
 0x522   :  { %v1612_v7 = vsub.f32 1.5, %v1611_v12  ;;  %v1587_v52 = vmul.f32 %v6022_v8, %v6022_v8 }
 0x523   :  { %v4868_v50 = vpop.eup %4867 }
 0x524   :  { %v1613_v63 = vmul.f32 %v4866_v21, %v1612_v7  ;;  %v1619_v47 = vmul.f32 %v4868_v50, %v1605_v2  ;;  %v1597_v25 = vsel %vm326_vm1, %v1587_v52, 0.0  ;;  %vm1625_vm8 = vweird.f32 %v4868_v50  ;;  %v4691_v7 = vld [vmem:[%s6884_s15 + $0x1b0] sm:$0xff] }
 0x525   :  { %1598 = vadd.xlane.f32.xlu1 %v1597_v25  ;;  %vm1626_vm10 = vmor %vm1624_vm9, %vm1625_vm8  ;;  %v3952_v2 = vor.u32 %v4615_v58, %v3951_v31  ;;  %3445 = vmatpush.bf16.msra.mxu0 %v4691_v7  ;;  %v4610_v31 = vld [vmem:[%s6882_s13 + $0x2c] sm:$0xf]  ;;  %v4612_v7 = vld [vmem:[%s6882_s13 + $0x3c] sm:$0xf] }
 0x526   :  { %v1620_v55 = vmul.f32 %v4868_v50, %v1619_v47  ;;  %v1617_v41 = vsel %vm1616_vm7, %v4866_v21, %v1613_v63  ;;  %v3959_v21 = vld [vmem:[%s6882_s13 + $0x18] sm:$0xf]  ;;  %v3977_v58 = vld [vmem:[%s6882_s13 + $0x68] sm:$0xf0] }
 0x527   :  { %v1648_v62 = vmul.f32 %v1617_v41, %v5972_v54  ;;  %v3960_v12 = vor.u32 %v4616_v9, %v3959_v21  ;;  %1985 = vmatpush.bf16.msrb.mxu1 %v3952_v2  ;;  %v3980_v21 = vor.u32 %v4610_v31, %v3977_v58  ;;  %v4627_v2 = vld [vmem:[%s6882_s13 + $0xb4] sm:$0xf]  ;;  %v4648_v58 = vld [vmem:[%s6884_s15 + $0x58] sm:$0xff] }
 0x528   :  { %v1621_v32 = vmul.f32 0.5, %v1620_v55  ;;  %v4049_v9 = vld [vmem:[%s6882_s13 + $0xf0] sm:$0xf0] }
 0x529   :  { %v1655_v16 = vmul.f32 %v6030_v10, %v1648_v62  ;;  %2023 = vmatpush.bf16.msrb.mxu3 %v3960_v12  ;;  %v4052_v1 = vor.u32 %v4627_v2, %v4049_v9  ;;  %v3985_v12 = vld [vmem:[%s6882_s13 + $0x70] sm:$0xf0] }
 0x52a   :  { %v1622_v27 = vsub.f32 1.5, %v1621_v32 }
 0x52b   :  { %v6042_v39 = vadd.f32 %v6036_v40, %v1655_v16 }
 0x52c   :  { %v1623_v37 = vmul.f32 %v4868_v50, %v1622_v27 }
 0x52e   :  { %v1627_v57 = vsel %vm1626_vm10, %v4868_v50, %v1623_v37  ;;  %v4624_v37 = vld [vmem:[%s6882_s13 + $0x9c] sm:$0xf] }
 0x52f   :  { %v1649_v6 = vmul.f32 %v1627_v57, %v5979_v36  ;;  %v4007_v36 = vld [vmem:[%s6882_s13 + $0x88] sm:$0xf]  ;;  %v4025_v57 = vld [vmem:[%s6882_s13 + $0xd8] sm:$0xf0] }
 0x530   :  { %v4008_v29 = vor.u32 %v4630_v24, %v4007_v36  ;;  %v4028_v16 = vor.u32 %v4624_v37, %v4025_v57  ;;  %v3969_v36 = vld [vmem:[%s6882_s13 + $0x60] sm:$0xf0]  ;;  %v3991_v57 = vld [vmem:[%s6882_s13 + $0x38] sm:$0xf] }
 0x531   :  { %v1656_v19 = vmul.f32 %v6030_v10, %v1649_v6  ;;  %v4033_v6 = vld [vmem:[%s6882_s13 + $0xe0] sm:$0xf0] }
 0x532   :  { %1946 = vmatpush.bf16.msrb.mxu2 %v4008_v29  ;;  %v4031_v29 = vld [vmem:[%s6882_s13 + $0xa0] sm:$0xf] }
 0x533   :  { %v6045_v54 = vadd.f32 %v6036_v40, %v1656_v19  ;;  %v4608_v19 = vld [vmem:[%s6882_s13 + $0x1c] sm:$0xf]  ;;  %v4032_v45 = vor.u32 %v4633_v48, %v4031_v29  ;;  %v4641_v37 = vld [vmem:[%s6884_s15 + $0x20] sm:$0xff] }
 0x534   :  { %v4652_v29 = vld [vmem:[%s6884_s15 + $0x78] sm:$0xff] }
 0x535   :  { %v6049_v56 = vpack.c.bf16 %v6045_v54, %v6042_v39 }
 0x536   :  { %1947 = vmatpush.bf16.msrb.mxu2 %v3944_v33  ;;  %v3967_v33 = vld [vmem:[%s6882_s13 + $0x20] sm:$0xf] }
 0x537   :  { %4061 = vmatmul.msk.bf16.vlgmr.msra.gmra.mxu2 %vm326_vm1, %v6049_v56  ;;  %4063 = vmatmul.msk.bf16.vlgmr.msra.gmra.mxu1 %vm326_vm1, %v6049_v56 }
 0x538   :  { %4067 = vmatmul.msk.bf16.vlgmr.msra.gmra.mxu3 %vm326_vm1, %v6049_v56  ;;  %2041 = vmatpush.bf16.msra.mxu1 %v4028_v16 }
 0x53a   :  { %2003 = vmatpush.bf16.msra.mxu2 %v4020_v61 }
 0x590   :  { %v1596_v30 = vpop.xlane.xlu0 %1595 }
 0x591   :  { %v1602_v23 = vmul.f32 %v1596_v30, %v5969_v59  ;;  %v3961_v30 = vld [vmem:[%s6882_s13 + $0x58] sm:$0xf0] }
 0x592   :  { %v3964_v24 = vor.u32 %v4608_v19, %v3961_v30  ;;  %v4660_v19 = vld [vmem:[%s6884_s15 + $0xb8] sm:$0xff]  ;;  %v4639_v30 = vld [vmem:[%s6884_s15 + $0x10] sm:$0xff] }
 0x593   :  { %v1606_v11 = vadd.f32 1e-05, %v1602_v23 }
 0x594   :  { %2042 = vmatpush.bf16.msra.mxu1 %v3964_v24  ;;  %v4658_v24 = vld [vmem:[%s6884_s15 + $0xa8] sm:$0xff] }
 0x595   :  { %4869 = vrsqrt.f32 %v1606_v11  ;;  %vm1634_vm12 = vweird.f32 %v1606_v11 }
 0x598   :  { %v1599_v15 = vpop.xlane.xlu1 %1598 }
 0x599   :  { %v1603_v0 = vmul.f32 %v1599_v15, %v5969_v59  ;;  %v4690_v15 = vld [vmem:[%s6884_s15 + $0x1a8] sm:$0xff] }
 0x59a   :  { %3446 = vmatpush.bf16.msra.mxu0 %v4690_v15 }
 0x59b   :  { %v4870_v17 = vpop.eup %4869  ;;  %v1607_v5 = vadd.f32 1e-05, %v1603_v0  ;;  %v4617_v0 = vld [vmem:[%s6882_s13 + $0x5c] sm:$0xf0] }
 0x59c   :  { %v1629_v42 = vmul.f32 %v4870_v17, %v1606_v11  ;;  %vm1635_vm11 = vweird.f32 %v4870_v17  ;;  %v4609_v11 = vld [vmem:[%s6882_s13 + $0x24] sm:$0xf] }
 0x59d   :  { %4871 = vrsqrt.f32 %v1607_v5  ;;  %vm6086_vm13 = vmor %vm1634_vm12, %vm1635_vm11  ;;  %vm1644_vm15 = vweird.f32 %v1607_v5  ;;  %v3972_v28 = vor.u32 %v4609_v11, %v3969_v36  ;;  %v4638_v11 = vld [vmem:[%s6884_s15 + $0x8] sm:$0xff] }
 0x59e   :  { %v1630_v43 = vmul.f32 %v4870_v17, %v1629_v42  ;;  %v4634_v42 = vld [vmem:[%s6882_s13 + $0xe4] sm:$0xf0] }
 0x5a0   :  { %v1631_v51 = vmul.f32 0.5, %v1630_v43  ;;  %v4047_v43 = vld [vmem:[%s6882_s13 + $0xb0] sm:$0xf] }
 0x5a1   :  { %v4048_v14 = vor.u32 %v4635_v13, %v4047_v43  ;;  %v4655_v43 = vld [vmem:[%s6884_s15 + $0x90] sm:$0xff] }
 0x5a2   :  { %v1632_v22 = vsub.f32 1.5, %v1631_v51  ;;  %v4618_v51 = vld [vmem:[%s6882_s13 + $0x64] sm:$0xf0] }
 0x5a3   :  { %v4872_v35 = vpop.eup %4871 }
 0x5a4   :  { %v1633_v34 = vmul.f32 %v4870_v17, %v1632_v22  ;;  %v1639_v53 = vmul.f32 %v4872_v35, %v1607_v5  ;;  %vm1645_vm14 = vweird.f32 %v4872_v35  ;;  %v4039_v5 = vld [vmem:[%s6882_s13 + $0xa8] sm:$0xf]  ;;  %v3976_v22 = vor.u32 %v4618_v51, %v3975_v46 }
 0x5a5   :  { %vm1646_vm0 = vmor %vm1644_vm15, %vm1645_vm14  ;;  %v4040_v26 = vor.u32 %v4634_v42, %v4039_v5  ;;  %v4651_v5 = vld [vmem:[%s6884_s15 + $0x70] sm:$0xff]  ;;  %v4650_v46 = vld [vmem:[%s6884_s15 + $0x68] sm:$0xff] }
 0x5a6   :  { %v1640_v60 = vmul.f32 %v4872_v35, %v1639_v53  ;;  %v1637_v38 = vsel %vm6086_vm13, %v4870_v17, %v1633_v34  ;;  %v3968_v17 = vor.u32 %v4617_v0, %v3967_v33  ;;  %v4626_v34 = vld [vmem:[%s6882_s13 + $0xac] sm:$0xf]  ;;  %v4657_v33 = vld [vmem:[%s6884_s15 + $0xa0] sm:$0xff]  ;;  %v4667_v42 = vld [vmem:[%s6884_s15 + $0xf0] sm:$0xff] }
 0x5a7   :  { %v1650_v63 = vmul.f32 %v1637_v38, %v6016_v3  ;;  %v4041_v53 = vld [vmem:[%s6882_s13 + $0xe8] sm:$0xf0]  ;;  %v4057_v38 = vld [vmem:[%s6882_s13 + $0xf8] sm:$0xf0] }
 0x5a8   :  { %v1641_v4 = vmul.f32 0.5, %v1640_v60  ;;  %v4044_v20 = vor.u32 %v4626_v34, %v4041_v53  ;;  %v4689_v60 = vld [vmem:[%s6884_s15 + $0x1a0] sm:$0xff]  ;;  %v4060_v61 = vor.u32 %v4628_v44, %v4057_v38  ;;  %v4666_v51 = vld [vmem:[%s6884_s15 + $0xe8] sm:$0xff]  ;;  %v4684_v38 = vld [vmem:[%s6884_s15 + $0x178] sm:$0xff] }
 0x5a9   :  { %v1657_v55 = vmul.f32 %v6030_v10, %v1650_v63  ;;  %3447 = vmatpush.bf16.msra.mxu0 %v4689_v60  ;;  %v4665_v34 = vld [vmem:[%s6884_s15 + $0xe0] sm:$0xff] }
 0x5aa   :  { %v1642_v50 = vsub.f32 1.5, %v1641_v4  ;;  %v4611_v4 = vld [vmem:[%s6882_s13 + $0x34] sm:$0xf]  ;;  %v4653_v53 = vld [vmem:[%s6884_s15 + $0x80] sm:$0xff] }
 0x5ab   :  { %v6118_v32 = vadd.f32 %v6036_v40, %v1657_v55  ;;  %v3988_v63 = vor.u32 %v4611_v4, %v3985_v12  ;;  %v4636_v55 = vld [vmem:[%s6882_s13 + $0xf4] sm:$0xf0]  ;;  %v6398_v60 = vld [vmem:[%s6883_s14] sm:$0xff]  ;;  %v4647_v12 = vld [vmem:[%s6884_s15 + $0x50] sm:$0xff] }
 0x5ac   :  { %v1643_v47 = vmul.f32 %v4872_v35, %v1642_v50  ;;  %v3993_v50 = vld [vmem:[%s6882_s13 + $0x78] sm:$0xf0]  ;;  %v1704_v2 = vperm.slane %v6398_v60, 0 }
 0x5ae   :  { %v1647_v52 = vsel %vm1646_vm0, %v4872_v35, %v1643_v47  ;;  %v3984_v35 = vor.u32 %v4619_v18, %v3983_v49  ;;  %v3996_v47 = vor.u32 %v4612_v7, %v3993_v50  ;;  %v4654_v18 = vld [vmem:[%s6884_s15 + $0x88] sm:$0xff]  ;;  %v4683_v7 = vld [vmem:[%s6884_s15 + $0x170] sm:$0xff] }
 0x5af   :  { %v1651_v25 = vmul.f32 %v1647_v52, %v6022_v8  ;;  %v4607_v8 = vld [vmem:[%s6882_s13 + $0x14] sm:$0xf]  ;;  %v4055_v52 = vld [vmem:[%s6882_s13 + $0xb8] sm:$0xf] }
 0x5b1   :  { %v1658_v41 = vmul.f32 %v6030_v10, %v1651_v25  ;;  %v3953_v10 = vld [vmem:[%s6882_s13 + $0x50] sm:$0xf0]  ;;  %v4056_v25 = vor.u32 %v4636_v55, %v4055_v52  ;;  %v4662_v52 = vld [vmem:[%s6884_s15 + $0xc8] sm:$0xff] }
 0x5b2   :  { %v3956_v62 = vor.u32 %v4607_v8, %v3953_v10  ;;  %v4688_v8 = vld [vmem:[%s6884_s15 + $0x198] sm:$0xff]  ;;  %v4643_v10 = vld [vmem:[%s6884_s15 + $0x30] sm:$0xff] }
 0x5b3   :  { %v6121_v27 = vadd.f32 %v6036_v40, %v1658_v41  ;;  %v4625_v40 = vld [vmem:[%s6882_s13 + $0xa4] sm:$0xf]  ;;  %v4644_v41 = vld [vmem:[%s6884_s15 + $0x38] sm:$0xff]  ;;  %3448 = vmatpush.bf16.msra.mxu0 %v4688_v8 }
 0x5b4   :  { %2004 = vmatpush.bf16.msra.mxu2 %v3956_v62  ;;  %v4036_v23 = vor.u32 %v4625_v40, %v4033_v6  ;;  %v4642_v62 = vld [vmem:[%s6884_s15 + $0x28] sm:$0xff]  ;;  %v4620_v40 = vld [vmem:[%s6882_s13 + $0x74] sm:$0xf0]  ;;  %v6319_v36 = vpop.f32.mrf.mxu1 }
 0x5b5   :  { %v6125_v3 = vpack.c.bf16 %v6121_v27, %v6118_v32  ;;  %v3992_v16 = vor.u32 %v4620_v40, %v3991_v57  ;;  %v4640_v6 = vld [vmem:[%s6884_s15 + $0x18] sm:$0xff]  ;;  %v4681_v57 = vld [vmem:[%s6884_s15 + $0x160] sm:$0xff] }
 0x5b6   :  { %2079 = vmatpush.bf16.msra.mxu3 %v4036_v23  ;;  %v4659_v23 = vld [vmem:[%s6884_s15 + $0xb0] sm:$0xff]  ;;  %v4676_v40 = vld [vmem:[%s6884_s15 + $0x138] sm:$0xff] }
 0x5b7   :  { %4062 = vmatmul.msk.bf16.gmra.mxu2 %vm326_vm1, %v6125_v3  ;;  %4064 = vmatmul.msk.bf16.gmra.mxu1 %vm326_vm1, %v6125_v3 }
 0x5b8   :  { %4068 = vmatmul.msk.bf16.gmra.mxu3 %vm326_vm1, %v6125_v3 }
 0x5ba   :  { %2080 = vmatpush.bf16.msra.mxu3 %v3972_v28  ;;  %v4637_v28 = vld [vmem:[%s6884_s15] sm:$0xff]  ;;  %v1911_v48 = vpop.f32.mrf.mxu2 }
 0x5bb   :  { %v6339_v15 = vpop.f32.mrf.mxu3  ;;  %v1912_v4 = vadd.f32 %v1911_v48, %v1704_v2  ;;  %v4699_v48 = vld [vmem:[%s6884_s15 + $0x1f0] sm:$0xff] }
 0x5bc   :  { %v6344_v0 = vpop.f32.mrf.mxu1 }
 0x5bd   :  { %v2206_v55 = vmax.f32 %v1912_v4, 0.0  ;;  %v4724_v4 = vld [vmem:[%s6884_s15 + $0x2b8] sm:$0xff] }
 0x5c2   :  { %v1913_v13 = vpop.f32.mrf.mxu2 }
 0x5c7   :  { %4065 = vmatmul.msk.bf16.vlgmr.msrb.gmra.mxu2 %vm326_vm1, %v6049_v56  ;;  %4069 = vmatmul.msk.bf16.vlgmr.msrb.gmra.mxu1 %vm326_vm1, %v6049_v56 }
 0x5c8   :  { %4073 = vmatmul.msk.bf16.vlgmr.msrb.gmra.mxu3 %vm326_vm1, %v6049_v56  ;;  %2060 = vmatpush.bf16.msrb.mxu2 %v4032_v45  ;;  %v4668_v45 = vld [vmem:[%s6884_s15 + $0xf8] sm:$0xff] }
 0x5c9   :  { %2098 = vmatpush.bf16.msrb.mxu1 %v4040_v26  ;;  %2136 = vmatpush.bf16.msrb.mxu3 %v4048_v14  ;;  %v4687_v26 = vld [vmem:[%s6884_s15 + $0x190] sm:$0xff]  ;;  %v6367_v14 = vpop.f32.mrf.mxu3 }
 0x5ca   :  { %3449 = vmatpush.bf16.msra.mxu0 %v4687_v26  ;;  %v4698_v26 = vld [vmem:[%s6884_s15 + $0x1e8] sm:$0xff] }
 0x5cc   :  { %2061 = vmatpush.bf16.msrb.mxu2 %v3968_v17  ;;  %v4656_v17 = vld [vmem:[%s6884_s15 + $0x98] sm:$0xff] }
 0x5cd   :  { %2099 = vmatpush.bf16.msrb.mxu1 %v3976_v22  ;;  %2137 = vmatpush.bf16.msrb.mxu3 %v3984_v35  ;;  %v4686_v22 = vld [vmem:[%s6884_s15 + $0x188] sm:$0xff]  ;;  %v4649_v35 = vld [vmem:[%s6884_s15 + $0x60] sm:$0xff] }
 0x5ce   :  { %3450 = vmatpush.bf16.msra.mxu0 %v4686_v22 }
 0x5d7   :  { %4066 = vmatmul.msk.bf16.gmra.mxu2 %vm326_vm1, %v6125_v3  ;;  %4070 = vmatmul.msk.bf16.gmra.mxu1 %vm326_vm1, %v6125_v3 }
 0x5d8   :  { %4074 = vmatmul.msk.bf16.gmra.mxu3 %vm326_vm1, %v6125_v3 }
 0x5e7   :  { %4071 = vmatmul.msk.bf16.vlgmr.msra.gmra.mxu2 %vm326_vm1, %v6049_v56  ;;  %4075 = vmatmul.msk.bf16.vlgmr.msra.gmra.mxu1 %vm326_vm1, %v6049_v56 }
 0x5e8   :  { %4079 = vmatmul.msk.bf16.vlgmr.msra.gmra.mxu3 %vm326_vm1, %v6049_v56  ;;  %2117 = vmatpush.bf16.msra.mxu2 %v4044_v20  ;;  %v4685_v20 = vld [vmem:[%s6884_s15 + $0x180] sm:$0xff] }
 0x5e9   :  { %2155 = vmatpush.bf16.msra.mxu1 %v4052_v1  ;;  %2193 = vmatpush.bf16.msra.mxu3 %v4060_v61  ;;  %v1914_v1 = vadd.f32 %v1913_v13, %v1704_v2  ;;  %v4663_v61 = vld [vmem:[%s6884_s15 + $0xd0] sm:$0xff] }
 0x5ea   :  { %3451 = vmatpush.bf16.msra.mxu0 %v4685_v20 }
 0x5eb   :  { %v2222_v50 = vmax.f32 %v1914_v1, 0.0  ;;  %v4673_v1 = vld [vmem:[%s6884_s15 + $0x120] sm:$0xff] }
 0x5ec   :  { %2118 = vmatpush.bf16.msra.mxu2 %v3980_v21  ;;  %v4664_v21 = vld [vmem:[%s6884_s15 + $0xd8] sm:$0xff] }
 0x5ed   :  { %2156 = vmatpush.bf16.msra.mxu1 %v3988_v63  ;;  %2194 = vmatpush.bf16.msra.mxu3 %v3996_v47  ;;  %v4646_v47 = vld [vmem:[%s6884_s15 + $0x48] sm:$0xff]  ;;  %v2270_v8 = vpack.c.bf16 %v2222_v50, %v2206_v55  ;;  %v6509_v50 = vperm.slane %v6398_v60, 3 }
 0x5ee   :  { %3520 = vmatpush.bf16.msrb.mxu0 %v4724_v4 }
 0x5f7   :  { %4072 = vmatmul.msk.bf16.gmra.mxu2 %vm326_vm1, %v6125_v3  ;;  %4076 = vmatmul.msk.bf16.gmra.mxu1 %vm326_vm1, %v6125_v3 }
 0x5f8   :  { %4080 = vmatmul.msk.bf16.gmra.mxu3 %vm326_vm1, %v6125_v3 }
 0x607   :  { %4077 = vmatmul.msk.bf16.vlgmr.msrb.gmra.mxu2 %vm326_vm1, %v6049_v56  ;;  %4081 = vmatmul.msk.bf16.vlgmr.msrb.gmra.mxu1 %vm326_vm1, %v6049_v56 }
 0x608   :  { %4085 = vmatmul.msk.bf16.vlgmr.msrb.gmra.mxu3 %vm326_vm1, %v6049_v56  ;;  %2174 = vmatpush.bf16.msrb.mxu2 %v4056_v25 }
 0x609   :  { %3330 = vmatpush.bf16.msrb.mxu1 %v4644_v41  ;;  %3368 = vmatpush.bf16.msrb.mxu3 %v4660_v19 }
 0x60c   :  { %2175 = vmatpush.bf16.msrb.mxu2 %v3992_v16 }
 0x60d   :  { %3331 = vmatpush.bf16.msrb.mxu1 %v4643_v10  ;;  %3369 = vmatpush.bf16.msrb.mxu3 %v4659_v23  ;;  %v4682_v10 = vld [vmem:[%s6884_s15 + $0x168] sm:$0xff]  ;;  %v6456_v23 = vperm.slane %v6398_v60, 2 }
 0x611   :  { %3332 = vmatpush.bf16.msrb.mxu1 %v4642_v62  ;;  %3370 = vmatpush.bf16.msrb.mxu3 %v4658_v24  ;;  %v4645_v62 = vld [vmem:[%s6884_s15 + $0x40] sm:$0xff]  ;;  %v4680_v24 = vld [vmem:[%s6884_s15 + $0x158] sm:$0xff] }
 0x615   :  { %3333 = vmatpush.bf16.msrb.mxu1 %v4641_v37  ;;  %3371 = vmatpush.bf16.msrb.mxu3 %v4657_v33  ;;  %v4661_v37 = vld [vmem:[%s6884_s15 + $0xc0] sm:$0xff] }
 0x617   :  { %4078 = vmatmul.msk.bf16.gmra.mxu2 %vm326_vm1, %v6125_v3  ;;  %4082 = vmatmul.msk.bf16.gmra.mxu1 %vm326_vm1, %v6125_v3 }
 0x618   :  { %4086 = vmatmul.msk.bf16.gmra.mxu3 %vm326_vm1, %v6125_v3 }
 0x619   :  { %3334 = vmatpush.bf16.msrb.mxu1 %v4640_v6  ;;  %3372 = vmatpush.bf16.msrb.mxu3 %v4656_v17  ;;  %v4679_v17 = vld [vmem:[%s6884_s15 + $0x150] sm:$0xff] }
 0x61d   :  { %3335 = vmatpush.bf16.msrb.mxu1 %v4639_v30  ;;  %3373 = vmatpush.bf16.msrb.mxu3 %v4655_v43  ;;  %v4674_v43 = vld [vmem:[%s6884_s15 + $0x128] sm:$0xff] }
 0x621   :  { %3336 = vmatpush.bf16.msrb.mxu1 %v4638_v11  ;;  %3374 = vmatpush.bf16.msrb.mxu3 %v4654_v18  ;;  %v6459_v11 = vperm.slane %v6398_v60, 6 }
 0x625   :  { %3337 = vmatpush.bf16.msrb.mxu1 %v4637_v28  ;;  %3375 = vmatpush.bf16.msrb.mxu3 %v4653_v53 }
 0x627   :  { %4083 = vmatmul.msk.bf16.vlgmr.msra.gmra.mxu2 %vm326_vm1, %v6049_v56  ;;  %4087 = vmatmul.msk.bf16.vlgmr.msra.gmra.mxu1 %vm326_vm1, %v6049_v56 }
 0x628   :  { %4091 = vmatmul.msk.bf16.vlgmr.msra.gmra.mxu3 %vm326_vm1, %v6049_v56  ;;  %3349 = vmatpush.bf16.msra.mxu2 %v4652_v29  ;;  %v4675_v29 = vld [vmem:[%s6884_s15 + $0x130] sm:$0xff] }
 0x629   :  { %3387 = vmatpush.bf16.msra.mxu1 %v4668_v45  ;;  %3425 = vmatpush.bf16.msra.mxu3 %v4684_v38  ;;  %v4697_v38 = vld [vmem:[%s6884_s15 + $0x1e0] sm:$0xff] }
 0x62c   :  { %3350 = vmatpush.bf16.msra.mxu2 %v4651_v5 }
 0x62d   :  { %3388 = vmatpush.bf16.msra.mxu1 %v4667_v42  ;;  %3426 = vmatpush.bf16.msra.mxu3 %v4683_v7  ;;  %v6506_v7 = vperm.slane %v6398_v60, 1 }
 0x630   :  { %3351 = vmatpush.bf16.msra.mxu2 %v4650_v46 }
 0x631   :  { %3389 = vmatpush.bf16.msra.mxu1 %v4666_v51  ;;  %3427 = vmatpush.bf16.msra.mxu3 %v4682_v10  ;;  %v1971_v10 = vadd.f32 %v6367_v14, %v6509_v50  ;;  %v4695_v14 = vld [vmem:[%s6884_s15 + $0x1d0] sm:$0xff] }
 0x634   :  { %v6369_v49 = vpop.f32.mrf.mxu1  ;;  %3352 = vmatpush.bf16.msra.mxu2 %v4649_v35 }
 0x635   :  { %3390 = vmatpush.bf16.msra.mxu1 %v4665_v34  ;;  %3428 = vmatpush.bf16.msra.mxu3 %v4681_v57  ;;  %v1969_v57 = vadd.f32 %v6339_v15, %v6509_v50 }
 0x637   :  { %4084 = vmatmul.msk.bf16.gmra.mxu2 %vm326_vm1, %v6125_v3  ;;  %4088 = vmatmul.msk.bf16.gmra.mxu1 %vm326_vm1, %v6125_v3 }
 0x638   :  { %4092 = vmatmul.msk.bf16.gmra.mxu3 %vm326_vm1, %v6125_v3  ;;  %3353 = vmatpush.bf16.msra.mxu2 %v4648_v58  ;;  %v4678_v58 = vld [vmem:[%s6884_s15 + $0x148] sm:$0xff] }
 0x639   :  { %3391 = vmatpush.bf16.msra.mxu1 %v4664_v21  ;;  %3429 = vmatpush.bf16.msra.mxu3 %v4680_v24  ;;  %v4670_v24 = vld [vmem:[%s6884_s15 + $0x108] sm:$0xff] }
 0x63a   :  { %v1916_v31 = vpop.f32.mrf.mxu2 }
 0x63b   :  { %v6407_v9 = vpop.f32.mrf.mxu3  ;;  %v1917_v28 = vadd.f32 %v1916_v31, %v1704_v2 }
 0x63c   :  { %v6409_v44 = vpop.f32.mrf.mxu1  ;;  %3354 = vmatpush.bf16.msra.mxu2 %v4647_v12 }
 0x63d   :  { %3392 = vmatpush.bf16.msra.mxu1 %v4663_v61  ;;  %v2238_v13 = vmax.f32 %v1917_v28, 0.0  ;;  %3430 = vmatpush.bf16.msra.mxu3 %v4679_v17  ;;  %v4672_v61 = vld [vmem:[%s6884_s15 + $0x118] sm:$0xff]  ;;  %v1938_v4 = vadd.f32 %v6409_v44, %v6506_v7  ;;  %v4707_v44 = vld [vmem:[%s6884_s15 + $0x230] sm:$0xff] }
 0x640   :  { %3355 = vmatpush.bf16.msra.mxu2 %v4646_v47  ;;  %v4696_v47 = vld [vmem:[%s6884_s15 + $0x1d8] sm:$0xff] }
 0x641   :  { %3393 = vmatpush.bf16.msra.mxu1 %v4662_v52  ;;  %3431 = vmatpush.bf16.msra.mxu3 %v4678_v58  ;;  %v4723_v52 = vld [vmem:[%s6884_s15 + $0x2b0] sm:$0xff] }
 0x642   :  { %v1918_v63 = vpop.f32.mrf.mxu2  ;;  %3521 = vmatpush.bf16.msrb.mxu0 %v4723_v52  ;;  %v2255_v52 = vmax.f32 %v1938_v4, 0.0 }
 0x643   :  { %v6429_v25 = vpop.f32.mrf.mxu3  ;;  %v1919_v30 = vadd.f32 %v1918_v63, %v1704_v2 }
 0x644   :  { %v6431_v41 = vpop.f32.mrf.mxu1  ;;  %3356 = vmatpush.bf16.msra.mxu2 %v4645_v62  ;;  %v4716_v62 = vld [vmem:[%s6884_s15 + $0x278] sm:$0xff] }
 0x645   :  { %3394 = vmatpush.bf16.msra.mxu1 %v4661_v37  ;;  %v2254_v45 = vmax.f32 %v1919_v30, 0.0  ;;  %v1931_v37 = vadd.f32 %v6319_v36, %v6506_v7  ;;  %v4715_v36 = vld [vmem:[%s6884_s15 + $0x270] sm:$0xff] }
 0x647   :  { %4089 = vmatmul.msk.bf16.vlgmr.msrb.gmra.mxu2 %vm326_vm1, %v6049_v56  ;;  %3338 = vmatmul.bf16.vlgmr.msrb.gmra.mxu1 %v2270_v8  ;;  %v4700_v56 = vld [vmem:[%s6884_s15 + $0x1f8] sm:$0xff]  ;;  %v2286_v53 = vpack.c.bf16 %v2254_v45, %v2238_v13  ;;  %v1933_v8 = vadd.f32 %v6344_v0, %v6506_v7  ;;  %v4671_v0 = vld [vmem:[%s6884_s15 + $0x110] sm:$0xff]  ;;  %v2207_v28 = vmax.f32 %v1931_v37, 0.0 }
 0x648   :  { %3406 = vmatpush.bf16.msrb.mxu2 %v4676_v40  ;;  %v4722_v40 = vld [vmem:[%s6884_s15 + $0x2a8] sm:$0xff] }
 0x649   :  { %3463 = vmatpush.bf16.msrb.mxu1 %v4700_v56  ;;  %v2223_v15 = vmax.f32 %v1933_v8, 0.0  ;;  %v2225_v56 = vmax.f32 %v1971_v10, 0.0  ;;  %3522 = vmatpush.bf16.msrb.mxu0 %v4722_v40 }
 0x64a   :  { %v1949_v16 = vpop.f32.mrf.mxu2 }
 0x64b   :  { %v2025_v6 = vpop.f32.mrf.mxu3  ;;  %v1950_v33 = vadd.f32 %v1949_v16, %v6456_v23 }
 0x64c   :  { %v6453_v19 = vpop.f32.mrf.mxu1  ;;  %v2026_v5 = vadd.f32 %v2025_v6, %v6459_v11  ;;  %3407 = vmatpush.bf16.msrb.mxu2 %v4675_v29  ;;  %v2209_v29 = vmax.f32 %v1969_v57, 0.0 }
 0x64d   :  { %3464 = vmatpush.bf16.msrb.mxu1 %v4699_v48  ;;  %v2208_v35 = vmax.f32 %v1950_v33, 0.0 }
 0x64e   :  { %v2212_v20 = vmax.f32 %v2026_v5, 0.0  ;;  %v4694_v5 = vld [vmem:[%s6884_s15 + $0x1c8] sm:$0xff] }
 0x650   :  { %3408 = vmatpush.bf16.msrb.mxu2 %v4674_v43  ;;  %v2271_v43 = vpack.c.bf16 %v2223_v15, %v2207_v28  ;;  %v4709_v28 = vld [vmem:[%s6884_s15 + $0x240] sm:$0xff] }
 0x651   :  { %3465 = vmatpush.bf16.msrb.mxu1 %v4698_v26  ;;  %v2273_v26 = vpack.c.bf16 %v2225_v56, %v2209_v29  ;;  %v4704_v29 = vld [vmem:[%s6884_s15 + $0x218] sm:$0xff] }
 0x652   :  { %v1951_v42 = vpop.f32.mrf.mxu2 }
 0x653   :  { %v1952_v46 = vadd.f32 %v1951_v42, %v6456_v23  ;;  %v2027_v51 = vpop.f32.mrf.mxu3  ;;  %v4721_v42 = vld [vmem:[%s6884_s15 + $0x2a0] sm:$0xff] }
 0x654   :  { %v2028_v18 = vadd.f32 %v2027_v51, %v6459_v11  ;;  %v6483_v22 = vpop.f32.mrf.mxu1  ;;  %3409 = vmatpush.bf16.msrb.mxu2 %v4673_v1  ;;  %3523 = vmatpush.bf16.msrb.mxu0 %v4721_v42 }
 0x655   :  { %v2224_v34 = vmax.f32 %v1952_v46, 0.0  ;;  %3466 = vmatpush.bf16.msrb.mxu1 %v4697_v38  ;;  %v4719_v38 = vld [vmem:[%s6884_s15 + $0x290] sm:$0xff] }
 0x656   :  { %v2228_v31 = vmax.f32 %v2028_v18, 0.0 }
 0x657   :  { %v2272_v21 = vpack.c.bf16 %v2224_v34, %v2208_v35  ;;  %4090 = vmatmul.msk.bf16.gmra.mxu2 %vm326_vm1, %v6125_v3  ;;  %3343 = vmatmul.bf16.gmra.mxu1 %v2286_v53  ;;  %v4677_v3 = vld [vmem:[%s6884_s15 + $0x140] sm:$0xff] }
 0x658   :  { %v2276_v2 = vpack.c.bf16 %v2228_v31, %v2212_v20  ;;  %3432 = vmatpush.bf16.msra.mxu3 %v4677_v3  ;;  %3410 = vmatpush.bf16.msrb.mxu2 %v4672_v61  ;;  %v4669_v35 = vld [vmem:[%s6884_s15 + $0x100] sm:$0xff]  ;;  %v4720_v20 = vld [vmem:[%s6884_s15 + $0x298] sm:$0xff]  ;;  %v1976_v3 = vadd.f32 %v6429_v25, %v6509_v50  ;;  %v4718_v25 = vld [vmem:[%s6884_s15 + $0x288] sm:$0xff] }
 0x659   :  { %3376 = vmatmul.bf16.vlgmr.msrb.gmra.mxu3 %v2272_v21  ;;  %3467 = vmatpush.bf16.msrb.mxu1 %v4696_v47  ;;  %v4693_v53 = vld [vmem:[%s6884_s15 + $0x1c0] sm:$0xff]  ;;  %v4708_v31 = vld [vmem:[%s6884_s15 + $0x238] sm:$0xff]  ;;  %v1974_v47 = vadd.f32 %v6407_v9, %v6509_v50  ;;  %v4706_v9 = vld [vmem:[%s6884_s15 + $0x228] sm:$0xff] }
 0x65a   :  { %3452 = vmatmul.bf16.vlgmr.msra.gmra.mxu0 %v2276_v2  ;;  %v1954_v12 = vpop.f32.mrf.mxu2  ;;  %v4713_v21 = vld [vmem:[%s6884_s15 + $0x260] sm:$0xff]  ;;  %v4712_v61 = vld [vmem:[%s6884_s15 + $0x258] sm:$0xff]  ;;  %v2257_v8 = vmax.f32 %v1976_v3, 0.0  ;;  %v6663_v3 = vld [vmem:[%s6883_s14 + $0x8] sm:$0xff] }
 0x65b   :  { %v2030_v63 = vpop.f32.mrf.mxu3  ;;  %v1955_v16 = vadd.f32 %v1954_v12, %v6456_v23  ;;  %3524 = vmatpush.bf16.msrb.mxu0 %v4720_v20  ;;  %v6585_v12 = vperm.slane %v6398_v60, 5  ;;  %v2241_v50 = vmax.f32 %v1974_v47, 0.0 }
 0x65c   :  { %v6517_v55 = vpop.f32.mrf.mxu1  ;;  %3501 = vmatpush.bf16.msrb.mxu3 %v4716_v62  ;;  %v2031_v6 = vadd.f32 %v2030_v63, %v6459_v11  ;;  %3411 = vmatpush.bf16.msrb.mxu2 %v4671_v0  ;;  %v1936_v63 = vadd.f32 %v6369_v49, %v6506_v7  ;;  %v4711_v49 = vld [vmem:[%s6884_s15 + $0x250] sm:$0xff] }
 0x65d   :  { %3468 = vmatpush.bf16.msrb.mxu1 %v4695_v14  ;;  %v2240_v13 = vmax.f32 %v1955_v16, 0.0  ;;  %v4717_v14 = vld [vmem:[%s6884_s15 + $0x280] sm:$0xff]  ;;  %v2289_v56 = vpack.c.bf16 %v2257_v8, %v2241_v50  ;;  %v4710_v16 = vld [vmem:[%s6884_s15 + $0x248] sm:$0xff]  ;;  %v4740_v8 = vld [vmem:[%s6884_s15 + $0x338] sm:$0xff] }
 0x65e   :  { %v2244_v46 = vmax.f32 %v2031_v6, 0.0  ;;  %v2239_v7 = vmax.f32 %v1936_v63, 0.0  ;;  %v6672_v63 = vperm.slane %v6663_v3, 2 }
 0x65f   :  { %3525 = vmatpush.bf16.msrb.mxu0 %v4719_v38 }
 0x660   :  { %3502 = vmatpush.bf16.msrb.mxu3 %v4715_v36  ;;  %3412 = vmatpush.bf16.msrb.mxu2 %v4670_v24  ;;  %v2287_v15 = vpack.c.bf16 %v2255_v52, %v2239_v7  ;;  %v4745_v52 = vld [vmem:[%s6884_s15 + $0x360] sm:$0xff]  ;;  %v6691_v7 = vperm.slane %v6663_v3, 1 }
 0x661   :  { %3469 = vmatpush.bf16.msrb.mxu1 %v4694_v5 }
 0x662   :  { %v1956_v30 = vpop.f32.mrf.mxu2 }
 0x663   :  { %v1957_v48 = vadd.f32 %v1956_v30, %v6456_v23  ;;  %v2032_v45 = vpop.f32.mrf.mxu3  ;;  %3526 = vmatpush.bf16.msrb.mxu0 %v4718_v25  ;;  %v4705_v30 = vld [vmem:[%s6884_s15 + $0x220] sm:$0xff] }
 0x664   :  { %v2033_v33 = vadd.f32 %v2032_v45, %v6459_v11  ;;  %v6549_v17 = vpop.f32.mrf.mxu1  ;;  %v4714_v11 = vld [vmem:[%s6884_s15 + $0x268] sm:$0xff]  ;;  %3413 = vmatpush.bf16.msrb.mxu2 %v4669_v35  ;;  %v6629_v45 = vperm.slane %v6398_v60, 7  ;;  %v4729_v25 = vld [vmem:[%s6884_s15 + $0x2e0] sm:$0xff] }
 0x665   :  { %v2256_v23 = vmax.f32 %v1957_v48, 0.0  ;;  %3503 = vmatpush.bf16.msrb.mxu3 %v4714_v11  ;;  %3470 = vmatpush.bf16.msrb.mxu1 %v4693_v53  ;;  %v1708_v48 = vperm.slane %v6398_v60, 4 }
 0x666   :  { %v2260_v51 = vmax.f32 %v2033_v33, 0.0 }
 0x667   :  { %3357 = vmatmul.bf16.vlgmr.msra.gmra.mxu2 %v2271_v43  ;;  %3395 = vmatmul.bf16.vlgmr.msra.gmra.mxu1 %v2273_v26  ;;  %v2288_v18 = vpack.c.bf16 %v2256_v23, %v2240_v13  ;;  %v1990_v42 = vadd.f32 %v6453_v19, %v1708_v48  ;;  %v4732_v26 = vld [vmem:[%s6884_s15 + $0x2f8] sm:$0xff]  ;;  %v1988_v60 = vadd.f32 %v6431_v41, %v1708_v48  ;;  %v4703_v19 = vld [vmem:[%s6884_s15 + $0x210] sm:$0xff] }
 0x668   :  { %v2292_v34 = vpack.c.bf16 %v2260_v51, %v2244_v46  ;;  %3482 = vmatpush.bf16.msra.mxu2 %v4708_v31  ;;  %3527 = vmatpush.bf16.msrb.mxu0 %v4717_v14  ;;  %v4748_v13 = vld [vmem:[%s6884_s15 + $0x378] sm:$0xff]  ;;  %v2045_v23 = vadd.f32 %v6549_v17, %v6629_v45  ;;  %v4731_v46 = vld [vmem:[%s6884_s15 + $0x2f0] sm:$0xff]  ;;  %v4702_v17 = vld [vmem:[%s6884_s15 + $0x208] sm:$0xff]  ;;  %v1993_v14 = vadd.f32 %v6483_v22, %v1708_v48 }
 0x669   :  { %3381 = vmatmul.bf16.gmra.mxu3 %v2288_v18  ;;  %3539 = vmatpush.bf16.msra.mxu1 %v4732_v26  ;;  %v4747_v51 = vld [vmem:[%s6884_s15 + $0x370] sm:$0xff]  ;;  %v2226_v11 = vmax.f32 %v1990_v42, 0.0 }
 0x66a   :  { %3457 = vmatmul.bf16.gmra.mxu0 %v2292_v34  ;;  %v2006_v58 = vpop.f32.mrf.mxu2  ;;  %3504 = vmatpush.bf16.msrb.mxu3 %v4713_v21  ;;  %v2210_v34 = vmax.f32 %v1988_v60, 0.0  ;;  %v2213_v53 = vmax.f32 %v2045_v23, 0.0  ;;  %v4739_v22 = vld [vmem:[%s6884_s15 + $0x330] sm:$0xff]  ;;  %v4726_v23 = vld [vmem:[%s6884_s15 + $0x2c8] sm:$0xff] }
 0x66b   :  { %v6575_v2 = vpop.f32.mrf.mxu3  ;;  %v2007_v10 = vadd.f32 %v2006_v58, %v6585_v12 }
 0x66c   :  { %v2046_v1 = vpop.f32.mrf.mxu1  ;;  %3483 = vmatpush.bf16.msra.mxu2 %v4707_v44  ;;  %v2274_v21 = vpack.c.bf16 %v2226_v11, %v2210_v34  ;;  %v4701_v44 = vld [vmem:[%s6884_s15 + $0x200] sm:$0xff]  ;;  %v1712_v34 = vperm.slane %v6663_v3, 0 }
 0x66d   :  { %v2211_v40 = vmax.f32 %v2007_v10, 0.0  ;;  %v2047_v43 = vadd.f32 %v2046_v1, %v6629_v45  ;;  %3540 = vmatpush.bf16.msra.mxu1 %v4731_v46  ;;  %v4737_v11 = vld [vmem:[%s6884_s15 + $0x320] sm:$0xff] }
 0x66e   :  { %3505 = vmatpush.bf16.msrb.mxu3 %v4712_v61  ;;  %v4730_v61 = vld [vmem:[%s6884_s15 + $0x2e8] sm:$0xff] }
 0x66f   :  { %v2229_v18 = vmax.f32 %v2047_v43, 0.0 }
 0x670   :  { %3484 = vmatpush.bf16.msra.mxu2 %v4706_v9  ;;  %v1995_v9 = vadd.f32 %v6517_v55, %v1708_v48 }
 0x671   :  { %v2277_v1 = vpack.c.bf16 %v2229_v18, %v2213_v53  ;;  %3541 = vmatpush.bf16.msra.mxu1 %v4730_v61  ;;  %v4725_v18 = vld [vmem:[%s6884_s15 + $0x2c0] sm:$0xff] }
 0x672   :  { %v2008_v62 = vpop.f32.mrf.mxu2  ;;  %3506 = vmatpush.bf16.msrb.mxu3 %v4711_v49 }
 0x673   :  { %v2009_v37 = vadd.f32 %v2008_v62, %v6585_v12  ;;  %v6608_v57 = vpop.f32.mrf.mxu3 }
 0x674   :  { %v6610_v0 = vpop.f32.mrf.mxu1  ;;  %3485 = vmatpush.bf16.msra.mxu2 %v4705_v30  ;;  %v2085_v55 = vadd.f32 %v6608_v57, %v6691_v7  ;;  %v2258_v30 = vmax.f32 %v1995_v9, 0.0  ;;  %v4727_v57 = vld [vmem:[%s6884_s15 + $0x2d0] sm:$0xff] }
 0x675   :  { %v2227_v36 = vmax.f32 %v2009_v37, 0.0  ;;  %3542 = vmatpush.bf16.msra.mxu1 %v4729_v25 }
 0x676   :  { %3507 = vmatpush.bf16.msrb.mxu3 %v4710_v16  ;;  %v2231_v42 = vmax.f32 %v2085_v55, 0.0  ;;  %v4733_v55 = vld [vmem:[%s6884_s15 + $0x300] sm:$0xff] }
 0x677   :  { %v2275_v6 = vpack.c.bf16 %v2227_v36, %v2211_v40  ;;  %3362 = vmatmul.bf16.gmra.mxu2 %v2287_v15  ;;  %3400 = vmatmul.bf16.gmra.mxu1 %v2289_v56  ;;  %v4728_v36 = vld [vmem:[%s6884_s15 + $0x2d8] sm:$0xff]  ;;  %v2050_v56 = vadd.f32 %v6610_v0, %v6629_v45  ;;  %v4743_v0 = vld [vmem:[%s6884_s15 + $0x350] sm:$0xff] }
 0x678   :  { %3486 = vmatpush.bf16.msra.mxu2 %v4704_v29  ;;  %v4744_v15 = vld [vmem:[%s6884_s15 + $0x358] sm:$0xff] }
 0x679   :  { %3433 = vmatmul.bf16.vlgmr.msra.gmra.mxu3 %v2275_v6  ;;  %3543 = vmatpush.bf16.msra.mxu1 %v4728_v36  ;;  %v2245_v43 = vmax.f32 %v2050_v56, 0.0  ;;  %v4762_v36 = vld [vmem:[%s6884_s15 + $0x3e8] sm:$0xff]  ;;  %v4753_v56 = vld [vmem:[%s6884_s15 + $0x3a0] sm:$0xff] }
 0x67a   :  { %v2011_v24 = vpop.f32.mrf.mxu2  ;;  %3508 = vmatpush.bf16.msrb.mxu3 %v4709_v28 }
 0x67b   :  { %v6631_v33 = vpop.f32.mrf.mxu3  ;;  %v2012_v41 = vadd.f32 %v2011_v24, %v6585_v12  ;;  %v2083_v24 = vadd.f32 %v6575_v2, %v6691_v7 }
 0x67c   :  { %v2051_v5 = vpop.f32.mrf.mxu1  ;;  %3487 = vmatpush.bf16.msra.mxu2 %v4703_v19  ;;  %v4742_v19 = vld [vmem:[%s6884_s15 + $0x348] sm:$0xff] }
 0x67d   :  { %v2243_v38 = vmax.f32 %v2012_v41, 0.0  ;;  %v2052_v50 = vadd.f32 %v2051_v5, %v6629_v45  ;;  %v4738_v45 = vld [vmem:[%s6884_s15 + $0x328] sm:$0xff]  ;;  %v2242_v5 = vmax.f32 %v1993_v14, 0.0  ;;  %3544 = vmatpush.bf16.msra.mxu1 %v4727_v57  ;;  %v2215_v26 = vmax.f32 %v2083_v24, 0.0  ;;  %v4741_v41 = vld [vmem:[%s6884_s15 + $0x340] sm:$0xff]  ;;  %v4752_v57 = vld [vmem:[%s6884_s15 + $0x398] sm:$0xff] }
 0x67e   :  { %3577 = vmatpush.bf16.msra.mxu3 %v4748_v13  ;;  %v4754_v14 = vld [vmem:[%s6884_s15 + $0x3a8] sm:$0xff] }
 0x67f   :  { %v2261_v28 = vmax.f32 %v2052_v50, 0.0  ;;  %v2290_v13 = vpack.c.bf16 %v2258_v30, %v2242_v5  ;;  %v2279_v46 = vpack.c.bf16 %v2231_v42, %v2215_v26  ;;  %v4751_v5 = vld [vmem:[%s6884_s15 + $0x390] sm:$0xff] }
 0x680   :  { %3488 = vmatpush.bf16.msra.mxu2 %v4702_v17  ;;  %v4736_v17 = vld [vmem:[%s6884_s15 + $0x318] sm:$0xff]  ;;  %v4759_v42 = vld [vmem:[%s6884_s15 + $0x3d0] sm:$0xff] }
 0x681   :  { %v2293_v60 = vpack.c.bf16 %v2261_v28, %v2245_v43  ;;  %3545 = vmatpush.bf16.msra.mxu1 %v4726_v23  ;;  %v1717_v28 = vperm.slane %v6663_v3, 5 }
 0x682   :  { %v2013_v35 = vpop.f32.mrf.mxu2  ;;  %3578 = vmatpush.bf16.msra.mxu3 %v4747_v51 }
 0x683   :  { %v2014_v20 = vadd.f32 %v2013_v35, %v6585_v12  ;;  %v6658_v31 = vpop.f32.mrf.mxu3  ;;  %v4746_v12 = vld [vmem:[%s6884_s15 + $0x368] sm:$0xff] }
 0x684   :  { %v2101_v58 = vpop.f32.mrf.mxu1  ;;  %3489 = vmatpush.bf16.msra.mxu2 %v4701_v44  ;;  %v2088_v44 = vadd.f32 %v6631_v33, %v6691_v7 }
 0x685   :  { %v2259_v4 = vmax.f32 %v2014_v20, 0.0  ;;  %v2102_v62 = vadd.f32 %v2101_v58, %v6672_v63  ;;  %3546 = vmatpush.bf16.msra.mxu1 %v4725_v18 }
 0x686   :  { %3579 = vmatpush.bf16.msra.mxu3 %v4746_v12  ;;  %v2247_v50 = vmax.f32 %v2088_v44, 0.0 }
 0x687   :  { %3414 = vmatmul.bf16.vlgmr.msrb.gmra.mxu2 %v2274_v21  ;;  %3471 = vmatmul.bf16.vlgmr.msrb.gmra.mxu1 %v2277_v1  ;;  %v2291_v47 = vpack.c.bf16 %v2259_v4, %v2243_v38  ;;  %v2216_v16 = vmax.f32 %v2102_v62, 0.0  ;;  %v4756_v1 = vld [vmem:[%s6884_s15 + $0x3b8] sm:$0xff]  ;;  %v2090_v4 = vadd.f32 %v6658_v31, %v6691_v7  ;;  %v4763_v31 = vld [vmem:[%s6884_s15 + $0x3f0] sm:$0xff] }
 0x688   :  { %3558 = vmatpush.bf16.msrb.mxu2 %v4740_v8  ;;  %v4764_v38 = vld [vmem:[%s6884_s15 + $0x3f8] sm:$0xff]  ;;  %3596 = vmatpush.bf16.msra.mxu0 %v4756_v1  ;;  %v4755_v8 = vld [vmem:[%s6884_s15 + $0x3b0] sm:$0xff] }
 0x689   :  { %3438 = vmatmul.bf16.gmra.mxu3 %v2291_v47  ;;  %3615 = vmatpush.bf16.msrb.mxu1 %v4764_v38  ;;  %v2263_v33 = vmax.f32 %v2090_v4, 0.0  ;;  %v1716_v4 = vperm.slane %v6663_v3, 4 }
 0x68a   :  { %v6686_v10 = vpop.f32.mrf.mxu2  ;;  %3580 = vmatpush.bf16.msra.mxu3 %v4745_v52 }
 0x68b   :  { %v6696_v40 = vpop.f32.mrf.mxu3  ;;  %v2064_v61 = vadd.f32 %v6686_v10, %v1712_v34 }
 0x68c   :  { %v2103_v49 = vpop.f32.mrf.mxu1  ;;  %3559 = vmatpush.bf16.msrb.mxu2 %v4739_v22  ;;  %3597 = vmatpush.bf16.msra.mxu0 %v4755_v8 }
 0x68d   :  { %v2104_v37 = vadd.f32 %v2103_v49, %v6672_v63  ;;  %v4734_v49 = vld [vmem:[%s6884_s15 + $0x308] sm:$0xff]  ;;  %v2214_v9 = vmax.f32 %v2064_v61, 0.0  ;;  %3616 = vmatpush.bf16.msrb.mxu1 %v4763_v31 }
 0x68e   :  { %3581 = vmatpush.bf16.msra.mxu3 %v4744_v15  ;;  %v2295_v15 = vpack.c.bf16 %v2263_v33, %v2247_v50 }
 0x68f   :  { %v2232_v6 = vmax.f32 %v2104_v37, 0.0 }
 0x690   :  { %3560 = vmatpush.bf16.msrb.mxu2 %v4738_v45  ;;  %3598 = vmatpush.bf16.msra.mxu0 %v4754_v14 }
 0x691   :  { %v2280_v29 = vpack.c.bf16 %v2232_v6, %v2216_v16  ;;  %3617 = vmatpush.bf16.msrb.mxu1 %v4762_v36  ;;  %v4761_v16 = vld [vmem:[%s6884_s15 + $0x3e0] sm:$0xff] }
 0x692   :  { %v2065_v48 = vpop.f32.mrf.mxu2  ;;  %3582 = vmatpush.bf16.msra.mxu3 %v4743_v0  ;;  %v4760_v0 = vld [vmem:[%s6884_s15 + $0x3d8] sm:$0xff] }
 0x693   :  { %3528 = vmatmul.bf16.vlgmr.msrb.gmra.mxu0 %v2280_v29  ;;  %v6728_v51 = vpop.f32.mrf.mxu3  ;;  %v2066_v58 = vadd.f32 %v2065_v48, %v1712_v34  ;;  %v1715_v29 = vperm.slane %v6663_v3, 3 }
 0x694   :  { %v2106_v2 = vpop.f32.mrf.mxu1  ;;  %3561 = vmatpush.bf16.msrb.mxu2 %v4737_v11  ;;  %3599 = vmatpush.bf16.msra.mxu0 %v4753_v56 }
 0x695   :  { %v2107_v53 = vadd.f32 %v2106_v2, %v6672_v63  ;;  %v2230_v25 = vmax.f32 %v2066_v58, 0.0  ;;  %3618 = vmatpush.bf16.msrb.mxu1 %v4761_v16  ;;  %v1719_v16 = vperm.slane %v6663_v3, 7 }
 0x696   :  { %3583 = vmatpush.bf16.msra.mxu3 %v4742_v19 }
 0x697   :  { %3419 = vmatmul.bf16.gmra.mxu2 %v2290_v13  ;;  %3476 = vmatmul.bf16.gmra.mxu1 %v2293_v60  ;;  %v2248_v12 = vmax.f32 %v2107_v53, 0.0  ;;  %v2278_v37 = vpack.c.bf16 %v2230_v25, %v2214_v9  ;;  %v4758_v53 = vld [vmem:[%s6884_s15 + $0x3c8] sm:$0xff] }
 0x698   :  { %3562 = vmatpush.bf16.msrb.mxu2 %v4736_v17  ;;  %3600 = vmatpush.bf16.msra.mxu0 %v4752_v57 }
 0x699   :  { %3509 = vmatmul.bf16.vlgmr.msrb.gmra.mxu3 %v2279_v46  ;;  %3619 = vmatpush.bf16.msrb.mxu1 %v4760_v0 }
 0x69a   :  { %v6739_v35 = vpop.f32.mrf.mxu2  ;;  %3584 = vmatpush.bf16.msra.mxu3 %v4741_v41 }
 0x69b   :  { %v6767_v10 = vpop.f32.mrf.mxu3  ;;  %v2069_v48 = vadd.f32 %v6739_v35, %v1712_v34 }
 0x69c   :  { %v2108_v20 = vpop.f32.mrf.mxu1  ;;  %3601 = vmatpush.bf16.msra.mxu0 %v4751_v5 }
 0x69d   :  { %v2109_v21 = vadd.f32 %v2108_v20, %v6672_v63  ;;  %v4735_v63 = vld [vmem:[%s6884_s15 + $0x310] sm:$0xff]  ;;  %v2246_v60 = vmax.f32 %v2069_v48, 0.0  ;;  %3620 = vmatpush.bf16.msrb.mxu1 %v4759_v42 }
 0x69e   :  { %4769 = vmatpush.bf16.msrb.mxu3 %v4756_v1  ;;  %3563 = vmatpush.bf16.msrb.mxu2 %v4735_v63  ;;  %v4757_v1 = vld [vmem:[%s6884_s15 + $0x3c0] sm:$0xff] }
 0x69f   :  { %v2264_v47 = vmax.f32 %v2109_v21, 0.0  ;;  %v4749_v21 = vld [vmem:[%s6884_s15 + $0x380] sm:$0xff] }
 0x6a1   :  { %v2296_v52 = vpack.c.bf16 %v2264_v47, %v2248_v12  ;;  %3621 = vmatpush.bf16.msrb.mxu1 %v4758_v53  ;;  %v2142_v12 = vadd.f32 %v6728_v51, %v1716_v4  ;;  %v2140_v47 = vadd.f32 %v6696_v40, %v1716_v4 }
 0x6a2   :  { %v2070_v62 = vpop.f32.mrf.mxu2  ;;  %4770 = vmatpush.bf16.msrb.mxu3 %v4755_v8  ;;  %3564 = vmatpush.bf16.msrb.mxu2 %v4734_v49 }
 0x6a3   :  { %3533 = vmatmul.bf16.gmra.mxu0 %v2296_v52  ;;  %v6787_v22 = vpop.f32.mrf.mxu3  ;;  %v2071_v24 = vadd.f32 %v2070_v62, %v1712_v34  ;;  %v4750_v34 = vld [vmem:[%s6884_s15 + $0x388] sm:$0xff]  ;;  %v2234_v25 = vmax.f32 %v2142_v12, 0.0  ;;  %v2218_v62 = vmax.f32 %v2140_v47, 0.0 }
 0x6a4   :  { %v2158_v7 = vpop.f32.mrf.mxu1  ;;  %3602 = vmatpush.bf16.msra.mxu0 %v4750_v34 }
 0x6a5   :  { %v2262_v43 = vmax.f32 %v2071_v24, 0.0  ;;  %v2159_v2 = vadd.f32 %v2158_v7, %v1717_v28  ;;  %3622 = vmatpush.bf16.msrb.mxu1 %v4757_v1  ;;  %v2282_v7 = vpack.c.bf16 %v2234_v25, %v2218_v62 }
 0x6a6   :  { %3565 = vmatpush.bf16.msrb.mxu2 %v4733_v55  ;;  %4771 = vmatpush.bf16.msrb.mxu3 %v4754_v14 }
 0x6a7   :  { %3490 = vmatmul.bf16.vlgmr.msra.gmra.mxu2 %v2278_v37  ;;  %v2219_v11 = vmax.f32 %v2159_v2, 0.0  ;;  %v2294_v35 = vpack.c.bf16 %v2262_v43, %v2246_v60 }
 0x6a8   :  { %3603 = vmatpush.bf16.msra.mxu0 %v4749_v21 }
 0x6a9   :  { %3514 = vmatmul.bf16.gmra.mxu3 %v2295_v15 }
 0x6aa   :  { %v2120_v6 = vpop.f32.mrf.mxu2  ;;  %4772 = vmatpush.bf16.msrb.mxu3 %v4753_v56  ;;  %v2147_v56 = vadd.f32 %v6787_v22, %v1716_v4 }
 0x6ab   :  { %v2121_v26 = vadd.f32 %v2120_v6, %v1715_v29  ;;  %v2196_v17 = vpop.f32.mrf.mxu3  ;;  %v1718_v6 = vperm.slane %v6663_v3, 6 }
 0x6ac   :  { %v2160_v30 = vpop.f32.mrf.mxu1 }
 0x6ad   :  { %v2161_v45 = vadd.f32 %v2160_v30, %v1717_v28  ;;  %v2217_v18 = vmax.f32 %v2121_v26, 0.0  ;;  %v2145_v30 = vadd.f32 %v6767_v10, %v1716_v4 }
 0x6ae   :  { %4773 = vmatpush.bf16.msrb.mxu3 %v4752_v57 }
 0x6af   :  { %v2235_v23 = vmax.f32 %v2161_v45, 0.0  ;;  %v2250_v48 = vmax.f32 %v2145_v30, 0.0 }
 0x6b1   :  { %v2283_v20 = vpack.c.bf16 %v2235_v23, %v2219_v11 }
 0x6b2   :  { %v2122_v13 = vpop.f32.mrf.mxu2  ;;  %4774 = vmatpush.bf16.msrb.mxu3 %v4751_v5 }
 0x6b3   :  { %v2123_v19 = vadd.f32 %v2122_v13, %v1715_v29  ;;  %v2198_v44 = vpop.f32.mrf.mxu3 }
 0x6b4   :  { %v2163_v46 = vpop.f32.mrf.mxu1  ;;  %v2199_v24 = vadd.f32 %v2198_v44, %v1719_v16 }
 0x6b5   :  { %v2233_v41 = vmax.f32 %v2123_v19, 0.0  ;;  %v2164_v52 = vadd.f32 %v2163_v46, %v1717_v28 }
 0x6b6   :  { %4775 = vmatpush.bf16.msrb.mxu3 %v4750_v34  ;;  %v2237_v45 = vmax.f32 %v2199_v24, 0.0 }
 0x6b7   :  { %v2281_v58 = vpack.c.bf16 %v2233_v41, %v2217_v18  ;;  %3495 = vmatmul.bf16.gmra.mxu2 %v2294_v35  ;;  %v2251_v50 = vmax.f32 %v2164_v52, 0.0 }
 0x6b9   :  { %3547 = vmatmul.bf16.vlgmr.msra.gmra.mxu1 %v2281_v58  ;;  %3585 = vmatmul.bf16.vlgmr.msra.gmra.mxu3 %v2283_v20  ;;  %v4788_v20 = vld [vmem:[%s6885_s16] ss:$0 sm:$0xff] }
 0x6ba   :  { %v2125_v38 = vpop.f32.mrf.mxu2  ;;  %4776 = vmatpush.bf16.msrb.mxu3 %v4749_v21 }
 0x6bb   :  { %v2126_v8 = vadd.f32 %v2125_v38, %v1715_v29  ;;  %v2201_v40 = vpop.f32.mrf.mxu3 }
 0x6bc   :  { %v2165_v61 = vpop.f32.mrf.mxu1  ;;  %v2202_v11 = vadd.f32 %v2201_v40, %v1719_v16 }
 0x6bd   :  { %v2166_v63 = vadd.f32 %v2165_v61, %v1717_v28  ;;  %v2249_v37 = vmax.f32 %v2126_v8, 0.0  ;;  %v2266_v28 = vmax.f32 %v2147_v56, 0.0 }
 0x6be   :  { %v2253_v53 = vmax.f32 %v2202_v11, 0.0 }
 0x6bf   :  { %v2267_v49 = vmax.f32 %v2166_v63, 0.0  ;;  %v2298_v2 = vpack.c.bf16 %v2266_v28, %v2250_v48 }
 0x6c1   :  { %v2299_v36 = vpack.c.bf16 %v2267_v49, %v2251_v50 }
 0x6c2   :  { %v2127_v31 = vpop.f32.mrf.mxu2 }
 0x6c3   :  { %v2128_v33 = vadd.f32 %v2127_v31, %v1715_v29  ;;  %v2197_v29 = vadd.f32 %v2196_v17, %v1719_v16  ;;  %v2203_v42 = vpop.f32.mrf.mxu3 }
 0x6c4   :  { %v3339_v9 = vpop.f32.mrf.mxu1  ;;  %v2204_v46 = vadd.f32 %v2203_v42, %v1719_v16 }
 0x6c5   :  { %v2265_v14 = vmax.f32 %v2128_v33, 0.0  ;;  %v2221_v26 = vmax.f32 %v2197_v29, 0.0  ;;  %v3340_v61 = vadd.f32 %v4788_v20, %v3339_v9 }
 0x6c6   :  { %v2269_v35 = vmax.f32 %v2204_v46, 0.0 }
 0x6c7   :  { %v2297_v15 = vpack.c.bf16 %v2265_v14, %v2249_v37  ;;  %3566 = vmatmul.bf16.vlgmr.msrb.gmra.mxu2 %v2282_v7  ;;  %v2285_v60 = vpack.c.bf16 %v2237_v45, %v2221_v26 }
 0x6c8   :  { %v2301_v1 = vpack.c.bf16 %v2269_v35, %v2253_v53 }
 0x6c9   :  { %3552 = vmatmul.bf16.gmra.mxu1 %v2297_v15  ;;  %3590 = vmatmul.bf16.gmra.mxu3 %v2299_v36 }
 0x6ca   :  { %v2177_v51 = vpop.f32.mrf.mxu2 }
 0x6cb   :  { %v2178_v57 = vadd.f32 %v2177_v51, %v1718_v6 }
 0x6cc   :  { %v3341_v55 = vpop.f32.mrf.mxu1 }
 0x6cd   :  { %v2220_v13 = vmax.f32 %v2178_v57, 0.0  ;;  %v3342_v52 = vadd.f32 %v4788_v20, %v3341_v55 }
 0x6d2   :  { %v2179_v0 = vpop.f32.mrf.mxu2 }
 0x6d3   :  { %v2180_v5 = vadd.f32 %v2179_v0, %v1718_v6 }
 0x6d4   :  { %v3344_v43 = vpop.f32.mrf.mxu1 }
 0x6d5   :  { %v2236_v22 = vmax.f32 %v2180_v5, 0.0  ;;  %v3345_v50 = vadd.f32 %v4788_v20, %v3344_v43 }
 0x6d7   :  { %v2284_v23 = vpack.c.bf16 %v2236_v22, %v2220_v13  ;;  %3571 = vmatmul.bf16.gmra.mxu2 %v2298_v2  ;;  %v3453_v28 = vpop.f32.mrf.mxu0 }
 0x6d9   :  { %3604 = vmatmul.bf16.vlgmr.msra.gmra.mxu0 %v2284_v23  ;;  %3623 = vmatmul.bf16.vlgmr.msrb.gmra.mxu1 %v2285_v60 }
 0x6da   :  { %v2182_v3 = vpop.f32.mrf.mxu2 }
 0x6db   :  { %v2183_v18 = vadd.f32 %v2182_v3, %v1718_v6 }
 0x6dc   :  { %v3377_v10 = vpop.f32.mrf.mxu3  ;;  %v3346_v19 = vpop.f32.mrf.mxu1 }
 0x6dd   :  { %v2252_v58 = vmax.f32 %v2183_v18, 0.0  ;;  %v3347_v51 = vadd.f32 %v4788_v20, %v3346_v19 }
 0x6df   :  { %v3455_v45 = vpop.f32.mrf.mxu0 }
 0x6e2   :  { %v2184_v41 = vpop.f32.mrf.mxu2 }
 0x6e3   :  { %v2185_v17 = vadd.f32 %v2184_v41, %v1718_v6 }
 0x6e4   :  { %v3379_v34 = vpop.f32.mrf.mxu3  ;;  %v3396_v4 = vpop.f32.mrf.mxu1 }
 0x6e5   :  { %v2268_v21 = vmax.f32 %v2185_v17, 0.0 }
 0x6e7   :  { %v2300_v38 = vpack.c.bf16 %v2268_v21, %v2252_v58  ;;  %v3458_v2 = vpop.f32.mrf.mxu0 }
 0x6e9   :  { %3609 = vmatmul.bf16.vlgmr.msrb.gmra.mxu3 %v2300_v38  ;;  %3628 = vmatmul.bf16.gmra.mxu1 %v2301_v1 }
 0x6ea   :  { %v3358_v12 = vpop.f32.mrf.mxu2 }
 0x6eb   :  { %v3359_v47 = vadd.f32 %v3358_v12, %v3340_v61 }
 0x6ec   :  { %v3382_v63 = vpop.f32.mrf.mxu3  ;;  %v3398_v8 = vpop.f32.mrf.mxu1 }
 0x6ed   :  { %v3378_v44 = vadd.f32 %v3377_v10, %v3359_v47 }
 0x6ef   :  { %v3397_v25 = vadd.f32 %v3396_v4, %v3378_v44  ;;  %v3460_v60 = vpop.f32.mrf.mxu0 }
 0x6f2   :  { %v3360_v31 = vpop.f32.mrf.mxu2 }
 0x6f3   :  { %v3361_v62 = vadd.f32 %v3360_v31, %v3342_v52 }
 0x6f4   :  { %v3384_v49 = vpop.f32.mrf.mxu3  ;;  %v3401_v36 = vpop.f32.mrf.mxu1 }
 0x6f5   :  { %v3380_v33 = vadd.f32 %v3379_v34, %v3361_v62 }
 0x6f7   :  { %v3399_v7 = vadd.f32 %v3398_v8, %v3380_v33 }
 0x6fa   :  { %v3363_v37 = vpop.f32.mrf.mxu2 }
 0x6fb   :  { %v3364_v14 = vadd.f32 %v3363_v37, %v3345_v50 }
 0x6fc   :  { %v3434_v15 = vpop.f32.mrf.mxu3  ;;  %v3403_v24 = vpop.f32.mrf.mxu1 }
 0x6fd   :  { %v3383_v9 = vadd.f32 %v3382_v63, %v3364_v14 }
 0x6ff   :  { %v3402_v40 = vadd.f32 %v3401_v36, %v3383_v9 }
 0x702   :  { %v3365_v56 = vpop.f32.mrf.mxu2 }
 0x703   :  { %v3366_v16 = vadd.f32 %v3365_v56, %v3347_v51 }
 0x704   :  { %v3436_v6 = vpop.f32.mrf.mxu3  ;;  %v3472_v0 = vpop.f32.mrf.mxu1 }
 0x705   :  { %v3385_v30 = vadd.f32 %v3384_v49, %v3366_v16 }
 0x707   :  { %v3404_v55 = vadd.f32 %v3403_v24, %v3385_v30 }
 0x70a   :  { %v3415_v29 = vpop.f32.mrf.mxu2 }
 0x70b   :  { %v3416_v41 = vadd.f32 %v3415_v29, %v3397_v25 }
 0x70c   :  { %v3439_v57 = vpop.f32.mrf.mxu3  ;;  %v3474_v42 = vpop.f32.mrf.mxu1 }
 0x70d   :  { %v3435_v34 = vadd.f32 %v3434_v15, %v3416_v41 }
 0x70f   :  { %v3454_v21 = vadd.f32 %v3453_v28, %v3435_v34 }
 0x710   :  { %v3529_v19 = vpop.f32.mrf.mxu0 }
 0x711   :  { %v3473_v4 = vadd.f32 %v3472_v0, %v3454_v21 }
 0x712   :  { %v3417_v48 = vpop.f32.mrf.mxu2 }
 0x713   :  { %v3418_v58 = vadd.f32 %v3417_v48, %v3399_v7 }
 0x714   :  { %v3441_v5 = vpop.f32.mrf.mxu3  ;;  %v3477_v22 = vpop.f32.mrf.mxu1 }
 0x715   :  { %v3437_v38 = vadd.f32 %v3436_v6, %v3418_v58 }
 0x717   :  { %v3456_v44 = vadd.f32 %v3455_v45, %v3437_v38 }
 0x718   :  { %v3531_v35 = vpop.f32.mrf.mxu0 }
 0x719   :  { %v3475_v8 = vadd.f32 %v3474_v42, %v3456_v44 }
 0x71a   :  { %v3420_v43 = vpop.f32.mrf.mxu2 }
 0x71b   :  { %v3421_v62 = vadd.f32 %v3420_v43, %v3402_v40 }
 0x71c   :  { %v3510_v26 = vpop.f32.mrf.mxu3  ;;  %v3479_v10 = vpop.f32.mrf.mxu1 }
 0x71d   :  { %v3440_v7 = vadd.f32 %v3439_v57, %v3421_v62 }
 0x71f   :  { %v3459_v51 = vadd.f32 %v3458_v2, %v3440_v7 }
 0x720   :  { %v3534_v61 = vpop.f32.mrf.mxu0 }
 0x721   :  { %v3478_v40 = vadd.f32 %v3477_v22, %v3459_v51 }
 0x722   :  { %v3422_v13 = vpop.f32.mrf.mxu2 }
 0x723   :  { %v3423_v9 = vadd.f32 %v3422_v13, %v3404_v55 }
 0x724   :  { %v3512_v23 = vpop.f32.mrf.mxu3 }
 0x725   :  { %v3442_v0 = vadd.f32 %v3441_v5, %v3423_v9 }
 0x727   :  { %v3461_v57 = vadd.f32 %v3460_v60, %v3442_v0 }
 0x728   :  { %v3536_v33 = vpop.f32.mrf.mxu0 }
 0x72a   :  { %v3491_v3 = vpop.f32.mrf.mxu2 }
 0x72b   :  { %v3492_v12 = vadd.f32 %v3491_v3, %v3473_v4 }
 0x72c   :  { %v3515_v46 = vpop.f32.mrf.mxu3 }
 0x72d   :  { %v3511_v52 = vadd.f32 %v3510_v26, %v3492_v12 }
 0x72f   :  { %v3530_v49 = vadd.f32 %v3529_v19, %v3511_v52 }
 0x732   :  { %v3493_v11 = vpop.f32.mrf.mxu2 }
 0x733   :  { %v3494_v25 = vadd.f32 %v3493_v11, %v3475_v8  ;;  %v3480_v11 = vadd.f32 %v3479_v10, %v3461_v57 }
 0x734   :  { %v3517_v53 = vpop.f32.mrf.mxu3 }
 0x735   :  { %v3513_v36 = vadd.f32 %v3512_v23, %v3494_v25 }
 0x736   :  { %v3548_v18 = vpop.f32.mrf.mxu1 }
 0x737   :  { %v3549_v37 = vadd.f32 %v3548_v18, %v3530_v49  ;;  %v3532_v56 = vadd.f32 %v3531_v35, %v3513_v36 }
 0x73a   :  { %v3496_v17 = vpop.f32.mrf.mxu2 }
 0x73b   :  { %v3497_v43 = vadd.f32 %v3496_v17, %v3478_v40 }
 0x73c   :  { %v3586_v47 = vpop.f32.mrf.mxu3 }
 0x73d   :  { %v3516_v13 = vadd.f32 %v3515_v46, %v3497_v43 }
 0x73e   :  { %v3550_v20 = vpop.f32.mrf.mxu1 }
 0x73f   :  { %v3551_v28 = vadd.f32 %v3550_v20, %v3532_v56  ;;  %v3535_v22 = vadd.f32 %v3534_v61, %v3516_v13 }
 0x742   :  { %v3498_v1 = vpop.f32.mrf.mxu2 }
 0x743   :  { %v3499_v5 = vadd.f32 %v3498_v1, %v3480_v11  ;;  %v4789_v11 = vld [vmem:[%s6886_s17] ss:$0 sm:$0xff]  ;;  %s4908_s17 = smov [#allocation2]  }
 0x744   :  { %v3588_v14 = vpop.f32.mrf.mxu3 }
 0x745   :  { %v3518_v60 = vadd.f32 %v3517_v53, %v3499_v5 }
 0x746   :  { %v3553_v63 = vpop.f32.mrf.mxu1 }
 0x747   :  { %v3554_v17 = vadd.f32 %v3553_v63, %v3535_v22  ;;  %v3537_v58 = vadd.f32 %v3536_v33, %v3518_v60  ;;  %v4790_v22 = vld [vmem:[%s6887_s18] ss:$0 sm:$0xff]  ;;  %s3750_s18 = sshll.u32 %s4908_s17, 4  ;;  %s3751_s18 = int_to_ptr.vmem [resolvable:$true] %s3750_s18 }
 0x74a   :  { %v3567_v31 = vpop.f32.mrf.mxu2 }
 0x74b   :  { %v3568_v15 = vadd.f32 %v3567_v31, %v3549_v37 }
 0x74c   :  { %v3591_v42 = vpop.f32.mrf.mxu3 }
 0x74d   :  { %v3587_v6 = vadd.f32 %v3586_v47, %v3568_v15 }
 0x74e   :  { %v3555_v50 = vpop.f32.mrf.mxu1 }
 0x74f   :  { %v3556_v12 = vadd.f32 %v3555_v50, %v3537_v58 }
 0x752   :  { %v3569_v16 = vpop.f32.mrf.mxu2 }
 0x753   :  { %v3570_v48 = vadd.f32 %v3569_v16, %v3551_v28 }
 0x754   :  { %v3593_v34 = vpop.f32.mrf.mxu3 }
 0x755   :  { %v3589_v23 = vadd.f32 %v3588_v14, %v3570_v48 }
 0x756   :  { %v3605_v30 = vpop.f32.mrf.mxu0  ;;  %v3624_v24 = vpop.f32.mrf.mxu1 }
 0x757   :  { %v3606_v29 = vadd.f32 %v3605_v30, %v3587_v6 }
 0x759   :  { %v3625_v45 = vadd.f32 %v3624_v24, %v3606_v29 }
 0x75a   :  { %v3572_v18 = vpop.f32.mrf.mxu2 }
 0x75b   :  { %v3634_v26 = vadd.f32 %v3625_v45, %v6042_v39  ;;  %v3573_v20 = vadd.f32 %v3572_v18, %v3554_v17 }
 0x75d   :  { %v3640_v55 = vsel %vm326_vm1, %v3634_v26, 0.0  ;;  %v3592_v38 = vadd.f32 %v3591_v42, %v3573_v20 }
 0x75e   :  { %v3607_v2 = vpop.f32.mrf.mxu0  ;;  %3641 = vadd.xlane.f32.xlu2 %v3640_v55  ;;  %v3626_v19 = vpop.f32.mrf.mxu1 }
 0x75f   :  { %v3608_v3 = vadd.f32 %v3607_v2, %v3589_v23 }
 0x761   :  { %v3627_v41 = vadd.f32 %v3626_v19, %v3608_v3 }
 0x762   :  { %v3574_v21 = vpop.f32.mrf.mxu2 }
 0x763   :  { %v3635_v35 = vadd.f32 %v3627_v41, %v6045_v54  ;;  %v3575_v47 = vadd.f32 %v3574_v21, %v3556_v12 }
 0x765   :  { %v3643_v39 = vsel %vm326_vm1, %v3635_v35, 0.0  ;;  %v3594_v61 = vadd.f32 %v3593_v34, %v3575_v47 }
 0x766   :  { %3644 = vadd.xlane.f32.xlu0 %v3643_v39  ;;  %v3629_v46 = vpop.f32.mrf.mxu1 }
 0x76c   :  { %v3610_v4 = vpop.f32.mrf.mxu3 }
 0x76d   :  { %v3611_v10 = vadd.f32 %v3610_v4, %v3592_v38 }
 0x76e   :  { %v3631_v8 = vpop.f32.mrf.mxu1 }
 0x76f   :  { %v3630_v44 = vadd.f32 %v3629_v46, %v3611_v10 }
 0x771   :  { %v3636_v1 = vadd.f32 %v3630_v44, %v6118_v32 }
 0x773   :  { %v3646_v54 = vsel %vm326_vm1, %v3636_v1, 0.0 }
 0x774   :  { %v3612_v63 = vpop.f32.mrf.mxu3  ;;  %3647 = vadd.xlane.f32.xlu1 %v3646_v54 }
 0x775   :  { %v3613_v52 = vadd.f32 %v3612_v63, %v3594_v61 }
 0x777   :  { %v3632_v53 = vadd.f32 %v3631_v8, %v3613_v52 }
 0x779   :  { %v3637_v31 = vadd.f32 %v3632_v53, %v6121_v27 }
 0x77b   :  { %v3649_v62 = vsel %vm326_vm1, %v3637_v31, 0.0 }
 0x77c   :  { %3650 = vadd.xlane.f32.xlu2 %v3649_v62 }
 0x7d1   :  { %v3642_v25 = vpop.xlane.xlu2 %3641 }
 0x7d2   :  { %v3652_v49 = vmul.f32 %v3642_v25, %v5969_v59 }
 0x7d4   :  { %v3656_v33 = vsub.f32 %v3634_v26, %v3652_v49 }
 0x7d6   :  { %v3660_v50 = vmul.f32 %v3656_v33, %v3656_v33 }
 0x7d8   :  { %v3664_v32 = vsel %vm326_vm1, %v3660_v50, 0.0 }
 0x7d9   :  { %v3645_v37 = vpop.xlane.xlu0 %3644  ;;  %3665 = vadd.xlane.f32.xlu0 %v3664_v32 }
 0x7da   :  { %v3653_v14 = vmul.f32 %v3645_v37, %v5969_v59 }
 0x7dc   :  { %v3657_v7 = vsub.f32 %v3635_v35, %v3653_v14 }
 0x7de   :  { %v3661_v36 = vmul.f32 %v3657_v7, %v3657_v7 }
 0x7e0   :  { %v3667_v15 = vsel %vm326_vm1, %v3661_v36, 0.0 }
 0x7e1   :  { %3668 = vadd.xlane.f32.xlu1 %v3667_v15 }
 0x7e7   :  { %v3648_v27 = vpop.xlane.xlu1 %3647 }
 0x7e8   :  { %v3654_v9 = vmul.f32 %v3648_v27, %v5969_v59 }
 0x7ea   :  { %v6839_v51 = vsub.f32 %v3636_v1, %v3654_v9 }
 0x7ec   :  { %v3662_v56 = vmul.f32 %v6839_v51, %v6839_v51 }
 0x7ee   :  { %v3670_v16 = vsel %vm326_vm1, %v3662_v56, 0.0 }
 0x7ef   :  { %v3651_v6 = vpop.xlane.xlu2 %3650  ;;  %3671 = vadd.xlane.f32.xlu2 %v3670_v16 }
 0x7f0   :  { %v3655_v30 = vmul.f32 %v3651_v6, %v5969_v59 }
 0x7f2   :  { %v6845_v24 = vsub.f32 %v3637_v31, %v3655_v30 }
 0x7f4   :  { %v3663_v28 = vmul.f32 %v6845_v24, %v6845_v24 }
 0x7f6   :  { %v3673_v29 = vsel %vm326_vm1, %v3663_v28, 0.0 }
 0x7f7   :  { %3674 = vadd.xlane.f32.xlu0 %v3673_v29 }
 0x84c   :  { %v3666_v0 = vpop.xlane.xlu0 %3665 }
 0x84d   :  { %v3676_v40 = vmul.f32 %v3666_v0, %v5969_v59 }
 0x84f   :  { %v3680_v48 = vadd.f32 1e-05, %v3676_v40 }
 0x851   :  { %4873 = vrsqrt.f32 %v3680_v48  ;;  %vm3690_vm3 = vweird.f32 %v3680_v48 }
 0x854   :  { %v3669_v45 = vpop.xlane.xlu1 %3668 }
 0x855   :  { %v3677_v42 = vmul.f32 %v3669_v45, %v5969_v59 }
 0x857   :  { %v4874_v43 = vpop.eup %4873  ;;  %v3681_v26 = vadd.f32 1e-05, %v3677_v42 }
 0x858   :  { %v3685_v57 = vmul.f32 %v4874_v43, %v3680_v48  ;;  %vm3691_vm2 = vweird.f32 %v4874_v43 }
 0x859   :  { %4875 = vrsqrt.f32 %v3681_v26  ;;  %vm3692_vm4 = vmor %vm3690_vm3, %vm3691_vm2  ;;  %vm3700_vm6 = vweird.f32 %v3681_v26 }
 0x85a   :  { %v3686_v23 = vmul.f32 %v4874_v43, %v3685_v57 }
 0x85c   :  { %v3687_v55 = vmul.f32 0.5, %v3686_v23 }
 0x85e   :  { %v3688_v2 = vsub.f32 1.5, %v3687_v55 }
 0x85f   :  { %v4876_v13 = vpop.eup %4875 }
 0x860   :  { %v3689_v3 = vmul.f32 %v4874_v43, %v3688_v2  ;;  %v3695_v19 = vmul.f32 %v4876_v13, %v3681_v26  ;;  %vm3701_vm5 = vweird.f32 %v4876_v13 }
 0x861   :  { %vm3702_vm7 = vmor %vm3700_vm6, %vm3701_vm5 }
 0x862   :  { %v3693_v18 = vsel %vm3692_vm4, %v4874_v43, %v3689_v3  ;;  %v3696_v41 = vmul.f32 %v4876_v13, %v3695_v19  ;;  %v3672_v5 = vpop.xlane.xlu2 %3671 }
 0x863   :  { %v3724_v35 = vmul.f32 %v3693_v18, %v3656_v33  ;;  %v3678_v34 = vmul.f32 %v3672_v5, %v5969_v59 }
 0x864   :  { %v3697_v17 = vmul.f32 0.5, %v3696_v41 }
 0x865   :  { %v3731_v39 = vmul.f32 %v4789_v11, %v3724_v35  ;;  %v3682_v60 = vadd.f32 1e-05, %v3678_v34 }
 0x866   :  { %v3698_v20 = vsub.f32 1.5, %v3697_v17 }
 0x867   :  { %v3738_v58 = vadd.f32 %v4790_v22, %v3731_v39  ;;  %4877 = vrsqrt.f32 %v3682_v60  ;;  %vm3710_vm9 = vweird.f32 %v3682_v60 }
 0x868   :  { %v3699_v21 = vmul.f32 %v4876_v13, %v3698_v20 }
 0x869   :  { %3742 = vst.msk [vmem:[#allocation2] sm:$0xff] %vm326_vm1, %v3738_v58 }
 0x86a   :  { %v3703_v38 = vsel %vm3702_vm7, %v4876_v13, %v3699_v21  ;;  %v3675_v46 = vpop.xlane.xlu0 %3674 }
 0x86b   :  { %v3725_v4 = vmul.f32 %v3703_v38, %v3657_v7  ;;  %v3679_v12 = vmul.f32 %v3675_v46, %v5969_v59 }
 0x86d   :  { %v4878_v10 = vpop.eup %4877  ;;  %v3732_v47 = vmul.f32 %v4789_v11, %v3725_v4  ;;  %v3683_v44 = vadd.f32 1e-05, %v3679_v12 }
 0x86e   :  { %v3705_v1 = vmul.f32 %v4878_v10, %v3682_v60  ;;  %vm3711_vm8 = vweird.f32 %v4878_v10 }
 0x86f   :  { %v3739_v61 = vadd.f32 %v4790_v22, %v3732_v47  ;;  %4879 = vrsqrt.f32 %v3683_v44  ;;  %vm3712_vm10 = vmor %vm3710_vm9, %vm3711_vm8  ;;  %vm3720_vm12 = vweird.f32 %v3683_v44 }
 0x870   :  { %v3706_v54 = vmul.f32 %v4878_v10, %v3705_v1 }
 0x871   :  { %3743 = vst.msk [vmem:[#allocation2 + $0x8] sm:$0xff] %vm326_vm1, %v3739_v61 }
 0x872   :  { %v3707_v63 = vmul.f32 0.5, %v3706_v54 }
 0x874   :  { %v3708_v52 = vsub.f32 1.5, %v3707_v63 }
 0x875   :  { %v4880_v8 = vpop.eup %4879 }
 0x876   :  { %v3709_v53 = vmul.f32 %v4878_v10, %v3708_v52  ;;  %v3715_v31 = vmul.f32 %v4880_v8, %v3683_v44  ;;  %vm3721_vm11 = vweird.f32 %v4880_v8 }
 0x877   :  { %vm3722_vm13 = vmor %vm3720_vm12, %vm3721_vm11 }
 0x878   :  { %v3713_v62 = vsel %vm3712_vm10, %v4878_v10, %v3709_v53  ;;  %v3716_v25 = vmul.f32 %v4880_v8, %v3715_v31 }
 0x879   :  { %v3726_v59 = vmul.f32 %v3713_v62, %v6839_v51 }
 0x87a   :  { %v3717_v49 = vmul.f32 0.5, %v3716_v25 }
 0x87b   :  { %v3733_v33 = vmul.f32 %v4789_v11, %v3726_v59 }
 0x87c   :  { %v3718_v50 = vsub.f32 1.5, %v3717_v49 }
 0x87d   :  { %v3740_v32 = vadd.f32 %v4790_v22, %v3733_v33 }
 0x87e   :  { %v3719_v37 = vmul.f32 %v4880_v8, %v3718_v50 }
 0x87f   :  { %3744 = vst.msk [vmem:[#allocation2 + $0x10] sm:$0xff] %vm326_vm1, %v3740_v32 }
 0x880   :  { %v3723_v14 = vsel %vm3722_vm13, %v4880_v8, %v3719_v37 }
 0x881   :  { %v3727_v7 = vmul.f32 %v3723_v14, %v6845_v24 }
 0x883   :  { %v3734_v36 = vmul.f32 %v4789_v11, %v3727_v7 }
 0x885   :  { %v3741_v15 = vadd.f32 %v4790_v22, %v3734_v36 }
 0x887   :  { %3745 = vst.msk [vmem:[#allocation2 + $0x18] sm:$0xff] %vm326_vm1, %v3741_v15 }
 0x888   :  { %3758 = dma.vmem_to_hbm [thread:$0]  %s3751_s18, 512, %s3753_s7, [#allocation3], %s4909_s0, %s4909_s0, %s4910_s29  }
 0x889   :  { %4905 = dma.done.wait [#allocation3], 512  }
 0x88a   :  { %4906 = vsyncadd [#allocation3], 4294966784 }
 0x88b   :  { %3763 = vsyncpa [#allocation3], 1 }

</bundles_post_ra>
